<compile_context>
chip_gen: v5e
topology: v5e:2x2
jax: 0.10.0
libtpu: 0.0.40
codegen_flags: <defaults>
</compile_context>

<pallas_src>
import functools
import math

import jax
import jax.numpy as jnp
from jax import lax
from jax.experimental import pallas as pl
from jax.experimental.pallas import tpu as pltpu

# MXU operand / activation-stream dtype (accumulation is always f32).
MXU_DTYPE = jnp.bfloat16
LN_EPS = 1e-5


def _round_up(x, m):
    return ((x + m - 1) // m) * m


@functools.lru_cache(maxsize=1)
def _device_tiles():
    """Generation-dependent linear tile preferences (tm, tn, tk)."""
    try:
        kind = jax.devices()[0].device_kind.lower()
    except Exception:
        kind = ""
    if "v6" in kind or "v7" in kind:
        return 256, 256, 512        # 2x256^2 MXU
    return 128, 128, 256            # v5e (4x128^2 MXU) and default


def _pick_tile_div(dim, pref):
    """Tile for `dim`: the whole dim if small, else the largest 128-multiple
    <= pref that divides it (falls back to pref => caller pads)."""
    if dim <= pref:
        return dim
    for t in range(pref, 127, -128):
        if dim % t == 0:
            return t
    return pref


def _pick_seq_tile(length, pref):
    if length <= pref:
        return length
    for t in range(pref, 7, -8):
        if length % t == 0:
            return t
    return length


# ----------------------------------------------------------------------------
# One-time weight prep (hoisted out of the forward / layer loops)
# ----------------------------------------------------------------------------
def prep_linear(w, b, *, full_n=False):
    """Pad to tile multiples and cast to bf16 once. full_n=True keeps the N
    axis unpadded (required for the fused residual+LayerNorm epilogue, which
    reduces over the true feature dim)."""
    _, tn_pref, tk_pref = _device_tiles()
    K, N = w.shape
    tk = _pick_tile_div(K, tk_pref)
    Kp = _round_up(K, tk)
    if full_n:
        Np = N
    else:
        tn = _pick_tile_div(N, tn_pref)
        Np = _round_up(N, tn)
    wp = jnp.pad(w, ((0, Kp - K), (0, Np - N))).astype(MXU_DTYPE)
    bp = jnp.pad(b.astype(jnp.float32), (0, Np - N)).reshape(1, Np)
    return {"w": wp, "b": bp}


# ----------------------------------------------------------------------------
# Tiled linear: y = act(x @ w + b)            (bf16 operands, f32 accumulator)
# ----------------------------------------------------------------------------
def _linear_kernel(x_ref, w_ref, b_ref, o_ref, acc_ref, *, act):
    k = pl.program_id(2)

    @pl.when(k == 0)
    def _():
        acc_ref[...] = jnp.zeros_like(acc_ref)

    acc_ref[...] += jnp.dot(x_ref[...], w_ref[...],
                            preferred_element_type=jnp.float32)

    @pl.when(k == pl.num_programs(2) - 1)
    def _():
        y = acc_ref[...] + b_ref[...]
        if act == "relu":
            y = jnp.maximum(y, 0.0)
        o_ref[...] = y.astype(o_ref.dtype)


def pallas_linear(x, p, *, act="none", out_dtype=MXU_DTYPE, n_out=None):
    """x: [M, K] (cast to bf16 here if not already); p: prepped weight dict."""
    w, b = p["w"], p["b"]
    M, K = x.shape
    Kp, Np = w.shape
    tm_pref, tn_pref, tk_pref = _device_tiles()
    tm = _round_up(M, 8) if M <= tm_pref else tm_pref
    Mp = _round_up(M, tm)
    tn = _pick_tile_div(Np, tn_pref)
    tk = _pick_tile_div(Kp, tk_pref)

    xp = x.astype(MXU_DTYPE)
    if (Mp, Kp) != (M, K):
        xp = jnp.pad(xp, ((0, Mp - M), (0, Kp - K)))

    out = pl.pallas_call(
        functools.partial(_linear_kernel, act=act),
        out_shape=jax.ShapeDtypeStruct((Mp, Np), out_dtype),
        grid=(Mp // tm, Np // tn, Kp // tk),
        in_specs=[
            pl.BlockSpec((tm, tk), lambda i, j, k: (i, k)),
            pl.BlockSpec((tk, tn), lambda i, j, k: (k, j)),
            pl.BlockSpec((1, tn), lambda i, j, k: (0, j)),
        ],
        out_specs=pl.BlockSpec((tm, tn), lambda i, j, k: (i, j)),
        scratch_shapes=[pltpu.VMEM((tm, tn), jnp.float32)],
        compiler_params=pltpu.CompilerParams(
            dimension_semantics=("parallel", "parallel", "arbitrary")),
    )(xp, w, b)

    n_out = Np if n_out is None else n_out
    if (Mp, Np) != (M, n_out):
        out = out[:M, :n_out]
    return out


# ----------------------------------------------------------------------------
# Linear with fused residual-add + LayerNorm epilogue:
#   out = LayerNorm(x @ w + b + res) * gamma + beta
# ----------------------------------------------------------------------------
def _linear_ln_kernel(x_ref, w_ref, b_ref, r_ref, g_ref, bt_ref, o_ref, acc_ref,
                      *, eps):
    k = pl.program_id(1)

    @pl.when(k == 0)
    def _():
        acc_ref[...] = jnp.zeros_like(acc_ref)

    acc_ref[...] += jnp.dot(x_ref[...], w_ref[...],
                            preferred_element_type=jnp.float32)

    @pl.when(k == pl.num_programs(1) - 1)
    def _():
        y = acc_ref[...] + b_ref[...] + r_ref[...].astype(jnp.float32)
        mu = jnp.mean(y, axis=-1, keepdims=True)
        var = jnp.mean(jnp.square(y - mu), axis=-1, keepdims=True)
        o_ref[...] = ((y - mu) * lax.rsqrt(var + eps) * g_ref[...]
                      + bt_ref[...]).astype(o_ref.dtype)


def pallas_linear_ln(x, p, res, gamma, beta, *, eps=LN_EPS, out_dtype=MXU_DTYPE):
    """Output tile spans the full (unpadded) feature dim so the LN reduction in
    the epilogue is exact; saves one HBM round-trip of [M, D] per sub-layer."""
    w, b = p["w"], p["b"]
    M, K = x.shape
    Kp, N = w.shape
    tm_pref, _, tk_pref = _device_tiles()
    tm = _round_up(M, 8) if M <= tm_pref else tm_pref
    Mp = _round_up(M, tm)
    tk = _pick_tile_div(Kp, tk_pref)

    xp = x.astype(MXU_DTYPE)
    rp = res.astype(MXU_DTYPE)
    if (Mp, Kp) != (M, K):
        xp = jnp.pad(xp, ((0, Mp - M), (0, Kp - K)))
    if Mp != M:
        rp = jnp.pad(rp, ((0, Mp - M), (0, 0)))

    out = pl.pallas_call(
        functools.partial(_linear_ln_kernel, eps=eps),
        out_shape=jax.ShapeDtypeStruct((Mp, N), out_dtype),
        grid=(Mp // tm, Kp // tk),
        in_specs=[
            pl.BlockSpec((tm, tk), lambda i, k: (i, k)),
            pl.BlockSpec((tk, N), lambda i, k: (k, 0)),
            pl.BlockSpec((1, N), lambda i, k: (0, 0)),
            pl.BlockSpec((tm, N), lambda i, k: (i, 0)),
            pl.BlockSpec((1, N), lambda i, k: (0, 0)),
            pl.BlockSpec((1, N), lambda i, k: (0, 0)),
        ],
        out_specs=pl.BlockSpec((tm, N), lambda i, k: (i, 0)),
        scratch_shapes=[pltpu.VMEM((tm, N), jnp.float32)],
        compiler_params=pltpu.CompilerParams(
            dimension_semantics=("parallel", "arbitrary")),
    )(xp, w, b, rp, gamma, beta)
    return out[:M] if Mp != M else out


# ----------------------------------------------------------------------------
# Attention: grid=(B, Lq_tiles), bf16 q/k/v addressed directly out of the
# fused projection buffer via BlockSpec column blocks; compact [B,1,Lk]
# key-pad mask; causal mask built in-kernel; no attn-prob writeback.
# ----------------------------------------------------------------------------
def _attention_kernel(q_ref, k_ref, v_ref, m_ref, o_ref, *,
                      scale, n_heads, causal, q_tile):
    tq, D = q_ref.shape[1], q_ref.shape[2]
    Lk = k_ref.shape[1]
    dh = D // n_heads

    kmask = m_ref[0] > 0.5                               # [1, Lk]
    if causal:
        q0 = pl.program_id(1) * q_tile
        row = q0 + lax.broadcasted_iota(jnp.int32, (tq, Lk), 0)
        col = lax.broadcasted_iota(jnp.int32, (tq, Lk), 1)
        mask = jnp.logical_and(kmask, row >= col)        # [tq, Lk]
    else:
        mask = kmask                                     # broadcasts over queries

    # TODO(synk): heads still run as an unrolled loop over dh-wide lane slices;
    # a head-batched dot_general (or flash-style key tiling for long Lk) would
    # further raise MXU utilization and bound VMEM on v7x.
    for h in range(n_heads):
        lo, hi = h * dh, (h + 1) * dh
        qh = q_ref[0, :, lo:hi]                          # [tq, dh] bf16
        kh = k_ref[0, :, lo:hi]                          # [Lk, dh] bf16
        vh = v_ref[0, :, lo:hi]                          # [Lk, dh] bf16
        s = jnp.einsum("qd,kd->qk", qh, kh,
                       preferred_element_type=jnp.float32) * scale
        s = jnp.where(mask, s, -1e9)
        s = s - jnp.max(s, axis=-1, keepdims=True)
        e = jnp.exp(s)
        p = e * pl.reciprocal(jnp.sum(e, axis=-1, keepdims=True), approx=True)
        o_ref[0, :, lo:hi] = jnp.dot(
            p.astype(vh.dtype), vh,
            preferred_element_type=jnp.float32).astype(o_ref.dtype)


def pallas_attention(q_src, kv_src, key_mask, *, hidden_dim, n_heads, causal,
                     q_col, k_col, v_col, q_tile_pref=256):
    """q_src: [B, Lq, Cq*D] with Q at column block q_col; kv_src: [B, Lk, Ck*D]
    with K/V at column blocks k_col/v_col (q_src and kv_src may be the same
    fused-projection array). key_mask: [B, 1, Lk] float (1 = valid key)."""
    D, H = hidden_dim, n_heads
    assert D % H == 0, "hidden_dim must be divisible by n_heads"
    B, Lq = q_src.shape[0], q_src.shape[1]
    Lk = kv_src.shape[1]

    def addressable(arr, col):
        # A D-wide column block is a legal BlockSpec slice iff D is lane
        # aligned or the array is exactly D wide; otherwise fall back to a
        # contiguous XLA split.
        if arr.shape[-1] == D or D % 128 == 0:
            return arr, col
        c = arr.shape[-1] // D
        return arr.reshape(arr.shape[0], arr.shape[1], c, D)[:, :, col, :], 0

    q_arr, q_col = addressable(q_src, q_col)
    k_arr, k_col = addressable(kv_src, k_col)
    v_arr, v_col = addressable(kv_src, v_col)

    tq = _pick_seq_tile(Lq, q_tile_pref)
    scale = 1.0 / math.sqrt(D // H)

    return pl.pallas_call(
        functools.partial(_attention_kernel, scale=scale, n_heads=H,
                          causal=causal, q_tile=tq),
        out_shape=jax.ShapeDtypeStruct((B, Lq, D), MXU_DTYPE),
        grid=(B, Lq // tq),
        in_specs=[
            pl.BlockSpec((1, tq, D), lambda b, qi, c=q_col: (b, qi, c)),
            pl.BlockSpec((1, Lk, D), lambda b, qi, c=k_col: (b, 0, c)),
            pl.BlockSpec((1, Lk, D), lambda b, qi, c=v_col: (b, 0, c)),
            pl.BlockSpec((1, 1, Lk), lambda b, qi: (b, 0, 0)),
        ],
        out_specs=pl.BlockSpec((1, tq, D), lambda b, qi: (b, qi, 0)),
        compiler_params=pltpu.CompilerParams(
            dimension_semantics=("parallel", "parallel")),
    )(q_arr, k_arr, v_arr, key_mask)


# ----------------------------------------------------------------------------
# Model building blocks
# ----------------------------------------------------------------------------
def encoder_layer(p, src, src_kmask, n_heads, cfg):
    B, L, D = src.shape
    x2 = src.reshape(B * L, D)

    qkv = pallas_linear(x2, p["qkv"], n_out=3 * D).reshape(B, L, 3 * D)
    attn = pallas_attention(qkv, qkv, src_kmask, hidden_dim=D, n_heads=n_heads,
                            causal=False, q_col=0, k_col=1, v_col=2)
    x2 = pallas_linear_ln(attn.reshape(B * L, D), p["wo"], x2,
                          p["ln1_g"], p["ln1_b"])

    h = pallas_linear(x2, p["w1"], act="relu", n_out=cfg["pf_dim"])
    x2 = pallas_linear_ln(h, p["w2"], x2, p["ln2_g"], p["ln2_b"])
    return x2.reshape(B, L, D)


def decoder_layer(p, trg, mem_kv, src_kmask, trg_kmask, n_heads, cfg):
    B, Lt, D = trg.shape
    x2 = trg.reshape(B * Lt, D)

    # masked self-attention (attn probs intentionally not materialized)
    qkv = pallas_linear(x2, p["qkv"], n_out=3 * D).reshape(B, Lt, 3 * D)
    sa = pallas_attention(qkv, qkv, trg_kmask, hidden_dim=D, n_heads=n_heads,
                          causal=True, q_col=0, k_col=1, v_col=2)
    x2 = pallas_linear_ln(sa.reshape(B * Lt, D), p["wo_sa"], x2,
                          p["ln1_g"], p["ln1_b"])

    # cross-attention (K/V of the memory are projected once, outside the loop)
    q = pallas_linear(x2, p["q_ca"], n_out=D).reshape(B, Lt, D)
    ca = pallas_attention(q, mem_kv, src_kmask, hidden_dim=D, n_heads=n_heads,
                          causal=False, q_col=0, k_col=0, v_col=1)
    x2 = pallas_linear_ln(ca.reshape(B * Lt, D), p["wo_ca"], x2,
                          p["ln2_g"], p["ln2_b"])

    # position-wise feed-forward
    h = pallas_linear(x2, p["w1"], act="relu", n_out=cfg["pf_dim"])
    x2 = pallas_linear_ln(h, p["w2"], x2, p["ln3_g"], p["ln3_b"])
    return x2.reshape(B, Lt, D)


def embed(prep, ids, hidden_dim):
    # TODO(synk): token-embedding gather stays in XLA (data-dependent gather
    # has no cheap rectangular BlockSpec equivalent at this scale).
    L = ids.shape[1]
    tok = jnp.take(prep["tok_emb"], ids, axis=0)
    pos = prep["pos_emb"][:L][None]
    return (tok * math.sqrt(hidden_dim) + pos).astype(MXU_DTYPE)


def generator_forward(prep, src_ids, trg_ids, cfg):
    H, D, NL = cfg["n_heads"], cfg["hidden_dim"], cfg["n_layers"]
    pad = cfg["pad_idx"]

    # Compact key-pad masks ([B, 1, Lk]); the causal part of the target mask is
    # rebuilt in-kernel (no [B, H, Lq, Lk] mask tensor is materialized).
    src_kmask = (src_ids != pad).astype(jnp.float32)[:, None, :]
    trg_kmask = (trg_ids != pad).astype(jnp.float32)[:, None, :]

    src = embed(prep, src_ids, D)
    trg = embed(prep, trg_ids, D)

    enc_p, dec_p = prep["enc_layer"], prep["dec_layer"]

    # Encoder / Decoder re-apply the SAME layer n_layers times (weight sharing),
    # exactly as the reference Encoder/Decoder loops do.
    enc_out = lax.fori_loop(
        0, NL, lambda _, x: encoder_layer(enc_p, x, src_kmask, H, cfg), src)

    # Cross-attention K/V depend only on the fixed encoder memory and the
    # shared decoder weights -> project once, outside the layer loop.
    B, Ls, _ = enc_out.shape
    mem_kv = pallas_linear(enc_out.reshape(B * Ls, D), dec_p["kv_ca"],
                           n_out=2 * D).reshape(B, Ls, 2 * D)

    dec_out = lax.fori_loop(
        0, NL,
        lambda _, x: decoder_layer(dec_p, x, mem_kv, src_kmask, trg_kmask, H, cfg),
        trg)

    B, Lt, _ = dec_out.shape
    logits = pallas_linear(dec_out.reshape(B * Lt, D), prep["fc_out"],
                           out_dtype=jnp.float32, n_out=cfg["output_dim"])
    return logits.reshape(B, Lt, cfg["output_dim"])


# ----------------------------------------------------------------------------
# Parameter init (module-like) + one-time prep (fuse / pad / bf16-cast)
# ----------------------------------------------------------------------------
def init_params(key, cfg):
    D, P = cfg["hidden_dim"], cfg["pf_dim"]
    V, O = cfg["input_dim"], cfg["output_dim"]
    keys = iter(jax.random.split(key, 32))

    def w(shape, scale=0.02):
        return jax.random.normal(next(keys), shape, jnp.float32) * scale

    def attn_p():
        return {
            "wq": w((D, D)), "bq": jnp.zeros((D,), jnp.float32),
            "wk": w((D, D)), "bk": jnp.zeros((D,), jnp.float32),
            "wv": w((D, D)), "bv": jnp.zeros((D,), jnp.float32),
            "wo": w((D, D)), "bo": jnp.zeros((D,), jnp.float32),
        }

    def ffn_p():
        return {
            "w1": w((D, P)), "b1": jnp.zeros((P,), jnp.float32),
            "w2": w((P, D)), "b2": jnp.zeros((D,), jnp.float32),
        }

    ones, zeros = jnp.ones((D,), jnp.float32), jnp.zeros((D,), jnp.float32)
    return {
        "tok_emb": w((V, D), 1.0),
        "pos_emb": w((cfg["max_len"], D), 1.0),
        "enc_layer": {
            "self_attn": attn_p(), "ffn": ffn_p(),
            "ln1_g": ones, "ln1_b": zeros, "ln2_g": ones, "ln2_b": zeros,
        },
        "dec_layer": {
            "self_attn": attn_p(), "cross_attn": attn_p(), "ffn": ffn_p(),
            "ln1_g": ones, "ln1_b": zeros,
            "ln2_g": ones, "ln2_b": zeros,
            "ln3_g": ones, "ln3_b": zeros,
        },
        "fc_out_w": w((D, O)),
        "fc_out_b": jnp.zeros((O,), jnp.float32),
    }


def prepare_params(params, cfg):
    """Fuse Q/K/V (and cross-attn K/V) projection weights, pad to tile
    multiples, cast to bf16 and reshape LN/bias vectors -- once, so the
    weight-shared layer loops do no redundant HBM work."""
    def ln(v):
        return v.astype(jnp.float32).reshape(1, -1)

    def fused(ap, names):
        w = jnp.concatenate([ap["w" + n] for n in names], axis=1)
        b = jnp.concatenate([ap["b" + n] for n in names])
        return prep_linear(w, b)

    e, d = params["enc_layer"], params["dec_layer"]
    enc_a, enc_f = e["self_attn"], e["ffn"]
    dec_a, dec_c, dec_f = d["self_attn"], d["cross_attn"], d["ffn"]

    return {
        "tok_emb": params["tok_emb"],
        "pos_emb": params["pos_emb"],
        "enc_layer": {
            "qkv": fused(enc_a, "qkv"),
            "wo": prep_linear(enc_a["wo"], enc_a["bo"], full_n=True),
            "w1": prep_linear(enc_f["w1"], enc_f["b1"]),
            "w2": prep_linear(enc_f["w2"], enc_f["b2"], full_n=True),
            "ln1_g": ln(e["ln1_g"]), "ln1_b": ln(e["ln1_b"]),
            "ln2_g": ln(e["ln2_g"]), "ln2_b": ln(e["ln2_b"]),
        },
        "dec_layer": {
            "qkv": fused(dec_a, "qkv"),
            "wo_sa": prep_linear(dec_a["wo"], dec_a["bo"], full_n=True),
            "q_ca": prep_linear(dec_c["wq"], dec_c["bq"]),
            "kv_ca": fused(dec_c, "kv"),
            "wo_ca": prep_linear(dec_c["wo"], dec_c["bo"], full_n=True),
            "w1": prep_linear(dec_f["w1"], dec_f["b1"]),
            "w2": prep_linear(dec_f["w2"], dec_f["b2"], full_n=True),
            "ln1_g": ln(d["ln1_g"]), "ln1_b": ln(d["ln1_b"]),
            "ln2_g": ln(d["ln2_g"]), "ln2_b": ln(d["ln2_b"]),
            "ln3_g": ln(d["ln3_g"]), "ln3_b": ln(d["ln3_b"]),
        },
        "fc_out": prep_linear(params["fc_out_w"], params["fc_out_b"]),
    }


# ----------------------------------------------------------------------------
if __name__ == "__main__":
    cfg = dict(
        input_dim=64, output_dim=64, hidden_dim=128, pf_dim=256,
        n_heads=4, n_layers=2, max_len=32, pad_idx=1,
    )
    B, Ls, Lt = 2, 8, 8

    key = jax.random.PRNGKey(0)
    k_src, k_trg, k_par = jax.random.split(key, 3)
    src = jax.random.randint(k_src, (B, Ls), 2, cfg["input_dim"], dtype=jnp.int32)
    trg = jax.random.randint(k_trg, (B, Lt), 2, cfg["input_dim"], dtype=jnp.int32)
    # introduce some padding so the masks actually do something
    src = src.at[0, -2:].set(cfg["pad_idx"])
    trg = trg.at[1, -3:].set(cfg["pad_idx"])

    params = init_params(k_par, cfg)
    prep = prepare_params(params, cfg)   # one-time: fuse / pad / bf16 weights

    fwd = jax.jit(functools.partial(generator_forward, cfg=cfg))
    out = jax.block_until_ready(fwd(prep, src, trg))

    assert out.shape == (B, Lt, cfg["output_dim"]), out.shape
    assert jnp.all(jnp.isfinite(out))
    print("KERNEL_OK")
</pallas_src>

<mosaic_0001>
module attributes {stable_mosaic.version = 11 : i64} {
  func.func @_linear_kernel(%arg0: i32, %arg1: i32, %arg2: i32, %arg3: memref<16x128xbf16, #tpu.memory_space<vmem>>, %arg4: memref<128x128xbf16, #tpu.memory_space<vmem>>, %arg5: memref<1x128xf32, #tpu.memory_space<vmem>>, %arg6: memref<16x128xbf16, #tpu.memory_space<vmem>>, %arg7: memref<16x128xf32, #tpu.memory_space<vmem>>) attributes {dimension_semantics = [#tpu.dimension_semantics<parallel>, #tpu.dimension_semantics<parallel>, #tpu.dimension_semantics<arbitrary>], iteration_bounds = array<i64: 1, 3, 1>, scalar_prefetch = 0 : i64, scratch_operands = 1 : i64, tpu.core_type = #tpu.core_type<tc>, window_params = [{transform_indices = @transform_0, window_bounds = array<i64: 16, 128>}, {transform_indices = @transform_1, window_bounds = array<i64: 128, 128>}, {transform_indices = @transform_2, window_bounds = array<i64: 1, 128>}, {transform_indices = @transform_3, window_bounds = array<i64: 16, 128>}]} {
    %c0_i32 = arith.constant 0 : i32
    %0 = arith.cmpi eq, %arg2, %c0_i32 : i32
    %1 = arith.extui %0 : i1 to i32
    %c0_i32_0 = arith.constant 0 : i32
    %2 = arith.cmpi ne, %1, %c0_i32_0 : i32
    scf.if %2 {
      %cst_10 = arith.constant 0.000000e+00 : f32
      %12 = vector.broadcast %cst_10 : f32 to vector<16x128xf32>
      %c0_11 = arith.constant 0 : index
      %c0_12 = arith.constant 0 : index
      %13 = vector.load %arg7[%c0_11, %c0_12] : memref<16x128xf32, #tpu.memory_space<vmem>>, vector<16x128xf32>
      tpu.vector_store %arg7[%c0_11, %c0_12], %12 {strides = array<i32>} : memref<16x128xf32, #tpu.memory_space<vmem>>, vector<16x128xf32>,
    } else {
    }
    %c0 = arith.constant 0 : index
    %c0_1 = arith.constant 0 : index
    %3 = vector.load %arg7[%c0, %c0_1] : memref<16x128xf32, #tpu.memory_space<vmem>>, vector<16x128xf32>
    %c0_2 = arith.constant 0 : index
    %c0_3 = arith.constant 0 : index
    %4 = vector.load %arg3[%c0_2, %c0_3] : memref<16x128xbf16, #tpu.memory_space<vmem>>, vector<16x128xbf16>
    %c0_4 = arith.constant 0 : index
    %c0_5 = arith.constant 0 : index
    %5 = vector.load %arg4[%c0_4, %c0_5] : memref<128x128xbf16, #tpu.memory_space<vmem>>, vector<128x128xbf16>
    %cst = arith.constant dense<0.000000e+00> : vector<16x128xf32>
    %6 = tpu.matmul %4, %5, %cst {dimension_numbers = #tpu.dot_dimension_numbers<[1], [0], [0], [1], [0, 0, 1, 1], [], []>} : vector<16x128xbf16>, vector<128x128xbf16>, vector<16x128xf32> -> vector<16x128xf32>
    %7 = arith.addf %3, %6 : vector<16x128xf32>
    %c0_6 = arith.constant 0 : index
    %c0_7 = arith.constant 0 : index
    %8 = vector.load %arg7[%c0_6, %c0_7] : memref<16x128xf32, #tpu.memory_space<vmem>>, vector<16x128xf32>
    tpu.vector_store %arg7[%c0_6, %c0_7], %7 {strides = array<i32>} : memref<16x128xf32, #tpu.memory_space<vmem>>, vector<16x128xf32>,
    %c0_i32_8 = arith.constant 0 : i32
    %9 = arith.cmpi eq, %arg2, %c0_i32_8 : i32
    %10 = arith.extui %9 : i1 to i32
    %c0_i32_9 = arith.constant 0 : i32
    %11 = arith.cmpi ne, %10, %c0_i32_9 : i32
    scf.if %11 {
      %c0_10 = arith.constant 0 : index
      %c0_11 = arith.constant 0 : index
      %12 = vector.load %arg7[%c0_10, %c0_11] : memref<16x128xf32, #tpu.memory_space<vmem>>, vector<16x128xf32>
      %c0_12 = arith.constant 0 : index
      %c0_13 = arith.constant 0 : index
      %13 = vector.load %arg5[%c0_12, %c0_13] : memref<1x128xf32, #tpu.memory_space<vmem>>, vector<1x128xf32>
      %14 = vector.broadcast %13 : vector<1x128xf32> to vector<16x128xf32>
      %15 = arith.addf %12, %14 : vector<16x128xf32>
      %16 = arith.truncf %15 : vector<16x128xf32> to vector<16x128xbf16>
      %c0_14 = arith.constant 0 : index
      %c0_15 = arith.constant 0 : index
      %17 = vector.load %arg6[%c0_14, %c0_15] : memref<16x128xbf16, #tpu.memory_space<vmem>>, vector<16x128xbf16>
      tpu.vector_store %arg6[%c0_14, %c0_15], %16 {strides = array<i32>} : memref<16x128xbf16, #tpu.memory_space<vmem>>, vector<16x128xbf16>,
    } else {
    }
    return
  }
  func.func @transform_0(%arg0: i32, %arg1: i32, %arg2: i32) -> (i32, i32) {
    %c0_i32 = arith.constant 0 : i32
    return %arg0, %arg2 : i32, i32
  }
  func.func @transform_1(%arg0: i32, %arg1: i32, %arg2: i32) -> (i32, i32) {
    %c0_i32 = arith.constant 0 : i32
    return %arg2, %arg1 : i32, i32
  }
  func.func @transform_2(%arg0: i32, %arg1: i32, %arg2: i32) -> (i32, i32) {
    %c0_i32 = arith.constant 0 : i32
    %c0_i32_0 = arith.constant 0 : i32
    return %c0_i32, %arg1 : i32, i32
  }
  func.func @transform_3(%arg0: i32, %arg1: i32, %arg2: i32) -> (i32, i32) {
    %c0_i32 = arith.constant 0 : i32
    return %arg0, %arg1 : i32, i32
  }
}

module attributes {stable_mosaic.version = 11 : i64} {
  func.func @_attention_kernel(%arg0: i32, %arg1: i32, %arg2: memref<1x8x128xbf16, #tpu.memory_space<vmem>>, %arg3: memref<1x8x128xbf16, #tpu.memory_space<vmem>>, %arg4: memref<1x8x128xbf16, #tpu.memory_space<vmem>>, %arg5: memref<1x1x8xf32, #tpu.memory_space<vmem>>, %arg6: memref<1x8x128xbf16, #tpu.memory_space<vmem>>) attributes {dimension_semantics = [#tpu.dimension_semantics<parallel>, #tpu.dimension_semantics<parallel>], iteration_bounds = array<i64: 2, 1>, scalar_prefetch = 0 : i64, scratch_operands = 0 : i64, tpu.core_type = #tpu.core_type<tc>, window_params = [{transform_indices = @transform_0, window_bounds = array<i64: 1, 8, 128>}, {transform_indices = @transform_1, window_bounds = array<i64: 1, 8, 128>}, {transform_indices = @transform_2, window_bounds = array<i64: 1, 8, 128>}, {transform_indices = @transform_3, window_bounds = array<i64: 1, 1, 8>}, {transform_indices = @transform_4, window_bounds = array<i64: 1, 8, 128>}]} {
    %c0 = arith.constant 0 : index
    %c0_0 = arith.constant 0 : index
    %c0_1 = arith.constant 0 : index
    %0 = vector.load %arg5[%c0, %c0_0, %c0_1] : memref<1x1x8xf32, #tpu.memory_space<vmem>>, vector<1x1x8xf32>
    %1 = vector.shape_cast %0 : vector<1x1x8xf32> to vector<1x8xf32>
    %cst = arith.constant 5.000000e-01 : f32
    %2 = vector.broadcast %cst : f32 to vector<1x8xf32>
    %3 = arith.cmpf ogt, %1, %2 : vector<1x8xf32>
    %c0_2 = arith.constant 0 : index
    %c0_3 = arith.constant 0 : index
    %c0_4 = arith.constant 0 : index
    %4 = vector.load %arg2[%c0_2, %c0_3, %c0_4] : memref<1x8x128xbf16, #tpu.memory_space<vmem>>, vector<1x8x32xbf16>
    %5 = vector.shape_cast %4 : vector<1x8x32xbf16> to vector<8x32xbf16>
    %c0_5 = arith.constant 0 : index
    %c0_6 = arith.constant 0 : index
    %c0_7 = arith.constant 0 : index
    %6 = vector.load %arg3[%c0_5, %c0_6, %c0_7] : memref<1x8x128xbf16, #tpu.memory_space<vmem>>, vector<1x8x32xbf16>
    %7 = vector.shape_cast %6 : vector<1x8x32xbf16> to vector<8x32xbf16>
    %c0_8 = arith.constant 0 : index
    %c0_9 = arith.constant 0 : index
    %c0_10 = arith.constant 0 : index
    %8 = vector.load %arg4[%c0_8, %c0_9, %c0_10] : memref<1x8x128xbf16, #tpu.memory_space<vmem>>, vector<1x8x32xbf16>
    %9 = vector.shape_cast %8 : vector<1x8x32xbf16> to vector<8x32xbf16>
    "tpu.trace_start"() <{level = 10 : i32, message = "qd,kd->qk"}> : () -> ()
    %cst_11 = arith.constant dense<0.000000e+00> : vector<8x8xf32>
    %10 = tpu.matmul %5, %7, %cst_11 {dimension_numbers = #tpu.dot_dimension_numbers<[1], [1], [0], [0], [0, 0, 1, 0], [], []>} : vector<8x32xbf16>, vector<8x32xbf16>, vector<8x8xf32> -> vector<8x8xf32>
    "tpu.trace_stop"() : () -> ()
    %cst_12 = arith.constant 0.176776692 : f32
    %11 = vector.broadcast %cst_12 : f32 to vector<8x8xf32>
    %12 = arith.mulf %10, %11 : vector<8x8xf32>
    %cst_13 = arith.constant -1.000000e+09 : f32
    %13 = vector.shape_cast %3 : vector<1x8xi1> to vector<1x8xi1>
    %14 = vector.broadcast %13 : vector<1x8xi1> to vector<8x8xi1>
    %15 = vector.broadcast %cst_13 : f32 to vector<8x8xf32>
    %16 = arith.select %14, %12, %15 : vector<8x8xi1>, vector<8x8xf32>
    %cst_14 = arith.constant dense<0xFF800000> : vector<8xf32>
    %17 = vector.multi_reduction <maximumf>, %16, %cst_14 [1] : vector<8x8xf32> to vector<8xf32>
    %18 = vector.shape_cast %17 : vector<8xf32> to vector<8x1xf32>
    %19 = vector.broadcast %18 : vector<8x1xf32> to vector<8x8xf32>
    %20 = arith.subf %16, %19 : vector<8x8xf32>
    %21 = math.exp %20 : vector<8x8xf32>
    %cst_15 = arith.constant dense<0.000000e+00> : vector<8xf32>
    %22 = vector.multi_reduction <add>, %21, %cst_15 [1] : vector<8x8xf32> to vector<8xf32>
    %23 = vector.shape_cast %22 : vector<8xf32> to vector<8x1xf32>
    %24 = tpu.reciprocal %23 {approx = true} : vector<8x1xf32> -> vector<8x1xf32>
    %25 = vector.broadcast %24 : vector<8x1xf32> to vector<8x8xf32>
    %26 = arith.mulf %21, %25 : vector<8x8xf32>
    %27 = arith.truncf %26 : vector<8x8xf32> to vector<8x8xbf16>
    %cst_16 = arith.constant dense<0.000000e+00> : vector<8x32xf32>
    %28 = tpu.matmul %27, %9, %cst_16 {dimension_numbers = #tpu.dot_dimension_numbers<[1], [0], [0], [1], [0, 0, 1, 1], [], []>} : vector<8x8xbf16>, vector<8x32xbf16>, vector<8x32xf32> -> vector<8x32xf32>
    %29 = arith.truncf %28 : vector<8x32xf32> to vector<8x32xbf16>
    %c0_17 = arith.constant 0 : index
    %c0_18 = arith.constant 0 : index
    %c0_19 = arith.constant 0 : index
    %30 = vector.load %arg6[%c0_17, %c0_18, %c0_19] : memref<1x8x128xbf16, #tpu.memory_space<vmem>>, vector<1x8x32xbf16>
    %31 = vector.shape_cast %30 : vector<1x8x32xbf16> to vector<8x32xbf16>
    %32 = vector.shape_cast %29 : vector<8x32xbf16> to vector<1x8x32xbf16>
    tpu.vector_store %arg6[%c0_17, %c0_18, %c0_19], %32 {strides = array<i32>} : memref<1x8x128xbf16, #tpu.memory_space<vmem>>, vector<1x8x32xbf16>,
    %c0_20 = arith.constant 0 : index
    %c0_21 = arith.constant 0 : index
    %c32 = arith.constant 32 : index
    %33 = vector.load %arg2[%c0_20, %c0_21, %c32] : memref<1x8x128xbf16, #tpu.memory_space<vmem>>, vector<1x8x32xbf16>
    %34 = vector.shape_cast %33 : vector<1x8x32xbf16> to vector<8x32xbf16>
    %c0_22 = arith.constant 0 : index
    %c0_23 = arith.constant 0 : index
    %c32_24 = arith.constant 32 : index
    %35 = vector.load %arg3[%c0_22, %c0_23, %c32_24] : memref<1x8x128xbf16, #tpu.memory_space<vmem>>, vector<1x8x32xbf16>
    %36 = vector.shape_cast %35 : vector<1x8x32xbf16> to vector<8x32xbf16>
    %c0_25 = arith.constant 0 : index
    %c0_26 = arith.constant 0 : index
    %c32_27 = arith.constant 32 : index
    %37 = vector.load %arg4[%c0_25, %c0_26, %c32_27] : memref<1x8x128xbf16, #tpu.memory_space<vmem>>, vector<1x8x32xbf16>
    %38 = vector.shape_cast %37 : vector<1x8x32xbf16> to vector<8x32xbf16>
    "tpu.trace_start"() <{level = 10 : i32, message = "qd,kd->qk"}> : () -> ()
    %cst_28 = arith.constant dense<0.000000e+00> : vector<8x8xf32>
    %39 = tpu.matmul %34, %36, %cst_28 {dimension_numbers = #tpu.dot_dimension_numbers<[1], [1], [0], [0], [0, 0, 1, 0], [], []>} : vector<8x32xbf16>, vector<8x32xbf16>, vector<8x8xf32> -> vector<8x8xf32>
    "tpu.trace_stop"() : () -> ()
    %cst_29 = arith.constant 0.176776692 : f32
    %40 = vector.broadcast %cst_29 : f32 to vector<8x8xf32>
    %41 = arith.mulf %39, %40 : vector<8x8xf32>
    %cst_30 = arith.constant -1.000000e+09 : f32
    %42 = vector.shape_cast %3 : vector<1x8xi1> to vector<1x8xi1>
    %43 = vector.broadcast %42 : vector<1x8xi1> to vector<8x8xi1>
    %44 = vector.broadcast %cst_30 : f32 to vector<8x8xf32>
    %45 = arith.select %43, %41, %44 : vector<8x8xi1>, vector<8x8xf32>
    %cst_31 = arith.constant dense<0xFF800000> : vector<8xf32>
    %46 = vector.multi_reduction <maximumf>, %45, %cst_31 [1] : vector<8x8xf32> to vector<8xf32>
    %47 = vector.shape_cast %46 : vector<8xf32> to vector<8x1xf32>
    %48 = vector.broadcast %47 : vector<8x1xf32> to vector<8x8xf32>
    %49 = arith.subf %45, %48 : vector<8x8xf32>
    %50 = math.exp %49 : vector<8x8xf32>
    %cst_32 = arith.constant dense<0.000000e+00> : vector<8xf32>
    %51 = vector.multi_reduction <add>, %50, %cst_32 [1] : vector<8x8xf32> to vector<8xf32>
    %52 = vector.shape_cast %51 : vector<8xf32> to vector<8x1xf32>
    %53 = tpu.reciprocal %52 {approx = true} : vector<8x1xf32> -> vector<8x1xf32>
    %54 = vector.broadcast %53 : vector<8x1xf32> to vector<8x8xf32>
    %55 = arith.mulf %50, %54 : vector<8x8xf32>
    %56 = arith.truncf %55 : vector<8x8xf32> to vector<8x8xbf16>
    %cst_33 = arith.constant dense<0.000000e+00> : vector<8x32xf32>
    %57 = tpu.matmul %56, %38, %cst_33 {dimension_numbers = #tpu.dot_dimension_numbers<[1], [0], [0], [1], [0, 0, 1, 1], [], []>} : vector<8x8xbf16>, vector<8x32xbf16>, vector<8x32xf32> -> vector<8x32xf32>
    %58 = arith.truncf %57 : vector<8x32xf32> to vector<8x32xbf16>
    %c0_34 = arith.constant 0 : index
    %c0_35 = arith.constant 0 : index
    %c32_36 = arith.constant 32 : index
    %59 = vector.load %arg6[%c0_34, %c0_35, %c32_36] : memref<1x8x128xbf16, #tpu.memory_space<vmem>>, vector<1x8x32xbf16>
    %60 = vector.shape_cast %59 : vector<1x8x32xbf16> to vector<8x32xbf16>
    %61 = vector.shape_cast %58 : vector<8x32xbf16> to vector<1x8x32xbf16>
    tpu.vector_store %arg6[%c0_34, %c0_35, %c32_36], %61 {strides = array<i32>} : memref<1x8x128xbf16, #tpu.memory_space<vmem>>, vector<1x8x32xbf16>,
    %c0_37 = arith.constant 0 : index
    %c0_38 = arith.constant 0 : index
    %c64 = arith.constant 64 : index
    %62 = vector.load %arg2[%c0_37, %c0_38, %c64] : memref<1x8x128xbf16, #tpu.memory_space<vmem>>, vector<1x8x32xbf16>
    %63 = vector.shape_cast %62 : vector<1x8x32xbf16> to vector<8x32xbf16>
    %c0_39 = arith.constant 0 : index
    %c0_40 = arith.constant 0 : index
    %c64_41 = arith.constant 64 : index
    %64 = vector.load %arg3[%c0_39, %c0_40, %c64_41] : memref<1x8x128xbf16, #tpu.memory_space<vmem>>, vector<1x8x32xbf16>
    %65 = vector.shape_cast %64 : vector<1x8x32xbf16> to vector<8x32xbf16>
    %c0_42 = arith.constant 0 : index
    %c0_43 = arith.constant 0 : index
    %c64_44 = arith.constant 64 : index
    %66 = vector.load %arg4[%c0_42, %c0_43, %c64_44] : memref<1x8x128xbf16, #tpu.memory_space<vmem>>, vector<1x8x32xbf16>
    %67 = vector.shape_cast %66 : vector<1x8x32xbf16> to vector<8x32xbf16>
    "tpu.trace_start"() <{level = 10 : i32, message = "qd,kd->qk"}> : () -> ()
    %cst_45 = arith.constant dense<0.000000e+00> : vector<8x8xf32>
    %68 = tpu.matmul %63, %65, %cst_45 {dimension_numbers = #tpu.dot_dimension_numbers<[1], [1], [0], [0], [0, 0, 1, 0], [], []>} : vector<8x32xbf16>, vector<8x32xbf16>, vector<8x8xf32> -> vector<8x8xf32>
    "tpu.trace_stop"() : () -> ()
    %cst_46 = arith.constant 0.176776692 : f32
    %69 = vector.broadcast %cst_46 : f32 to vector<8x8xf32>
    %70 = arith.mulf %68, %69 : vector<8x8xf32>
    %cst_47 = arith.constant -1.000000e+09 : f32
    %71 = vector.shape_cast %3 : vector<1x8xi1> to vector<1x8xi1>
    %72 = vector.broadcast %71 : vector<1x8xi1> to vector<8x8xi1>
    %73 = vector.broadcast %cst_47 : f32 to vector<8x8xf32>
    %74 = arith.select %72, %70, %73 : vector<8x8xi1>, vector<8x8xf32>
    %cst_48 = arith.constant dense<0xFF800000> : vector<8xf32>
    %75 = vector.multi_reduction <maximumf>, %74, %cst_48 [1] : vector<8x8xf32> to vector<8xf32>
    %76 = vector.shape_cast %75 : vector<8xf32> to vector<8x1xf32>
    %77 = vector.broadcast %76 : vector<8x1xf32> to vector<8x8xf32>
    %78 = arith.subf %74, %77 : vector<8x8xf32>
    %79 = math.exp %78 : vector<8x8xf32>
    %cst_49 = arith.constant dense<0.000000e+00> : vector<8xf32>
    %80 = vector.multi_reduction <add>, %79, %cst_49 [1] : vector<8x8xf32> to vector<8xf32>
    %81 = vector.shape_cast %80 : vector<8xf32> to vector<8x1xf32>
    %82 = tpu.reciprocal %81 {approx = true} : vector<8x1xf32> -> vector<8x1xf32>
    %83 = vector.broadcast %82 : vector<8x1xf32> to vector<8x8xf32>
    %84 = arith.mulf %79, %83 : vector<8x8xf32>
    %85 = arith.truncf %84 : vector<8x8xf32> to vector<8x8xbf16>
    %cst_50 = arith.constant dense<0.000000e+00> : vector<8x32xf32>
    %86 = tpu.matmul %85, %67, %cst_50 {dimension_numbers = #tpu.dot_dimension_numbers<[1], [0], [0], [1], [0, 0, 1, 1], [], []>} : vector<8x8xbf16>, vector<8x32xbf16>, vector<8x32xf32> -> vector<8x32xf32>
    %87 = arith.truncf %86 : vector<8x32xf32> to vector<8x32xbf16>
    %c0_51 = arith.constant 0 : index
    %c0_52 = arith.constant 0 : index
    %c64_53 = arith.constant 64 : index
    %88 = vector.load %arg6[%c0_51, %c0_52, %c64_53] : memref<1x8x128xbf16, #tpu.memory_space<vmem>>, vector<1x8x32xbf16>
    %89 = vector.shape_cast %88 : vector<1x8x32xbf16> to vector<8x32xbf16>
    %90 = vector.shape_cast %87 : vector<8x32xbf16> to vector<1x8x32xbf16>
    tpu.vector_store %arg6[%c0_51, %c0_52, %c64_53], %90 {strides = array<i32>} : memref<1x8x128xbf16, #tpu.memory_space<vmem>>, vector<1x8x32xbf16>,
    %c0_54 = arith.constant 0 : index
    %c0_55 = arith.constant 0 : index
    %c96 = arith.constant 96 : index
    %91 = vector.load %arg2[%c0_54, %c0_55, %c96] : memref<1x8x128xbf16, #tpu.memory_space<vmem>>, vector<1x8x32xbf16>
    %92 = vector.shape_cast %91 : vector<1x8x32xbf16> to vector<8x32xbf16>
    %c0_56 = arith.constant 0 : index
    %c0_57 = arith.constant 0 : index
    %c96_58 = arith.constant 96 : index
    %93 = vector.load %arg3[%c0_56, %c0_57, %c96_58] : memref<1x8x128xbf16, #tpu.memory_space<vmem>>, vector<1x8x32xbf16>
    %94 = vector.shape_cast %93 : vector<1x8x32xbf16> to vector<8x32xbf16>
    %c0_59 = arith.constant 0 : index
    %c0_60 = arith.constant 0 : index
    %c96_61 = arith.constant 96 : index
    %95 = vector.load %arg4[%c0_59, %c0_60, %c96_61] : memref<1x8x128xbf16, #tpu.memory_space<vmem>>, vector<1x8x32xbf16>
    %96 = vector.shape_cast %95 : vector<1x8x32xbf16> to vector<8x32xbf16>
    "tpu.trace_start"() <{level = 10 : i32, message = "qd,kd->qk"}> : () -> ()
    %cst_62 = arith.constant dense<0.000000e+00> : vector<8x8xf32>
    %97 = tpu.matmul %92, %94, %cst_62 {dimension_numbers = #tpu.dot_dimension_numbers<[1], [1], [0], [0], [0, 0, 1, 0], [], []>} : vector<8x32xbf16>, vector<8x32xbf16>, vector<8x8xf32> -> vector<8x8xf32>
    "tpu.trace_stop"() : () -> ()
    %cst_63 = arith.constant 0.176776692 : f32
    %98 = vector.broadcast %cst_63 : f32 to vector<8x8xf32>
    %99 = arith.mulf %97, %98 : vector<8x8xf32>
    %cst_64 = arith.constant -1.000000e+09 : f32
    %100 = vector.shape_cast %3 : vector<1x8xi1> to vector<1x8xi1>
    %101 = vector.broadcast %100 : vector<1x8xi1> to vector<8x8xi1>
    %102 = vector.broadcast %cst_64 : f32 to vector<8x8xf32>
    %103 = arith.select %101, %99, %102 : vector<8x8xi1>, vector<8x8xf32>
    %cst_65 = arith.constant dense<0xFF800000> : vector<8xf32>
    %104 = vector.multi_reduction <maximumf>, %103, %cst_65 [1] : vector<8x8xf32> to vector<8xf32>
    %105 = vector.shape_cast %104 : vector<8xf32> to vector<8x1xf32>
    %106 = vector.broadcast %105 : vector<8x1xf32> to vector<8x8xf32>
    %107 = arith.subf %103, %106 : vector<8x8xf32>
    %108 = math.exp %107 : vector<8x8xf32>
    %cst_66 = arith.constant dense<0.000000e+00> : vector<8xf32>
    %109 = vector.multi_reduction <add>, %108, %cst_66 [1] : vector<8x8xf32> to vector<8xf32>
    %110 = vector.shape_cast %109 : vector<8xf32> to vector<8x1xf32>
    %111 = tpu.reciprocal %110 {approx = true} : vector<8x1xf32> -> vector<8x1xf32>
    %112 = vector.broadcast %111 : vector<8x1xf32> to vector<8x8xf32>
    %113 = arith.mulf %108, %112 : vector<8x8xf32>
    %114 = arith.truncf %113 : vector<8x8xf32> to vector<8x8xbf16>
    %cst_67 = arith.constant dense<0.000000e+00> : vector<8x32xf32>
    %115 = tpu.matmul %114, %96, %cst_67 {dimension_numbers = #tpu.dot_dimension_numbers<[1], [0], [0], [1], [0, 0, 1, 1], [], []>} : vector<8x8xbf16>, vector<8x32xbf16>, vector<8x32xf32> -> vector<8x32xf32>
    %116 = arith.truncf %115 : vector<8x32xf32> to vector<8x32xbf16>
    %c0_68 = arith.constant 0 : index
    %c0_69 = arith.constant 0 : index
    %c96_70 = arith.constant 96 : index
    %117 = vector.load %arg6[%c0_68, %c0_69, %c96_70] : memref<1x8x128xbf16, #tpu.memory_space<vmem>>, vector<1x8x32xbf16>
    %118 = vector.shape_cast %117 : vector<1x8x32xbf16> to vector<8x32xbf16>
    %119 = vector.shape_cast %116 : vector<8x32xbf16> to vector<1x8x32xbf16>
    tpu.vector_store %arg6[%c0_68, %c0_69, %c96_70], %119 {strides = array<i32>} : memref<1x8x128xbf16, #tpu.memory_space<vmem>>, vector<1x8x32xbf16>,
    return
  }
  func.func @transform_0(%arg0: i32, %arg1: i32) -> (i32, i32, i32) {
    %c0_i32 = arith.constant 0 : i32
    %c0_i32_0 = arith.constant 0 : i32
    return %arg0, %arg1, %c0_i32 : i32, i32, i32
  }
  func.func @transform_1(%arg0: i32, %arg1: i32) -> (i32, i32, i32) {
    %c0_i32 = arith.constant 0 : i32
    %c1_i32 = arith.constant 1 : i32
    %c0_i32_0 = arith.constant 0 : i32
    return %arg0, %c0_i32, %c1_i32 : i32, i32, i32
  }
  func.func @transform_2(%arg0: i32, %arg1: i32) -> (i32, i32, i32) {
    %c0_i32 = arith.constant 0 : i32
    %c2_i32 = arith.constant 2 : i32
    %c0_i32_0 = arith.constant 0 : i32
    return %arg0, %c0_i32, %c2_i32 : i32, i32, i32
  }
  func.func @transform_3(%arg0: i32, %arg1: i32) -> (i32, i32, i32) {
    %c0_i32 = arith.constant 0 : i32
    %c0_i32_0 = arith.constant 0 : i32
    %c0_i32_1 = arith.constant 0 : i32
    return %arg0, %c0_i32, %c0_i32_0 : i32, i32, i32
  }
  func.func @transform_4(%arg0: i32, %arg1: i32) -> (i32, i32, i32) {
    %c0_i32 = arith.constant 0 : i32
    %c0_i32_0 = arith.constant 0 : i32
    return %arg0, %arg1, %c0_i32 : i32, i32, i32
  }
}

module attributes {stable_mosaic.version = 11 : i64} {
  func.func @_linear_ln_kernel(%arg0: i32, %arg1: i32, %arg2: memref<16x128xbf16, #tpu.memory_space<vmem>>, %arg3: memref<128x128xbf16, #tpu.memory_space<vmem>>, %arg4: memref<1x128xf32, #tpu.memory_space<vmem>>, %arg5: memref<16x128xbf16, #tpu.memory_space<vmem>>, %arg6: memref<1x128xf32, #tpu.memory_space<vmem>>, %arg7: memref<1x128xf32, #tpu.memory_space<vmem>>, %arg8: memref<16x128xbf16, #tpu.memory_space<vmem>>, %arg9: memref<16x128xf32, #tpu.memory_space<vmem>>) attributes {dimension_semantics = [#tpu.dimension_semantics<parallel>, #tpu.dimension_semantics<arbitrary>], iteration_bounds = array<i64: 1, 1>, scalar_prefetch = 0 : i64, scratch_operands = 1 : i64, tpu.core_type = #tpu.core_type<tc>, window_params = [{transform_indices = @transform_0, window_bounds = array<i64: 16, 128>}, {transform_indices = @transform_1, window_bounds = array<i64: 128, 128>}, {pipeline_mode = #tpu.pipeline_mode<synchronous>, transform_indices = @transform_2, window_bounds = array<i64: 1, 128>}, {transform_indices = @transform_3, window_bounds = array<i64: 16, 128>}, {pipeline_mode = #tpu.pipeline_mode<synchronous>, transform_indices = @transform_4, window_bounds = array<i64: 1, 128>}, {pipeline_mode = #tpu.pipeline_mode<synchronous>, transform_indices = @transform_5, window_bounds = array<i64: 1, 128>}, {transform_indices = @transform_6, window_bounds = array<i64: 16, 128>}]} {
    %c0_i32 = arith.constant 0 : i32
    %0 = arith.cmpi eq, %arg1, %c0_i32 : i32
    %1 = arith.extui %0 : i1 to i32
    %c0_i32_0 = arith.constant 0 : i32
    %2 = arith.cmpi ne, %1, %c0_i32_0 : i32
    scf.if %2 {
      %cst_10 = arith.constant 0.000000e+00 : f32
      %12 = vector.broadcast %cst_10 : f32 to vector<16x128xf32>
      %c0_11 = arith.constant 0 : index
      %c0_12 = arith.constant 0 : index
      %13 = vector.load %arg9[%c0_11, %c0_12] : memref<16x128xf32, #tpu.memory_space<vmem>>, vector<16x128xf32>
      tpu.vector_store %arg9[%c0_11, %c0_12], %12 {strides = array<i32>} : memref<16x128xf32, #tpu.memory_space<vmem>>, vector<16x128xf32>,
    } else {
    }
    %c0 = arith.constant 0 : index
    %c0_1 = arith.constant 0 : index
    %3 = vector.load %arg9[%c0, %c0_1] : memref<16x128xf32, #tpu.memory_space<vmem>>, vector<16x128xf32>
    %c0_2 = arith.constant 0 : index
    %c0_3 = arith.constant 0 : index
    %4 = vector.load %arg2[%c0_2, %c0_3] : memref<16x128xbf16, #tpu.memory_space<vmem>>, vector<16x128xbf16>
    %c0_4 = arith.constant 0 : index
    %c0_5 = arith.constant 0 : index
    %5 = vector.load %arg3[%c0_4, %c0_5] : memref<128x128xbf16, #tpu.memory_space<vmem>>, vector<128x128xbf16>
    %cst = arith.constant dense<0.000000e+00> : vector<16x128xf32>
    %6 = tpu.matmul %4, %5, %cst {dimension_numbers = #tpu.dot_dimension_numbers<[1], [0], [0], [1], [0, 0, 1, 1], [], []>} : vector<16x128xbf16>, vector<128x128xbf16>, vector<16x128xf32> -> vector<16x128xf32>
    %7 = arith.addf %3, %6 : vector<16x128xf32>
    %c0_6 = arith.constant 0 : index
    %c0_7 = arith.constant 0 : index
    %8 = vector.load %arg9[%c0_6, %c0_7] : memref<16x128xf32, #tpu.memory_space<vmem>>, vector<16x128xf32>
    tpu.vector_store %arg9[%c0_6, %c0_7], %7 {strides = array<i32>} : memref<16x128xf32, #tpu.memory_space<vmem>>, vector<16x128xf32>,
    %c0_i32_8 = arith.constant 0 : i32
    %9 = arith.cmpi eq, %arg1, %c0_i32_8 : i32
    %10 = arith.extui %9 : i1 to i32
    %c0_i32_9 = arith.constant 0 : i32
    %11 = arith.cmpi ne, %10, %c0_i32_9 : i32
    scf.if %11 {
      %c0_10 = arith.constant 0 : index
      %c0_11 = arith.constant 0 : index
      %12 = vector.load %arg9[%c0_10, %c0_11] : memref<16x128xf32, #tpu.memory_space<vmem>>, vector<16x128xf32>
      %c0_12 = arith.constant 0 : index
      %c0_13 = arith.constant 0 : index
      %13 = vector.load %arg4[%c0_12, %c0_13] : memref<1x128xf32, #tpu.memory_space<vmem>>, vector<1x128xf32>
      %14 = vector.broadcast %13 : vector<1x128xf32> to vector<16x128xf32>
      %15 = arith.addf %12, %14 : vector<16x128xf32>
      %c0_14 = arith.constant 0 : index
      %c0_15 = arith.constant 0 : index
      %16 = vector.load %arg5[%c0_14, %c0_15] : memref<16x128xbf16, #tpu.memory_space<vmem>>, vector<16x128xbf16>
      %17 = arith.extf %16 : vector<16x128xbf16> to vector<16x128xf32>
      %18 = arith.addf %15, %17 : vector<16x128xf32>
      %cst_16 = arith.constant dense<0.000000e+00> : vector<16xf32>
      %19 = vector.multi_reduction <add>, %18, %cst_16 [1] : vector<16x128xf32> to vector<16xf32>
      %20 = vector.shape_cast %19 : vector<16xf32> to vector<16x1xf32>
      %cst_17 = arith.constant 1.280000e+02 : f32
      %21 = vector.broadcast %cst_17 : f32 to vector<16x1xf32>
      %22 = arith.divf %20, %21 : vector<16x1xf32>
      %23 = vector.broadcast %22 : vector<16x1xf32> to vector<16x128xf32>
      %24 = arith.subf %18, %23 : vector<16x128xf32>
      %25 = arith.mulf %24, %24 : vector<16x128xf32>
      %cst_18 = arith.constant dense<0.000000e+00> : vector<16xf32>
      %26 = vector.multi_reduction <add>, %25, %cst_18 [1] : vector<16x128xf32> to vector<16xf32>
      %27 = vector.shape_cast %26 : vector<16xf32> to vector<16x1xf32>
      %cst_19 = arith.constant 1.280000e+02 : f32
      %28 = vector.broadcast %cst_19 : f32 to vector<16x1xf32>
      %29 = arith.divf %27, %28 : vector<16x1xf32>
      %30 = vector.broadcast %22 : vector<16x1xf32> to vector<16x128xf32>
      %31 = arith.subf %18, %30 : vector<16x128xf32>
      %cst_20 = arith.constant 9.99999974E-6 : f32
      %32 = vector.broadcast %cst_20 : f32 to vector<16x1xf32>
      %33 = arith.addf %29, %32 : vector<16x1xf32>
      %34 = math.rsqrt %33 : vector<16x1xf32>
      %35 = vector.broadcast %34 : vector<16x1xf32> to vector<16x128xf32>
      %36 = arith.mulf %31, %35 : vector<16x128xf32>
      %c0_21 = arith.constant 0 : index
      %c0_22 = arith.constant 0 : index
      %37 = vector.load %arg6[%c0_21, %c0_22] : memref<1x128xf32, #tpu.memory_space<vmem>>, vector<1x128xf32>
      %38 = vector.broadcast %37 : vector<1x128xf32> to vector<16x128xf32>
      %39 = arith.mulf %36, %38 : vector<16x128xf32>
      %c0_23 = arith.constant 0 : index
      %c0_24 = arith.constant 0 : index
      %40 = vector.load %arg7[%c0_23, %c0_24] : memref<1x128xf32, #tpu.memory_space<vmem>>, vector<1x128xf32>
      %41 = vector.broadcast %40 : vector<1x128xf32> to vector<16x128xf32>
      %42 = arith.addf %39, %41 : vector<16x128xf32>
      %43 = arith.truncf %42 : vector<16x128xf32> to vector<16x128xbf16>
      %c0_25 = arith.constant 0 : index
      %c0_26 = arith.constant 0 : index
      %44 = vector.load %arg8[%c0_25, %c0_26] : memref<16x128xbf16, #tpu.memory_space<vmem>>, vector<16x128xbf16>
      tpu.vector_store %arg8[%c0_25, %c0_26], %43 {strides = array<i32>} : memref<16x128xbf16, #tpu.memory_space<vmem>>, vector<16x128xbf16>,
    } else {
    }
    return
  }
  func.func @transform_0(%arg0: i32, %arg1: i32) -> (i32, i32) {
    %c0_i32 = arith.constant 0 : i32
    return %arg0, %arg1 : i32, i32
  }
  func.func @transform_1(%arg0: i32, %arg1: i32) -> (i32, i32) {
    %c0_i32 = arith.constant 0 : i32
    %c0_i32_0 = arith.constant 0 : i32
    return %arg1, %c0_i32 : i32, i32
  }
  func.func @transform_2(%arg0: i32, %arg1: i32) -> (i32, i32) {
    %c0_i32 = arith.constant 0 : i32
    %c0_i32_0 = arith.constant 0 : i32
    %c0_i32_1 = arith.constant 0 : i32
    return %c0_i32, %c0_i32_0 : i32, i32
  }
  func.func @transform_3(%arg0: i32, %arg1: i32) -> (i32, i32) {
    %c0_i32 = arith.constant 0 : i32
    %c0_i32_0 = arith.constant 0 : i32
    return %arg0, %c0_i32 : i32, i32
  }
  func.func @transform_4(%arg0: i32, %arg1: i32) -> (i32, i32) {
    %c0_i32 = arith.constant 0 : i32
    %c0_i32_0 = arith.constant 0 : i32
    %c0_i32_1 = arith.constant 0 : i32
    return %c0_i32, %c0_i32_0 : i32, i32
  }
  func.func @transform_5(%arg0: i32, %arg1: i32) -> (i32, i32) {
    %c0_i32 = arith.constant 0 : i32
    %c0_i32_0 = arith.constant 0 : i32
    %c0_i32_1 = arith.constant 0 : i32
    return %c0_i32, %c0_i32_0 : i32, i32
  }
  func.func @transform_6(%arg0: i32, %arg1: i32) -> (i32, i32) {
    %c0_i32 = arith.constant 0 : i32
    %c0_i32_0 = arith.constant 0 : i32
    return %arg0, %c0_i32 : i32, i32
  }
}

module attributes {stable_mosaic.version = 11 : i64} {
  func.func @_linear_kernel(%arg0: i32, %arg1: i32, %arg2: i32, %arg3: memref<16x128xbf16, #tpu.memory_space<vmem>>, %arg4: memref<128x128xbf16, #tpu.memory_space<vmem>>, %arg5: memref<1x128xf32, #tpu.memory_space<vmem>>, %arg6: memref<16x128xbf16, #tpu.memory_space<vmem>>, %arg7: memref<16x128xf32, #tpu.memory_space<vmem>>) attributes {dimension_semantics = [#tpu.dimension_semantics<parallel>, #tpu.dimension_semantics<parallel>, #tpu.dimension_semantics<arbitrary>], iteration_bounds = array<i64: 1, 2, 1>, scalar_prefetch = 0 : i64, scratch_operands = 1 : i64, tpu.core_type = #tpu.core_type<tc>, window_params = [{transform_indices = @transform_0, window_bounds = array<i64: 16, 128>}, {transform_indices = @transform_1, window_bounds = array<i64: 128, 128>}, {transform_indices = @transform_2, window_bounds = array<i64: 1, 128>}, {transform_indices = @transform_3, window_bounds = array<i64: 16, 128>}]} {
    %c0_i32 = arith.constant 0 : i32
    %0 = arith.cmpi eq, %arg2, %c0_i32 : i32
    %1 = arith.extui %0 : i1 to i32
    %c0_i32_0 = arith.constant 0 : i32
    %2 = arith.cmpi ne, %1, %c0_i32_0 : i32
    scf.if %2 {
      %cst_10 = arith.constant 0.000000e+00 : f32
      %12 = vector.broadcast %cst_10 : f32 to vector<16x128xf32>
      %c0_11 = arith.constant 0 : index
      %c0_12 = arith.constant 0 : index
      %13 = vector.load %arg7[%c0_11, %c0_12] : memref<16x128xf32, #tpu.memory_space<vmem>>, vector<16x128xf32>
      tpu.vector_store %arg7[%c0_11, %c0_12], %12 {strides = array<i32>} : memref<16x128xf32, #tpu.memory_space<vmem>>, vector<16x128xf32>,
    } else {
    }
    %c0 = arith.constant 0 : index
    %c0_1 = arith.constant 0 : index
    %3 = vector.load %arg7[%c0, %c0_1] : memref<16x128xf32, #tpu.memory_space<vmem>>, vector<16x128xf32>
    %c0_2 = arith.constant 0 : index
    %c0_3 = arith.constant 0 : index
    %4 = vector.load %arg3[%c0_2, %c0_3] : memref<16x128xbf16, #tpu.memory_space<vmem>>, vector<16x128xbf16>
    %c0_4 = arith.constant 0 : index
    %c0_5 = arith.constant 0 : index
    %5 = vector.load %arg4[%c0_4, %c0_5] : memref<128x128xbf16, #tpu.memory_space<vmem>>, vector<128x128xbf16>
    %cst = arith.constant dense<0.000000e+00> : vector<16x128xf32>
    %6 = tpu.matmul %4, %5, %cst {dimension_numbers = #tpu.dot_dimension_numbers<[1], [0], [0], [1], [0, 0, 1, 1], [], []>} : vector<16x128xbf16>, vector<128x128xbf16>, vector<16x128xf32> -> vector<16x128xf32>
    %7 = arith.addf %3, %6 : vector<16x128xf32>
    %c0_6 = arith.constant 0 : index
    %c0_7 = arith.constant 0 : index
    %8 = vector.load %arg7[%c0_6, %c0_7] : memref<16x128xf32, #tpu.memory_space<vmem>>, vector<16x128xf32>
    tpu.vector_store %arg7[%c0_6, %c0_7], %7 {strides = array<i32>} : memref<16x128xf32, #tpu.memory_space<vmem>>, vector<16x128xf32>,
    %c0_i32_8 = arith.constant 0 : i32
    %9 = arith.cmpi eq, %arg2, %c0_i32_8 : i32
    %10 = arith.extui %9 : i1 to i32
    %c0_i32_9 = arith.constant 0 : i32
    %11 = arith.cmpi ne, %10, %c0_i32_9 : i32
    scf.if %11 {
      %c0_10 = arith.constant 0 : index
      %c0_11 = arith.constant 0 : index
      %12 = vector.load %arg7[%c0_10, %c0_11] : memref<16x128xf32, #tpu.memory_space<vmem>>, vector<16x128xf32>
      %c0_12 = arith.constant 0 : index
      %c0_13 = arith.constant 0 : index
      %13 = vector.load %arg5[%c0_12, %c0_13] : memref<1x128xf32, #tpu.memory_space<vmem>>, vector<1x128xf32>
      %14 = vector.broadcast %13 : vector<1x128xf32> to vector<16x128xf32>
      %15 = arith.addf %12, %14 : vector<16x128xf32>
      %cst_14 = arith.constant 0.000000e+00 : f32
      %16 = vector.broadcast %cst_14 : f32 to vector<16x128xf32>
      %17 = arith.maximumf %15, %16 : vector<16x128xf32>
      %18 = arith.truncf %17 : vector<16x128xf32> to vector<16x128xbf16>
      %c0_15 = arith.constant 0 : index
      %c0_16 = arith.constant 0 : index
      %19 = vector.load %arg6[%c0_15, %c0_16] : memref<16x128xbf16, #tpu.memory_space<vmem>>, vector<16x128xbf16>
      tpu.vector_store %arg6[%c0_15, %c0_16], %18 {strides = array<i32>} : memref<16x128xbf16, #tpu.memory_space<vmem>>, vector<16x128xbf16>,
    } else {
    }
    return
  }
  func.func @transform_0(%arg0: i32, %arg1: i32, %arg2: i32) -> (i32, i32) {
    %c0_i32 = arith.constant 0 : i32
    return %arg0, %arg2 : i32, i32
  }
  func.func @transform_1(%arg0: i32, %arg1: i32, %arg2: i32) -> (i32, i32) {
    %c0_i32 = arith.constant 0 : i32
    return %arg2, %arg1 : i32, i32
  }
  func.func @transform_2(%arg0: i32, %arg1: i32, %arg2: i32) -> (i32, i32) {
    %c0_i32 = arith.constant 0 : i32
    %c0_i32_0 = arith.constant 0 : i32
    return %c0_i32, %arg1 : i32, i32
  }
  func.func @transform_3(%arg0: i32, %arg1: i32, %arg2: i32) -> (i32, i32) {
    %c0_i32 = arith.constant 0 : i32
    return %arg0, %arg1 : i32, i32
  }
}

module attributes {stable_mosaic.version = 11 : i64} {
  func.func @_linear_ln_kernel(%arg0: i32, %arg1: i32, %arg2: memref<16x256xbf16, #tpu.memory_space<vmem>>, %arg3: memref<256x128xbf16, #tpu.memory_space<vmem>>, %arg4: memref<1x128xf32, #tpu.memory_space<vmem>>, %arg5: memref<16x128xbf16, #tpu.memory_space<vmem>>, %arg6: memref<1x128xf32, #tpu.memory_space<vmem>>, %arg7: memref<1x128xf32, #tpu.memory_space<vmem>>, %arg8: memref<16x128xbf16, #tpu.memory_space<vmem>>, %arg9: memref<16x128xf32, #tpu.memory_space<vmem>>) attributes {dimension_semantics = [#tpu.dimension_semantics<parallel>, #tpu.dimension_semantics<arbitrary>], iteration_bounds = array<i64: 1, 1>, scalar_prefetch = 0 : i64, scratch_operands = 1 : i64, tpu.core_type = #tpu.core_type<tc>, window_params = [{transform_indices = @transform_0, window_bounds = array<i64: 16, 256>}, {transform_indices = @transform_1, window_bounds = array<i64: 256, 128>}, {pipeline_mode = #tpu.pipeline_mode<synchronous>, transform_indices = @transform_2, window_bounds = array<i64: 1, 128>}, {transform_indices = @transform_3, window_bounds = array<i64: 16, 128>}, {pipeline_mode = #tpu.pipeline_mode<synchronous>, transform_indices = @transform_4, window_bounds = array<i64: 1, 128>}, {pipeline_mode = #tpu.pipeline_mode<synchronous>, transform_indices = @transform_5, window_bounds = array<i64: 1, 128>}, {transform_indices = @transform_6, window_bounds = array<i64: 16, 128>}]} {
    %c0_i32 = arith.constant 0 : i32
    %0 = arith.cmpi eq, %arg1, %c0_i32 : i32
    %1 = arith.extui %0 : i1 to i32
    %c0_i32_0 = arith.constant 0 : i32
    %2 = arith.cmpi ne, %1, %c0_i32_0 : i32
    scf.if %2 {
      %cst_10 = arith.constant 0.000000e+00 : f32
      %12 = vector.broadcast %cst_10 : f32 to vector<16x128xf32>
      %c0_11 = arith.constant 0 : index
      %c0_12 = arith.constant 0 : index
      %13 = vector.load %arg9[%c0_11, %c0_12] : memref<16x128xf32, #tpu.memory_space<vmem>>, vector<16x128xf32>
      tpu.vector_store %arg9[%c0_11, %c0_12], %12 {strides = array<i32>} : memref<16x128xf32, #tpu.memory_space<vmem>>, vector<16x128xf32>,
    } else {
    }
    %c0 = arith.constant 0 : index
    %c0_1 = arith.constant 0 : index
    %3 = vector.load %arg9[%c0, %c0_1] : memref<16x128xf32, #tpu.memory_space<vmem>>, vector<16x128xf32>
    %c0_2 = arith.constant 0 : index
    %c0_3 = arith.constant 0 : index
    %4 = vector.load %arg2[%c0_2, %c0_3] : memref<16x256xbf16, #tpu.memory_space<vmem>>, vector<16x256xbf16>
    %c0_4 = arith.constant 0 : index
    %c0_5 = arith.constant 0 : index
    %5 = vector.load %arg3[%c0_4, %c0_5] : memref<256x128xbf16, #tpu.memory_space<vmem>>, vector<256x128xbf16>
    %cst = arith.constant dense<0.000000e+00> : vector<16x128xf32>
    %6 = tpu.matmul %4, %5, %cst {dimension_numbers = #tpu.dot_dimension_numbers<[1], [0], [0], [1], [0, 0, 1, 1], [], []>} : vector<16x256xbf16>, vector<256x128xbf16>, vector<16x128xf32> -> vector<16x128xf32>
    %7 = arith.addf %3, %6 : vector<16x128xf32>
    %c0_6 = arith.constant 0 : index
    %c0_7 = arith.constant 0 : index
    %8 = vector.load %arg9[%c0_6, %c0_7] : memref<16x128xf32, #tpu.memory_space<vmem>>, vector<16x128xf32>
    tpu.vector_store %arg9[%c0_6, %c0_7], %7 {strides = array<i32>} : memref<16x128xf32, #tpu.memory_space<vmem>>, vector<16x128xf32>,
    %c0_i32_8 = arith.constant 0 : i32
    %9 = arith.cmpi eq, %arg1, %c0_i32_8 : i32
    %10 = arith.extui %9 : i1 to i32
    %c0_i32_9 = arith.constant 0 : i32
    %11 = arith.cmpi ne, %10, %c0_i32_9 : i32
    scf.if %11 {
      %c0_10 = arith.constant 0 : index
      %c0_11 = arith.constant 0 : index
      %12 = vector.load %arg9[%c0_10, %c0_11] : memref<16x128xf32, #tpu.memory_space<vmem>>, vector<16x128xf32>
      %c0_12 = arith.constant 0 : index
      %c0_13 = arith.constant 0 : index
      %13 = vector.load %arg4[%c0_12, %c0_13] : memref<1x128xf32, #tpu.memory_space<vmem>>, vector<1x128xf32>
      %14 = vector.broadcast %13 : vector<1x128xf32> to vector<16x128xf32>
      %15 = arith.addf %12, %14 : vector<16x128xf32>
      %c0_14 = arith.constant 0 : index
      %c0_15 = arith.constant 0 : index
      %16 = vector.load %arg5[%c0_14, %c0_15] : memref<16x128xbf16, #tpu.memory_space<vmem>>, vector<16x128xbf16>
      %17 = arith.extf %16 : vector<16x128xbf16> to vector<16x128xf32>
      %18 = arith.addf %15, %17 : vector<16x128xf32>
      %cst_16 = arith.constant dense<0.000000e+00> : vector<16xf32>
      %19 = vector.multi_reduction <add>, %18, %cst_16 [1] : vector<16x128xf32> to vector<16xf32>
      %20 = vector.shape_cast %19 : vector<16xf32> to vector<16x1xf32>
      %cst_17 = arith.constant 1.280000e+02 : f32
      %21 = vector.broadcast %cst_17 : f32 to vector<16x1xf32>
      %22 = arith.divf %20, %21 : vector<16x1xf32>
      %23 = vector.broadcast %22 : vector<16x1xf32> to vector<16x128xf32>
      %24 = arith.subf %18, %23 : vector<16x128xf32>
      %25 = arith.mulf %24, %24 : vector<16x128xf32>
      %cst_18 = arith.constant dense<0.000000e+00> : vector<16xf32>
      %26 = vector.multi_reduction <add>, %25, %cst_18 [1] : vector<16x128xf32> to vector<16xf32>
      %27 = vector.shape_cast %26 : vector<16xf32> to vector<16x1xf32>
      %cst_19 = arith.constant 1.280000e+02 : f32
      %28 = vector.broadcast %cst_19 : f32 to vector<16x1xf32>
      %29 = arith.divf %27, %28 : vector<16x1xf32>
      %30 = vector.broadcast %22 : vector<16x1xf32> to vector<16x128xf32>
      %31 = arith.subf %18, %30 : vector<16x128xf32>
      %cst_20 = arith.constant 9.99999974E-6 : f32
      %32 = vector.broadcast %cst_20 : f32 to vector<16x1xf32>
      %33 = arith.addf %29, %32 : vector<16x1xf32>
      %34 = math.rsqrt %33 : vector<16x1xf32>
      %35 = vector.broadcast %34 : vector<16x1xf32> to vector<16x128xf32>
      %36 = arith.mulf %31, %35 : vector<16x128xf32>
      %c0_21 = arith.constant 0 : index
      %c0_22 = arith.constant 0 : index
      %37 = vector.load %arg6[%c0_21, %c0_22] : memref<1x128xf32, #tpu.memory_space<vmem>>, vector<1x128xf32>
      %38 = vector.broadcast %37 : vector<1x128xf32> to vector<16x128xf32>
      %39 = arith.mulf %36, %38 : vector<16x128xf32>
      %c0_23 = arith.constant 0 : index
      %c0_24 = arith.constant 0 : index
      %40 = vector.load %arg7[%c0_23, %c0_24] : memref<1x128xf32, #tpu.memory_space<vmem>>, vector<1x128xf32>
      %41 = vector.broadcast %40 : vector<1x128xf32> to vector<16x128xf32>
      %42 = arith.addf %39, %41 : vector<16x128xf32>
      %43 = arith.truncf %42 : vector<16x128xf32> to vector<16x128xbf16>
      %c0_25 = arith.constant 0 : index
      %c0_26 = arith.constant 0 : index
      %44 = vector.load %arg8[%c0_25, %c0_26] : memref<16x128xbf16, #tpu.memory_space<vmem>>, vector<16x128xbf16>
      tpu.vector_store %arg8[%c0_25, %c0_26], %43 {strides = array<i32>} : memref<16x128xbf16, #tpu.memory_space<vmem>>, vector<16x128xbf16>,
    } else {
    }
    return
  }
  func.func @transform_0(%arg0: i32, %arg1: i32) -> (i32, i32) {
    %c0_i32 = arith.constant 0 : i32
    return %arg0, %arg1 : i32, i32
  }
  func.func @transform_1(%arg0: i32, %arg1: i32) -> (i32, i32) {
    %c0_i32 = arith.constant 0 : i32
    %c0_i32_0 = arith.constant 0 : i32
    return %arg1, %c0_i32 : i32, i32
  }
  func.func @transform_2(%arg0: i32, %arg1: i32) -> (i32, i32) {
    %c0_i32 = arith.constant 0 : i32
    %c0_i32_0 = arith.constant 0 : i32
    %c0_i32_1 = arith.constant 0 : i32
    return %c0_i32, %c0_i32_0 : i32, i32
  }
  func.func @transform_3(%arg0: i32, %arg1: i32) -> (i32, i32) {
    %c0_i32 = arith.constant 0 : i32
    %c0_i32_0 = arith.constant 0 : i32
    return %arg0, %c0_i32 : i32, i32
  }
  func.func @transform_4(%arg0: i32, %arg1: i32) -> (i32, i32) {
    %c0_i32 = arith.constant 0 : i32
    %c0_i32_0 = arith.constant 0 : i32
    %c0_i32_1 = arith.constant 0 : i32
    return %c0_i32, %c0_i32_0 : i32, i32
  }
  func.func @transform_5(%arg0: i32, %arg1: i32) -> (i32, i32) {
    %c0_i32 = arith.constant 0 : i32
    %c0_i32_0 = arith.constant 0 : i32
    %c0_i32_1 = arith.constant 0 : i32
    return %c0_i32, %c0_i32_0 : i32, i32
  }
  func.func @transform_6(%arg0: i32, %arg1: i32) -> (i32, i32) {
    %c0_i32 = arith.constant 0 : i32
    %c0_i32_0 = arith.constant 0 : i32
    return %arg0, %c0_i32 : i32, i32
  }
}

module attributes {stable_mosaic.version = 11 : i64} {
  func.func @_linear_kernel(%arg0: i32, %arg1: i32, %arg2: i32, %arg3: memref<16x128xbf16, #tpu.memory_space<vmem>>, %arg4: memref<128x128xbf16, #tpu.memory_space<vmem>>, %arg5: memref<1x128xf32, #tpu.memory_space<vmem>>, %arg6: memref<16x128xbf16, #tpu.memory_space<vmem>>, %arg7: memref<16x128xf32, #tpu.memory_space<vmem>>) attributes {dimension_semantics = [#tpu.dimension_semantics<parallel>, #tpu.dimension_semantics<parallel>, #tpu.dimension_semantics<arbitrary>], iteration_bounds = array<i64: 1, 3, 1>, scalar_prefetch = 0 : i64, scratch_operands = 1 : i64, tpu.core_type = #tpu.core_type<tc>, window_params = [{transform_indices = @transform_0, window_bounds = array<i64: 16, 128>}, {transform_indices = @transform_1, window_bounds = array<i64: 128, 128>}, {transform_indices = @transform_2, window_bounds = array<i64: 1, 128>}, {transform_indices = @transform_3, window_bounds = array<i64: 16, 128>}]} {
    %c0_i32 = arith.constant 0 : i32
    %0 = arith.cmpi eq, %arg2, %c0_i32 : i32
    %1 = arith.extui %0 : i1 to i32
    %c0_i32_0 = arith.constant 0 : i32
    %2 = arith.cmpi ne, %1, %c0_i32_0 : i32
    scf.if %2 {
      %cst_10 = arith.constant 0.000000e+00 : f32
      %12 = vector.broadcast %cst_10 : f32 to vector<16x128xf32>
      %c0_11 = arith.constant 0 : index
      %c0_12 = arith.constant 0 : index
      %13 = vector.load %arg7[%c0_11, %c0_12] : memref<16x128xf32, #tpu.memory_space<vmem>>, vector<16x128xf32>
      tpu.vector_store %arg7[%c0_11, %c0_12], %12 {strides = array<i32>} : memref<16x128xf32, #tpu.memory_space<vmem>>, vector<16x128xf32>,
    } else {
    }
    %c0 = arith.constant 0 : index
    %c0_1 = arith.constant 0 : index
    %3 = vector.load %arg7[%c0, %c0_1] : memref<16x128xf32, #tpu.memory_space<vmem>>, vector<16x128xf32>
    %c0_2 = arith.constant 0 : index
    %c0_3 = arith.constant 0 : index
    %4 = vector.load %arg3[%c0_2, %c0_3] : memref<16x128xbf16, #tpu.memory_space<vmem>>, vector<16x128xbf16>
    %c0_4 = arith.constant 0 : index
    %c0_5 = arith.constant 0 : index
    %5 = vector.load %arg4[%c0_4, %c0_5] : memref<128x128xbf16, #tpu.memory_space<vmem>>, vector<128x128xbf16>
    %cst = arith.constant dense<0.000000e+00> : vector<16x128xf32>
    %6 = tpu.matmul %4, %5, %cst {dimension_numbers = #tpu.dot_dimension_numbers<[1], [0], [0], [1], [0, 0, 1, 1], [], []>} : vector<16x128xbf16>, vector<128x128xbf16>, vector<16x128xf32> -> vector<16x128xf32>
    %7 = arith.addf %3, %6 : vector<16x128xf32>
    %c0_6 = arith.constant 0 : index
    %c0_7 = arith.constant 0 : index
    %8 = vector.load %arg7[%c0_6, %c0_7] : memref<16x128xf32, #tpu.memory_space<vmem>>, vector<16x128xf32>
    tpu.vector_store %arg7[%c0_6, %c0_7], %7 {strides = array<i32>} : memref<16x128xf32, #tpu.memory_space<vmem>>, vector<16x128xf32>,
    %c0_i32_8 = arith.constant 0 : i32
    %9 = arith.cmpi eq, %arg2, %c0_i32_8 : i32
    %10 = arith.extui %9 : i1 to i32
    %c0_i32_9 = arith.constant 0 : i32
    %11 = arith.cmpi ne, %10, %c0_i32_9 : i32
    scf.if %11 {
      %c0_10 = arith.constant 0 : index
      %c0_11 = arith.constant 0 : index
      %12 = vector.load %arg7[%c0_10, %c0_11] : memref<16x128xf32, #tpu.memory_space<vmem>>, vector<16x128xf32>
      %c0_12 = arith.constant 0 : index
      %c0_13 = arith.constant 0 : index
      %13 = vector.load %arg5[%c0_12, %c0_13] : memref<1x128xf32, #tpu.memory_space<vmem>>, vector<1x128xf32>
      %14 = vector.broadcast %13 : vector<1x128xf32> to vector<16x128xf32>
      %15 = arith.addf %12, %14 : vector<16x128xf32>
      %16 = arith.truncf %15 : vector<16x128xf32> to vector<16x128xbf16>
      %c0_14 = arith.constant 0 : index
      %c0_15 = arith.constant 0 : index
      %17 = vector.load %arg6[%c0_14, %c0_15] : memref<16x128xbf16, #tpu.memory_space<vmem>>, vector<16x128xbf16>
      tpu.vector_store %arg6[%c0_14, %c0_15], %16 {strides = array<i32>} : memref<16x128xbf16, #tpu.memory_space<vmem>>, vector<16x128xbf16>,
    } else {
    }
    return
  }
  func.func @transform_0(%arg0: i32, %arg1: i32, %arg2: i32) -> (i32, i32) {
    %c0_i32 = arith.constant 0 : i32
    return %arg0, %arg2 : i32, i32
  }
  func.func @transform_1(%arg0: i32, %arg1: i32, %arg2: i32) -> (i32, i32) {
    %c0_i32 = arith.constant 0 : i32
    return %arg2, %arg1 : i32, i32
  }
  func.func @transform_2(%arg0: i32, %arg1: i32, %arg2: i32) -> (i32, i32) {
    %c0_i32 = arith.constant 0 : i32
    %c0_i32_0 = arith.constant 0 : i32
    return %c0_i32, %arg1 : i32, i32
  }
  func.func @transform_3(%arg0: i32, %arg1: i32, %arg2: i32) -> (i32, i32) {
    %c0_i32 = arith.constant 0 : i32
    return %arg0, %arg1 : i32, i32
  }
}

module attributes {stable_mosaic.version = 11 : i64} {
  func.func @_linear_kernel(%arg0: i32, %arg1: i32, %arg2: i32, %arg3: memref<16x128xbf16, #tpu.memory_space<vmem>>, %arg4: memref<128x128xbf16, #tpu.memory_space<vmem>>, %arg5: memref<1x128xf32, #tpu.memory_space<vmem>>, %arg6: memref<16x128xbf16, #tpu.memory_space<vmem>>, %arg7: memref<16x128xf32, #tpu.memory_space<vmem>>) attributes {dimension_semantics = [#tpu.dimension_semantics<parallel>, #tpu.dimension_semantics<parallel>, #tpu.dimension_semantics<arbitrary>], iteration_bounds = array<i64: 1, 2, 1>, scalar_prefetch = 0 : i64, scratch_operands = 1 : i64, tpu.core_type = #tpu.core_type<tc>, window_params = [{transform_indices = @transform_0, window_bounds = array<i64: 16, 128>}, {transform_indices = @transform_1, window_bounds = array<i64: 128, 128>}, {transform_indices = @transform_2, window_bounds = array<i64: 1, 128>}, {transform_indices = @transform_3, window_bounds = array<i64: 16, 128>}]} {
    %c0_i32 = arith.constant 0 : i32
    %0 = arith.cmpi eq, %arg2, %c0_i32 : i32
    %1 = arith.extui %0 : i1 to i32
    %c0_i32_0 = arith.constant 0 : i32
    %2 = arith.cmpi ne, %1, %c0_i32_0 : i32
    scf.if %2 {
      %cst_10 = arith.constant 0.000000e+00 : f32
      %12 = vector.broadcast %cst_10 : f32 to vector<16x128xf32>
      %c0_11 = arith.constant 0 : index
      %c0_12 = arith.constant 0 : index
      %13 = vector.load %arg7[%c0_11, %c0_12] : memref<16x128xf32, #tpu.memory_space<vmem>>, vector<16x128xf32>
      tpu.vector_store %arg7[%c0_11, %c0_12], %12 {strides = array<i32>} : memref<16x128xf32, #tpu.memory_space<vmem>>, vector<16x128xf32>,
    } else {
    }
    %c0 = arith.constant 0 : index
    %c0_1 = arith.constant 0 : index
    %3 = vector.load %arg7[%c0, %c0_1] : memref<16x128xf32, #tpu.memory_space<vmem>>, vector<16x128xf32>
    %c0_2 = arith.constant 0 : index
    %c0_3 = arith.constant 0 : index
    %4 = vector.load %arg3[%c0_2, %c0_3] : memref<16x128xbf16, #tpu.memory_space<vmem>>, vector<16x128xbf16>
    %c0_4 = arith.constant 0 : index
    %c0_5 = arith.constant 0 : index
    %5 = vector.load %arg4[%c0_4, %c0_5] : memref<128x128xbf16, #tpu.memory_space<vmem>>, vector<128x128xbf16>
    %cst = arith.constant dense<0.000000e+00> : vector<16x128xf32>
    %6 = tpu.matmul %4, %5, %cst {dimension_numbers = #tpu.dot_dimension_numbers<[1], [0], [0], [1], [0, 0, 1, 1], [], []>} : vector<16x128xbf16>, vector<128x128xbf16>, vector<16x128xf32> -> vector<16x128xf32>
    %7 = arith.addf %3, %6 : vector<16x128xf32>
    %c0_6 = arith.constant 0 : index
    %c0_7 = arith.constant 0 : index
    %8 = vector.load %arg7[%c0_6, %c0_7] : memref<16x128xf32, #tpu.memory_space<vmem>>, vector<16x128xf32>
    tpu.vector_store %arg7[%c0_6, %c0_7], %7 {strides = array<i32>} : memref<16x128xf32, #tpu.memory_space<vmem>>, vector<16x128xf32>,
    %c0_i32_8 = arith.constant 0 : i32
    %9 = arith.cmpi eq, %arg2, %c0_i32_8 : i32
    %10 = arith.extui %9 : i1 to i32
    %c0_i32_9 = arith.constant 0 : i32
    %11 = arith.cmpi ne, %10, %c0_i32_9 : i32
    scf.if %11 {
      %c0_10 = arith.constant 0 : index
      %c0_11 = arith.constant 0 : index
      %12 = vector.load %arg7[%c0_10, %c0_11] : memref<16x128xf32, #tpu.memory_space<vmem>>, vector<16x128xf32>
      %c0_12 = arith.constant 0 : index
      %c0_13 = arith.constant 0 : index
      %13 = vector.load %arg5[%c0_12, %c0_13] : memref<1x128xf32, #tpu.memory_space<vmem>>, vector<1x128xf32>
      %14 = vector.broadcast %13 : vector<1x128xf32> to vector<16x128xf32>
      %15 = arith.addf %12, %14 : vector<16x128xf32>
      %16 = arith.truncf %15 : vector<16x128xf32> to vector<16x128xbf16>
      %c0_14 = arith.constant 0 : index
      %c0_15 = arith.constant 0 : index
      %17 = vector.load %arg6[%c0_14, %c0_15] : memref<16x128xbf16, #tpu.memory_space<vmem>>, vector<16x128xbf16>
      tpu.vector_store %arg6[%c0_14, %c0_15], %16 {strides = array<i32>} : memref<16x128xbf16, #tpu.memory_space<vmem>>, vector<16x128xbf16>,
    } else {
    }
    return
  }
  func.func @transform_0(%arg0: i32, %arg1: i32, %arg2: i32) -> (i32, i32) {
    %c0_i32 = arith.constant 0 : i32
    return %arg0, %arg2 : i32, i32
  }
  func.func @transform_1(%arg0: i32, %arg1: i32, %arg2: i32) -> (i32, i32) {
    %c0_i32 = arith.constant 0 : i32
    return %arg2, %arg1 : i32, i32
  }
  func.func @transform_2(%arg0: i32, %arg1: i32, %arg2: i32) -> (i32, i32) {
    %c0_i32 = arith.constant 0 : i32
    %c0_i32_0 = arith.constant 0 : i32
    return %c0_i32, %arg1 : i32, i32
  }
  func.func @transform_3(%arg0: i32, %arg1: i32, %arg2: i32) -> (i32, i32) {
    %c0_i32 = arith.constant 0 : i32
    return %arg0, %arg1 : i32, i32
  }
}

module attributes {stable_mosaic.version = 11 : i64} {
  func.func @_attention_kernel(%arg0: i32, %arg1: i32, %arg2: memref<1x8x128xbf16, #tpu.memory_space<vmem>>, %arg3: memref<1x8x128xbf16, #tpu.memory_space<vmem>>, %arg4: memref<1x8x128xbf16, #tpu.memory_space<vmem>>, %arg5: memref<1x1x8xf32, #tpu.memory_space<vmem>>, %arg6: memref<1x8x128xbf16, #tpu.memory_space<vmem>>) attributes {dimension_semantics = [#tpu.dimension_semantics<parallel>, #tpu.dimension_semantics<parallel>], iteration_bounds = array<i64: 2, 1>, scalar_prefetch = 0 : i64, scratch_operands = 0 : i64, tpu.core_type = #tpu.core_type<tc>, window_params = [{transform_indices = @transform_0, window_bounds = array<i64: 1, 8, 128>}, {transform_indices = @transform_1, window_bounds = array<i64: 1, 8, 128>}, {transform_indices = @transform_2, window_bounds = array<i64: 1, 8, 128>}, {transform_indices = @transform_3, window_bounds = array<i64: 1, 1, 8>}, {transform_indices = @transform_4, window_bounds = array<i64: 1, 8, 128>}]} {
    %c0 = arith.constant 0 : index
    %c0_0 = arith.constant 0 : index
    %c0_1 = arith.constant 0 : index
    %0 = vector.load %arg5[%c0, %c0_0, %c0_1] : memref<1x1x8xf32, #tpu.memory_space<vmem>>, vector<1x1x8xf32>
    %1 = vector.shape_cast %0 : vector<1x1x8xf32> to vector<1x8xf32>
    %cst = arith.constant 5.000000e-01 : f32
    %2 = vector.broadcast %cst : f32 to vector<1x8xf32>
    %3 = arith.cmpf ogt, %1, %2 : vector<1x8xf32>
    %c8_i32 = arith.constant 8 : i32
    %4 = arith.muli %arg1, %c8_i32 : i32
    %5 = tpu.iota {dimensions = array<i32: 0>} : vector<8x8xi32>
    %6 = vector.broadcast %4 : i32 to vector<8x8xi32>
    %7 = arith.addi %6, %5 : vector<8x8xi32>
    %8 = tpu.iota {dimensions = array<i32: 1>} : vector<8x8xi32>
    %9 = arith.cmpi sge, %7, %8 : vector<8x8xi32>
    %10 = vector.broadcast %3 : vector<1x8xi1> to vector<8x8xi1>
    %11 = arith.andi %10, %9 : vector<8x8xi1>
    %c0_2 = arith.constant 0 : index
    %c0_3 = arith.constant 0 : index
    %c0_4 = arith.constant 0 : index
    %12 = vector.load %arg2[%c0_2, %c0_3, %c0_4] : memref<1x8x128xbf16, #tpu.memory_space<vmem>>, vector<1x8x32xbf16>
    %13 = vector.shape_cast %12 : vector<1x8x32xbf16> to vector<8x32xbf16>
    %c0_5 = arith.constant 0 : index
    %c0_6 = arith.constant 0 : index
    %c0_7 = arith.constant 0 : index
    %14 = vector.load %arg3[%c0_5, %c0_6, %c0_7] : memref<1x8x128xbf16, #tpu.memory_space<vmem>>, vector<1x8x32xbf16>
    %15 = vector.shape_cast %14 : vector<1x8x32xbf16> to vector<8x32xbf16>
    %c0_8 = arith.constant 0 : index
    %c0_9 = arith.constant 0 : index
    %c0_10 = arith.constant 0 : index
    %16 = vector.load %arg4[%c0_8, %c0_9, %c0_10] : memref<1x8x128xbf16, #tpu.memory_space<vmem>>, vector<1x8x32xbf16>
    %17 = vector.shape_cast %16 : vector<1x8x32xbf16> to vector<8x32xbf16>
    "tpu.trace_start"() <{level = 10 : i32, message = "qd,kd->qk"}> : () -> ()
    %cst_11 = arith.constant dense<0.000000e+00> : vector<8x8xf32>
    %18 = tpu.matmul %13, %15, %cst_11 {dimension_numbers = #tpu.dot_dimension_numbers<[1], [1], [0], [0], [0, 0, 1, 0], [], []>} : vector<8x32xbf16>, vector<8x32xbf16>, vector<8x8xf32> -> vector<8x8xf32>
    "tpu.trace_stop"() : () -> ()
    %cst_12 = arith.constant 0.176776692 : f32
    %19 = vector.broadcast %cst_12 : f32 to vector<8x8xf32>
    %20 = arith.mulf %18, %19 : vector<8x8xf32>
    %cst_13 = arith.constant -1.000000e+09 : f32
    %21 = vector.broadcast %cst_13 : f32 to vector<8x8xf32>
    %22 = arith.select %11, %20, %21 : vector<8x8xi1>, vector<8x8xf32>
    %cst_14 = arith.constant dense<0xFF800000> : vector<8xf32>
    %23 = vector.multi_reduction <maximumf>, %22, %cst_14 [1] : vector<8x8xf32> to vector<8xf32>
    %24 = vector.shape_cast %23 : vector<8xf32> to vector<8x1xf32>
    %25 = vector.broadcast %24 : vector<8x1xf32> to vector<8x8xf32>
    %26 = arith.subf %22, %25 : vector<8x8xf32>
    %27 = math.exp %26 : vector<8x8xf32>
    %cst_15 = arith.constant dense<0.000000e+00> : vector<8xf32>
    %28 = vector.multi_reduction <add>, %27, %cst_15 [1] : vector<8x8xf32> to vector<8xf32>
    %29 = vector.shape_cast %28 : vector<8xf32> to vector<8x1xf32>
    %30 = tpu.reciprocal %29 {approx = true} : vector<8x1xf32> -> vector<8x1xf32>
    %31 = vector.broadcast %30 : vector<8x1xf32> to vector<8x8xf32>
    %32 = arith.mulf %27, %31 : vector<8x8xf32>
    %33 = arith.truncf %32 : vector<8x8xf32> to vector<8x8xbf16>
    %cst_16 = arith.constant dense<0.000000e+00> : vector<8x32xf32>
    %34 = tpu.matmul %33, %17, %cst_16 {dimension_numbers = #tpu.dot_dimension_numbers<[1], [0], [0], [1], [0, 0, 1, 1], [], []>} : vector<8x8xbf16>, vector<8x32xbf16>, vector<8x32xf32> -> vector<8x32xf32>
    %35 = arith.truncf %34 : vector<8x32xf32> to vector<8x32xbf16>
    %c0_17 = arith.constant 0 : index
    %c0_18 = arith.constant 0 : index
    %c0_19 = arith.constant 0 : index
    %36 = vector.load %arg6[%c0_17, %c0_18, %c0_19] : memref<1x8x128xbf16, #tpu.memory_space<vmem>>, vector<1x8x32xbf16>
    %37 = vector.shape_cast %36 : vector<1x8x32xbf16> to vector<8x32xbf16>
    %38 = vector.shape_cast %35 : vector<8x32xbf16> to vector<1x8x32xbf16>
    tpu.vector_store %arg6[%c0_17, %c0_18, %c0_19], %38 {strides = array<i32>} : memref<1x8x128xbf16, #tpu.memory_space<vmem>>, vector<1x8x32xbf16>,
    %c0_20 = arith.constant 0 : index
    %c0_21 = arith.constant 0 : index
    %c32 = arith.constant 32 : index
    %39 = vector.load %arg2[%c0_20, %c0_21, %c32] : memref<1x8x128xbf16, #tpu.memory_space<vmem>>, vector<1x8x32xbf16>
    %40 = vector.shape_cast %39 : vector<1x8x32xbf16> to vector<8x32xbf16>
    %c0_22 = arith.constant 0 : index
    %c0_23 = arith.constant 0 : index
    %c32_24 = arith.constant 32 : index
    %41 = vector.load %arg3[%c0_22, %c0_23, %c32_24] : memref<1x8x128xbf16, #tpu.memory_space<vmem>>, vector<1x8x32xbf16>
    %42 = vector.shape_cast %41 : vector<1x8x32xbf16> to vector<8x32xbf16>
    %c0_25 = arith.constant 0 : index
    %c0_26 = arith.constant 0 : index
    %c32_27 = arith.constant 32 : index
    %43 = vector.load %arg4[%c0_25, %c0_26, %c32_27] : memref<1x8x128xbf16, #tpu.memory_space<vmem>>, vector<1x8x32xbf16>
    %44 = vector.shape_cast %43 : vector<1x8x32xbf16> to vector<8x32xbf16>
    "tpu.trace_start"() <{level = 10 : i32, message = "qd,kd->qk"}> : () -> ()
    %cst_28 = arith.constant dense<0.000000e+00> : vector<8x8xf32>
    %45 = tpu.matmul %40, %42, %cst_28 {dimension_numbers = #tpu.dot_dimension_numbers<[1], [1], [0], [0], [0, 0, 1, 0], [], []>} : vector<8x32xbf16>, vector<8x32xbf16>, vector<8x8xf32> -> vector<8x8xf32>
    "tpu.trace_stop"() : () -> ()
    %cst_29 = arith.constant 0.176776692 : f32
    %46 = vector.broadcast %cst_29 : f32 to vector<8x8xf32>
    %47 = arith.mulf %45, %46 : vector<8x8xf32>
    %cst_30 = arith.constant -1.000000e+09 : f32
    %48 = vector.broadcast %cst_30 : f32 to vector<8x8xf32>
    %49 = arith.select %11, %47, %48 : vector<8x8xi1>, vector<8x8xf32>
    %cst_31 = arith.constant dense<0xFF800000> : vector<8xf32>
    %50 = vector.multi_reduction <maximumf>, %49, %cst_31 [1] : vector<8x8xf32> to vector<8xf32>
    %51 = vector.shape_cast %50 : vector<8xf32> to vector<8x1xf32>
    %52 = vector.broadcast %51 : vector<8x1xf32> to vector<8x8xf32>
    %53 = arith.subf %49, %52 : vector<8x8xf32>
    %54 = math.exp %53 : vector<8x8xf32>
    %cst_32 = arith.constant dense<0.000000e+00> : vector<8xf32>
    %55 = vector.multi_reduction <add>, %54, %cst_32 [1] : vector<8x8xf32> to vector<8xf32>
    %56 = vector.shape_cast %55 : vector<8xf32> to vector<8x1xf32>
    %57 = tpu.reciprocal %56 {approx = true} : vector<8x1xf32> -> vector<8x1xf32>
    %58 = vector.broadcast %57 : vector<8x1xf32> to vector<8x8xf32>
    %59 = arith.mulf %54, %58 : vector<8x8xf32>
    %60 = arith.truncf %59 : vector<8x8xf32> to vector<8x8xbf16>
    %cst_33 = arith.constant dense<0.000000e+00> : vector<8x32xf32>
    %61 = tpu.matmul %60, %44, %cst_33 {dimension_numbers = #tpu.dot_dimension_numbers<[1], [0], [0], [1], [0, 0, 1, 1], [], []>} : vector<8x8xbf16>, vector<8x32xbf16>, vector<8x32xf32> -> vector<8x32xf32>
    %62 = arith.truncf %61 : vector<8x32xf32> to vector<8x32xbf16>
    %c0_34 = arith.constant 0 : index
    %c0_35 = arith.constant 0 : index
    %c32_36 = arith.constant 32 : index
    %63 = vector.load %arg6[%c0_34, %c0_35, %c32_36] : memref<1x8x128xbf16, #tpu.memory_space<vmem>>, vector<1x8x32xbf16>
    %64 = vector.shape_cast %63 : vector<1x8x32xbf16> to vector<8x32xbf16>
    %65 = vector.shape_cast %62 : vector<8x32xbf16> to vector<1x8x32xbf16>
    tpu.vector_store %arg6[%c0_34, %c0_35, %c32_36], %65 {strides = array<i32>} : memref<1x8x128xbf16, #tpu.memory_space<vmem>>, vector<1x8x32xbf16>,
    %c0_37 = arith.constant 0 : index
    %c0_38 = arith.constant 0 : index
    %c64 = arith.constant 64 : index
    %66 = vector.load %arg2[%c0_37, %c0_38, %c64] : memref<1x8x128xbf16, #tpu.memory_space<vmem>>, vector<1x8x32xbf16>
    %67 = vector.shape_cast %66 : vector<1x8x32xbf16> to vector<8x32xbf16>
    %c0_39 = arith.constant 0 : index
    %c0_40 = arith.constant 0 : index
    %c64_41 = arith.constant 64 : index
    %68 = vector.load %arg3[%c0_39, %c0_40, %c64_41] : memref<1x8x128xbf16, #tpu.memory_space<vmem>>, vector<1x8x32xbf16>
    %69 = vector.shape_cast %68 : vector<1x8x32xbf16> to vector<8x32xbf16>
    %c0_42 = arith.constant 0 : index
    %c0_43 = arith.constant 0 : index
    %c64_44 = arith.constant 64 : index
    %70 = vector.load %arg4[%c0_42, %c0_43, %c64_44] : memref<1x8x128xbf16, #tpu.memory_space<vmem>>, vector<1x8x32xbf16>
    %71 = vector.shape_cast %70 : vector<1x8x32xbf16> to vector<8x32xbf16>
    "tpu.trace_start"() <{level = 10 : i32, message = "qd,kd->qk"}> : () -> ()
    %cst_45 = arith.constant dense<0.000000e+00> : vector<8x8xf32>
    %72 = tpu.matmul %67, %69, %cst_45 {dimension_numbers = #tpu.dot_dimension_numbers<[1], [1], [0], [0], [0, 0, 1, 0], [], []>} : vector<8x32xbf16>, vector<8x32xbf16>, vector<8x8xf32> -> vector<8x8xf32>
    "tpu.trace_stop"() : () -> ()
    %cst_46 = arith.constant 0.176776692 : f32
    %73 = vector.broadcast %cst_46 : f32 to vector<8x8xf32>
    %74 = arith.mulf %72, %73 : vector<8x8xf32>
    %cst_47 = arith.constant -1.000000e+09 : f32
    %75 = vector.broadcast %cst_47 : f32 to vector<8x8xf32>
    %76 = arith.select %11, %74, %75 : vector<8x8xi1>, vector<8x8xf32>
    %cst_48 = arith.constant dense<0xFF800000> : vector<8xf32>
    %77 = vector.multi_reduction <maximumf>, %76, %cst_48 [1] : vector<8x8xf32> to vector<8xf32>
    %78 = vector.shape_cast %77 : vector<8xf32> to vector<8x1xf32>
    %79 = vector.broadcast %78 : vector<8x1xf32> to vector<8x8xf32>
    %80 = arith.subf %76, %79 : vector<8x8xf32>
    %81 = math.exp %80 : vector<8x8xf32>
    %cst_49 = arith.constant dense<0.000000e+00> : vector<8xf32>
    %82 = vector.multi_reduction <add>, %81, %cst_49 [1] : vector<8x8xf32> to vector<8xf32>
    %83 = vector.shape_cast %82 : vector<8xf32> to vector<8x1xf32>
    %84 = tpu.reciprocal %83 {approx = true} : vector<8x1xf32> -> vector<8x1xf32>
    %85 = vector.broadcast %84 : vector<8x1xf32> to vector<8x8xf32>
    %86 = arith.mulf %81, %85 : vector<8x8xf32>
    %87 = arith.truncf %86 : vector<8x8xf32> to vector<8x8xbf16>
    %cst_50 = arith.constant dense<0.000000e+00> : vector<8x32xf32>
    %88 = tpu.matmul %87, %71, %cst_50 {dimension_numbers = #tpu.dot_dimension_numbers<[1], [0], [0], [1], [0, 0, 1, 1], [], []>} : vector<8x8xbf16>, vector<8x32xbf16>, vector<8x32xf32> -> vector<8x32xf32>
    %89 = arith.truncf %88 : vector<8x32xf32> to vector<8x32xbf16>
    %c0_51 = arith.constant 0 : index
    %c0_52 = arith.constant 0 : index
    %c64_53 = arith.constant 64 : index
    %90 = vector.load %arg6[%c0_51, %c0_52, %c64_53] : memref<1x8x128xbf16, #tpu.memory_space<vmem>>, vector<1x8x32xbf16>
    %91 = vector.shape_cast %90 : vector<1x8x32xbf16> to vector<8x32xbf16>
    %92 = vector.shape_cast %89 : vector<8x32xbf16> to vector<1x8x32xbf16>
    tpu.vector_store %arg6[%c0_51, %c0_52, %c64_53], %92 {strides = array<i32>} : memref<1x8x128xbf16, #tpu.memory_space<vmem>>, vector<1x8x32xbf16>,
    %c0_54 = arith.constant 0 : index
    %c0_55 = arith.constant 0 : index
    %c96 = arith.constant 96 : index
    %93 = vector.load %arg2[%c0_54, %c0_55, %c96] : memref<1x8x128xbf16, #tpu.memory_space<vmem>>, vector<1x8x32xbf16>
    %94 = vector.shape_cast %93 : vector<1x8x32xbf16> to vector<8x32xbf16>
    %c0_56 = arith.constant 0 : index
    %c0_57 = arith.constant 0 : index
    %c96_58 = arith.constant 96 : index
    %95 = vector.load %arg3[%c0_56, %c0_57, %c96_58] : memref<1x8x128xbf16, #tpu.memory_space<vmem>>, vector<1x8x32xbf16>
    %96 = vector.shape_cast %95 : vector<1x8x32xbf16> to vector<8x32xbf16>
    %c0_59 = arith.constant 0 : index
    %c0_60 = arith.constant 0 : index
    %c96_61 = arith.constant 96 : index
    %97 = vector.load %arg4[%c0_59, %c0_60, %c96_61] : memref<1x8x128xbf16, #tpu.memory_space<vmem>>, vector<1x8x32xbf16>
    %98 = vector.shape_cast %97 : vector<1x8x32xbf16> to vector<8x32xbf16>
    "tpu.trace_start"() <{level = 10 : i32, message = "qd,kd->qk"}> : () -> ()
    %cst_62 = arith.constant dense<0.000000e+00> : vector<8x8xf32>
    %99 = tpu.matmul %94, %96, %cst_62 {dimension_numbers = #tpu.dot_dimension_numbers<[1], [1], [0], [0], [0, 0, 1, 0], [], []>} : vector<8x32xbf16>, vector<8x32xbf16>, vector<8x8xf32> -> vector<8x8xf32>
    "tpu.trace_stop"() : () -> ()
    %cst_63 = arith.constant 0.176776692 : f32
    %100 = vector.broadcast %cst_63 : f32 to vector<8x8xf32>
    %101 = arith.mulf %99, %100 : vector<8x8xf32>
    %cst_64 = arith.constant -1.000000e+09 : f32
    %102 = vector.broadcast %cst_64 : f32 to vector<8x8xf32>
    %103 = arith.select %11, %101, %102 : vector<8x8xi1>, vector<8x8xf32>
    %cst_65 = arith.constant dense<0xFF800000> : vector<8xf32>
    %104 = vector.multi_reduction <maximumf>, %103, %cst_65 [1] : vector<8x8xf32> to vector<8xf32>
    %105 = vector.shape_cast %104 : vector<8xf32> to vector<8x1xf32>
    %106 = vector.broadcast %105 : vector<8x1xf32> to vector<8x8xf32>
    %107 = arith.subf %103, %106 : vector<8x8xf32>
    %108 = math.exp %107 : vector<8x8xf32>
    %cst_66 = arith.constant dense<0.000000e+00> : vector<8xf32>
    %109 = vector.multi_reduction <add>, %108, %cst_66 [1] : vector<8x8xf32> to vector<8xf32>
    %110 = vector.shape_cast %109 : vector<8xf32> to vector<8x1xf32>
    %111 = tpu.reciprocal %110 {approx = true} : vector<8x1xf32> -> vector<8x1xf32>
    %112 = vector.broadcast %111 : vector<8x1xf32> to vector<8x8xf32>
    %113 = arith.mulf %108, %112 : vector<8x8xf32>
    %114 = arith.truncf %113 : vector<8x8xf32> to vector<8x8xbf16>
    %cst_67 = arith.constant dense<0.000000e+00> : vector<8x32xf32>
    %115 = tpu.matmul %114, %98, %cst_67 {dimension_numbers = #tpu.dot_dimension_numbers<[1], [0], [0], [1], [0, 0, 1, 1], [], []>} : vector<8x8xbf16>, vector<8x32xbf16>, vector<8x32xf32> -> vector<8x32xf32>
    %116 = arith.truncf %115 : vector<8x32xf32> to vector<8x32xbf16>
    %c0_68 = arith.constant 0 : index
    %c0_69 = arith.constant 0 : index
    %c96_70 = arith.constant 96 : index
    %117 = vector.load %arg6[%c0_68, %c0_69, %c96_70] : memref<1x8x128xbf16, #tpu.memory_space<vmem>>, vector<1x8x32xbf16>
    %118 = vector.shape_cast %117 : vector<1x8x32xbf16> to vector<8x32xbf16>
    %119 = vector.shape_cast %116 : vector<8x32xbf16> to vector<1x8x32xbf16>
    tpu.vector_store %arg6[%c0_68, %c0_69, %c96_70], %119 {strides = array<i32>} : memref<1x8x128xbf16, #tpu.memory_space<vmem>>, vector<1x8x32xbf16>,
    return
  }
  func.func @transform_0(%arg0: i32, %arg1: i32) -> (i32, i32, i32) {
    %c0_i32 = arith.constant 0 : i32
    %c0_i32_0 = arith.constant 0 : i32
    return %arg0, %arg1, %c0_i32 : i32, i32, i32
  }
  func.func @transform_1(%arg0: i32, %arg1: i32) -> (i32, i32, i32) {
    %c0_i32 = arith.constant 0 : i32
    %c1_i32 = arith.constant 1 : i32
    %c0_i32_0 = arith.constant 0 : i32
    return %arg0, %c0_i32, %c1_i32 : i32, i32, i32
  }
  func.func @transform_2(%arg0: i32, %arg1: i32) -> (i32, i32, i32) {
    %c0_i32 = arith.constant 0 : i32
    %c2_i32 = arith.constant 2 : i32
    %c0_i32_0 = arith.constant 0 : i32
    return %arg0, %c0_i32, %c2_i32 : i32, i32, i32
  }
  func.func @transform_3(%arg0: i32, %arg1: i32) -> (i32, i32, i32) {
    %c0_i32 = arith.constant 0 : i32
    %c0_i32_0 = arith.constant 0 : i32
    %c0_i32_1 = arith.constant 0 : i32
    return %arg0, %c0_i32, %c0_i32_0 : i32, i32, i32
  }
  func.func @transform_4(%arg0: i32, %arg1: i32) -> (i32, i32, i32) {
    %c0_i32 = arith.constant 0 : i32
    %c0_i32_0 = arith.constant 0 : i32
    return %arg0, %arg1, %c0_i32 : i32, i32, i32
  }
}

module attributes {stable_mosaic.version = 11 : i64} {
  func.func @_linear_ln_kernel(%arg0: i32, %arg1: i32, %arg2: memref<16x128xbf16, #tpu.memory_space<vmem>>, %arg3: memref<128x128xbf16, #tpu.memory_space<vmem>>, %arg4: memref<1x128xf32, #tpu.memory_space<vmem>>, %arg5: memref<16x128xbf16, #tpu.memory_space<vmem>>, %arg6: memref<1x128xf32, #tpu.memory_space<vmem>>, %arg7: memref<1x128xf32, #tpu.memory_space<vmem>>, %arg8: memref<16x128xbf16, #tpu.memory_space<vmem>>, %arg9: memref<16x128xf32, #tpu.memory_space<vmem>>) attributes {dimension_semantics = [#tpu.dimension_semantics<parallel>, #tpu.dimension_semantics<arbitrary>], iteration_bounds = array<i64: 1, 1>, scalar_prefetch = 0 : i64, scratch_operands = 1 : i64, tpu.core_type = #tpu.core_type<tc>, window_params = [{transform_indices = @transform_0, window_bounds = array<i64: 16, 128>}, {transform_indices = @transform_1, window_bounds = array<i64: 128, 128>}, {pipeline_mode = #tpu.pipeline_mode<synchronous>, transform_indices = @transform_2, window_bounds = array<i64: 1, 128>}, {transform_indices = @transform_3, window_bounds = array<i64: 16, 128>}, {pipeline_mode = #tpu.pipeline_mode<synchronous>, transform_indices = @transform_4, window_bounds = array<i64: 1, 128>}, {pipeline_mode = #tpu.pipeline_mode<synchronous>, transform_indices = @transform_5, window_bounds = array<i64: 1, 128>}, {transform_indices = @transform_6, window_bounds = array<i64: 16, 128>}]} {
    %c0_i32 = arith.constant 0 : i32
    %0 = arith.cmpi eq, %arg1, %c0_i32 : i32
    %1 = arith.extui %0 : i1 to i32
    %c0_i32_0 = arith.constant 0 : i32
    %2 = arith.cmpi ne, %1, %c0_i32_0 : i32
    scf.if %2 {
      %cst_10 = arith.constant 0.000000e+00 : f32
      %12 = vector.broadcast %cst_10 : f32 to vector<16x128xf32>
      %c0_11 = arith.constant 0 : index
      %c0_12 = arith.constant 0 : index
      %13 = vector.load %arg9[%c0_11, %c0_12] : memref<16x128xf32, #tpu.memory_space<vmem>>, vector<16x128xf32>
      tpu.vector_store %arg9[%c0_11, %c0_12], %12 {strides = array<i32>} : memref<16x128xf32, #tpu.memory_space<vmem>>, vector<16x128xf32>,
    } else {
    }
    %c0 = arith.constant 0 : index
    %c0_1 = arith.constant 0 : index
    %3 = vector.load %arg9[%c0, %c0_1] : memref<16x128xf32, #tpu.memory_space<vmem>>, vector<16x128xf32>
    %c0_2 = arith.constant 0 : index
    %c0_3 = arith.constant 0 : index
    %4 = vector.load %arg2[%c0_2, %c0_3] : memref<16x128xbf16, #tpu.memory_space<vmem>>, vector<16x128xbf16>
    %c0_4 = arith.constant 0 : index
    %c0_5 = arith.constant 0 : index
    %5 = vector.load %arg3[%c0_4, %c0_5] : memref<128x128xbf16, #tpu.memory_space<vmem>>, vector<128x128xbf16>
    %cst = arith.constant dense<0.000000e+00> : vector<16x128xf32>
    %6 = tpu.matmul %4, %5, %cst {dimension_numbers = #tpu.dot_dimension_numbers<[1], [0], [0], [1], [0, 0, 1, 1], [], []>} : vector<16x128xbf16>, vector<128x128xbf16>, vector<16x128xf32> -> vector<16x128xf32>
    %7 = arith.addf %3, %6 : vector<16x128xf32>
    %c0_6 = arith.constant 0 : index
    %c0_7 = arith.constant 0 : index
    %8 = vector.load %arg9[%c0_6, %c0_7] : memref<16x128xf32, #tpu.memory_space<vmem>>, vector<16x128xf32>
    tpu.vector_store %arg9[%c0_6, %c0_7], %7 {strides = array<i32>} : memref<16x128xf32, #tpu.memory_space<vmem>>, vector<16x128xf32>,
    %c0_i32_8 = arith.constant 0 : i32
    %9 = arith.cmpi eq, %arg1, %c0_i32_8 : i32
    %10 = arith.extui %9 : i1 to i32
    %c0_i32_9 = arith.constant 0 : i32
    %11 = arith.cmpi ne, %10, %c0_i32_9 : i32
    scf.if %11 {
      %c0_10 = arith.constant 0 : index
      %c0_11 = arith.constant 0 : index
      %12 = vector.load %arg9[%c0_10, %c0_11] : memref<16x128xf32, #tpu.memory_space<vmem>>, vector<16x128xf32>
      %c0_12 = arith.constant 0 : index
      %c0_13 = arith.constant 0 : index
      %13 = vector.load %arg4[%c0_12, %c0_13] : memref<1x128xf32, #tpu.memory_space<vmem>>, vector<1x128xf32>
      %14 = vector.broadcast %13 : vector<1x128xf32> to vector<16x128xf32>
      %15 = arith.addf %12, %14 : vector<16x128xf32>
      %c0_14 = arith.constant 0 : index
      %c0_15 = arith.constant 0 : index
      %16 = vector.load %arg5[%c0_14, %c0_15] : memref<16x128xbf16, #tpu.memory_space<vmem>>, vector<16x128xbf16>
      %17 = arith.extf %16 : vector<16x128xbf16> to vector<16x128xf32>
      %18 = arith.addf %15, %17 : vector<16x128xf32>
      %cst_16 = arith.constant dense<0.000000e+00> : vector<16xf32>
      %19 = vector.multi_reduction <add>, %18, %cst_16 [1] : vector<16x128xf32> to vector<16xf32>
      %20 = vector.shape_cast %19 : vector<16xf32> to vector<16x1xf32>
      %cst_17 = arith.constant 1.280000e+02 : f32
      %21 = vector.broadcast %cst_17 : f32 to vector<16x1xf32>
      %22 = arith.divf %20, %21 : vector<16x1xf32>
      %23 = vector.broadcast %22 : vector<16x1xf32> to vector<16x128xf32>
      %24 = arith.subf %18, %23 : vector<16x128xf32>
      %25 = arith.mulf %24, %24 : vector<16x128xf32>
      %cst_18 = arith.constant dense<0.000000e+00> : vector<16xf32>
      %26 = vector.multi_reduction <add>, %25, %cst_18 [1] : vector<16x128xf32> to vector<16xf32>
      %27 = vector.shape_cast %26 : vector<16xf32> to vector<16x1xf32>
      %cst_19 = arith.constant 1.280000e+02 : f32
      %28 = vector.broadcast %cst_19 : f32 to vector<16x1xf32>
      %29 = arith.divf %27, %28 : vector<16x1xf32>
      %30 = vector.broadcast %22 : vector<16x1xf32> to vector<16x128xf32>
      %31 = arith.subf %18, %30 : vector<16x128xf32>
      %cst_20 = arith.constant 9.99999974E-6 : f32
      %32 = vector.broadcast %cst_20 : f32 to vector<16x1xf32>
      %33 = arith.addf %29, %32 : vector<16x1xf32>
      %34 = math.rsqrt %33 : vector<16x1xf32>
      %35 = vector.broadcast %34 : vector<16x1xf32> to vector<16x128xf32>
      %36 = arith.mulf %31, %35 : vector<16x128xf32>
      %c0_21 = arith.constant 0 : index
      %c0_22 = arith.constant 0 : index
      %37 = vector.load %arg6[%c0_21, %c0_22] : memref<1x128xf32, #tpu.memory_space<vmem>>, vector<1x128xf32>
      %38 = vector.broadcast %37 : vector<1x128xf32> to vector<16x128xf32>
      %39 = arith.mulf %36, %38 : vector<16x128xf32>
      %c0_23 = arith.constant 0 : index
      %c0_24 = arith.constant 0 : index
      %40 = vector.load %arg7[%c0_23, %c0_24] : memref<1x128xf32, #tpu.memory_space<vmem>>, vector<1x128xf32>
      %41 = vector.broadcast %40 : vector<1x128xf32> to vector<16x128xf32>
      %42 = arith.addf %39, %41 : vector<16x128xf32>
      %43 = arith.truncf %42 : vector<16x128xf32> to vector<16x128xbf16>
      %c0_25 = arith.constant 0 : index
      %c0_26 = arith.constant 0 : index
      %44 = vector.load %arg8[%c0_25, %c0_26] : memref<16x128xbf16, #tpu.memory_space<vmem>>, vector<16x128xbf16>
      tpu.vector_store %arg8[%c0_25, %c0_26], %43 {strides = array<i32>} : memref<16x128xbf16, #tpu.memory_space<vmem>>, vector<16x128xbf16>,
    } else {
    }
    return
  }
  func.func @transform_0(%arg0: i32, %arg1: i32) -> (i32, i32) {
    %c0_i32 = arith.constant 0 : i32
    return %arg0, %arg1 : i32, i32
  }
  func.func @transform_1(%arg0: i32, %arg1: i32) -> (i32, i32) {
    %c0_i32 = arith.constant 0 : i32
    %c0_i32_0 = arith.constant 0 : i32
    return %arg1, %c0_i32 : i32, i32
  }
  func.func @transform_2(%arg0: i32, %arg1: i32) -> (i32, i32) {
    %c0_i32 = arith.constant 0 : i32
    %c0_i32_0 = arith.constant 0 : i32
    %c0_i32_1 = arith.constant 0 : i32
    return %c0_i32, %c0_i32_0 : i32, i32
  }
  func.func @transform_3(%arg0: i32, %arg1: i32) -> (i32, i32) {
    %c0_i32 = arith.constant 0 : i32
    %c0_i32_0 = arith.constant 0 : i32
    return %arg0, %c0_i32 : i32, i32
  }
  func.func @transform_4(%arg0: i32, %arg1: i32) -> (i32, i32) {
    %c0_i32 = arith.constant 0 : i32
    %c0_i32_0 = arith.constant 0 : i32
    %c0_i32_1 = arith.constant 0 : i32
    return %c0_i32, %c0_i32_0 : i32, i32
  }
  func.func @transform_5(%arg0: i32, %arg1: i32) -> (i32, i32) {
    %c0_i32 = arith.constant 0 : i32
    %c0_i32_0 = arith.constant 0 : i32
    %c0_i32_1 = arith.constant 0 : i32
    return %c0_i32, %c0_i32_0 : i32, i32
  }
  func.func @transform_6(%arg0: i32, %arg1: i32) -> (i32, i32) {
    %c0_i32 = arith.constant 0 : i32
    %c0_i32_0 = arith.constant 0 : i32
    return %arg0, %c0_i32 : i32, i32
  }
}

module attributes {stable_mosaic.version = 11 : i64} {
  func.func @_linear_kernel(%arg0: i32, %arg1: i32, %arg2: i32, %arg3: memref<16x128xbf16, #tpu.memory_space<vmem>>, %arg4: memref<128x128xbf16, #tpu.memory_space<vmem>>, %arg5: memref<1x128xf32, #tpu.memory_space<vmem>>, %arg6: memref<16x128xbf16, #tpu.memory_space<vmem>>, %arg7: memref<16x128xf32, #tpu.memory_space<vmem>>) attributes {dimension_semantics = [#tpu.dimension_semantics<parallel>, #tpu.dimension_semantics<parallel>, #tpu.dimension_semantics<arbitrary>], iteration_bounds = array<i64: 1, 1, 1>, scalar_prefetch = 0 : i64, scratch_operands = 1 : i64, tpu.core_type = #tpu.core_type<tc>, window_params = [{transform_indices = @transform_0, window_bounds = array<i64: 16, 128>}, {transform_indices = @transform_1, window_bounds = array<i64: 128, 128>}, {transform_indices = @transform_2, window_bounds = array<i64: 1, 128>}, {transform_indices = @transform_3, window_bounds = array<i64: 16, 128>}]} {
    %c0_i32 = arith.constant 0 : i32
    %0 = arith.cmpi eq, %arg2, %c0_i32 : i32
    %1 = arith.extui %0 : i1 to i32
    %c0_i32_0 = arith.constant 0 : i32
    %2 = arith.cmpi ne, %1, %c0_i32_0 : i32
    scf.if %2 {
      %cst_10 = arith.constant 0.000000e+00 : f32
      %12 = vector.broadcast %cst_10 : f32 to vector<16x128xf32>
      %c0_11 = arith.constant 0 : index
      %c0_12 = arith.constant 0 : index
      %13 = vector.load %arg7[%c0_11, %c0_12] : memref<16x128xf32, #tpu.memory_space<vmem>>, vector<16x128xf32>
      tpu.vector_store %arg7[%c0_11, %c0_12], %12 {strides = array<i32>} : memref<16x128xf32, #tpu.memory_space<vmem>>, vector<16x128xf32>,
    } else {
    }
    %c0 = arith.constant 0 : index
    %c0_1 = arith.constant 0 : index
    %3 = vector.load %arg7[%c0, %c0_1] : memref<16x128xf32, #tpu.memory_space<vmem>>, vector<16x128xf32>
    %c0_2 = arith.constant 0 : index
    %c0_3 = arith.constant 0 : index
    %4 = vector.load %arg3[%c0_2, %c0_3] : memref<16x128xbf16, #tpu.memory_space<vmem>>, vector<16x128xbf16>
    %c0_4 = arith.constant 0 : index
    %c0_5 = arith.constant 0 : index
    %5 = vector.load %arg4[%c0_4, %c0_5] : memref<128x128xbf16, #tpu.memory_space<vmem>>, vector<128x128xbf16>
    %cst = arith.constant dense<0.000000e+00> : vector<16x128xf32>
    %6 = tpu.matmul %4, %5, %cst {dimension_numbers = #tpu.dot_dimension_numbers<[1], [0], [0], [1], [0, 0, 1, 1], [], []>} : vector<16x128xbf16>, vector<128x128xbf16>, vector<16x128xf32> -> vector<16x128xf32>
    %7 = arith.addf %3, %6 : vector<16x128xf32>
    %c0_6 = arith.constant 0 : index
    %c0_7 = arith.constant 0 : index
    %8 = vector.load %arg7[%c0_6, %c0_7] : memref<16x128xf32, #tpu.memory_space<vmem>>, vector<16x128xf32>
    tpu.vector_store %arg7[%c0_6, %c0_7], %7 {strides = array<i32>} : memref<16x128xf32, #tpu.memory_space<vmem>>, vector<16x128xf32>,
    %c0_i32_8 = arith.constant 0 : i32
    %9 = arith.cmpi eq, %arg2, %c0_i32_8 : i32
    %10 = arith.extui %9 : i1 to i32
    %c0_i32_9 = arith.constant 0 : i32
    %11 = arith.cmpi ne, %10, %c0_i32_9 : i32
    scf.if %11 {
      %c0_10 = arith.constant 0 : index
      %c0_11 = arith.constant 0 : index
      %12 = vector.load %arg7[%c0_10, %c0_11] : memref<16x128xf32, #tpu.memory_space<vmem>>, vector<16x128xf32>
      %c0_12 = arith.constant 0 : index
      %c0_13 = arith.constant 0 : index
      %13 = vector.load %arg5[%c0_12, %c0_13] : memref<1x128xf32, #tpu.memory_space<vmem>>, vector<1x128xf32>
      %14 = vector.broadcast %13 : vector<1x128xf32> to vector<16x128xf32>
      %15 = arith.addf %12, %14 : vector<16x128xf32>
      %16 = arith.truncf %15 : vector<16x128xf32> to vector<16x128xbf16>
      %c0_14 = arith.constant 0 : index
      %c0_15 = arith.constant 0 : index
      %17 = vector.load %arg6[%c0_14, %c0_15] : memref<16x128xbf16, #tpu.memory_space<vmem>>, vector<16x128xbf16>
      tpu.vector_store %arg6[%c0_14, %c0_15], %16 {strides = array<i32>} : memref<16x128xbf16, #tpu.memory_space<vmem>>, vector<16x128xbf16>,
    } else {
    }
    return
  }
  func.func @transform_0(%arg0: i32, %arg1: i32, %arg2: i32) -> (i32, i32) {
    %c0_i32 = arith.constant 0 : i32
    return %arg0, %arg2 : i32, i32
  }
  func.func @transform_1(%arg0: i32, %arg1: i32, %arg2: i32) -> (i32, i32) {
    %c0_i32 = arith.constant 0 : i32
    return %arg2, %arg1 : i32, i32
  }
  func.func @transform_2(%arg0: i32, %arg1: i32, %arg2: i32) -> (i32, i32) {
    %c0_i32 = arith.constant 0 : i32
    %c0_i32_0 = arith.constant 0 : i32
    return %c0_i32, %arg1 : i32, i32
  }
  func.func @transform_3(%arg0: i32, %arg1: i32, %arg2: i32) -> (i32, i32) {
    %c0_i32 = arith.constant 0 : i32
    return %arg0, %arg1 : i32, i32
  }
}

module attributes {stable_mosaic.version = 11 : i64} {
  func.func @_attention_kernel(%arg0: i32, %arg1: i32, %arg2: memref<1x8x128xbf16, #tpu.memory_space<vmem>>, %arg3: memref<1x8x128xbf16, #tpu.memory_space<vmem>>, %arg4: memref<1x8x128xbf16, #tpu.memory_space<vmem>>, %arg5: memref<1x1x8xf32, #tpu.memory_space<vmem>>, %arg6: memref<1x8x128xbf16, #tpu.memory_space<vmem>>) attributes {dimension_semantics = [#tpu.dimension_semantics<parallel>, #tpu.dimension_semantics<parallel>], iteration_bounds = array<i64: 2, 1>, scalar_prefetch = 0 : i64, scratch_operands = 0 : i64, tpu.core_type = #tpu.core_type<tc>, window_params = [{transform_indices = @transform_0, window_bounds = array<i64: 1, 8, 128>}, {transform_indices = @transform_1, window_bounds = array<i64: 1, 8, 128>}, {transform_indices = @transform_2, window_bounds = array<i64: 1, 8, 128>}, {transform_indices = @transform_3, window_bounds = array<i64: 1, 1, 8>}, {transform_indices = @transform_4, window_bounds = array<i64: 1, 8, 128>}]} {
    %c0 = arith.constant 0 : index
    %c0_0 = arith.constant 0 : index
    %c0_1 = arith.constant 0 : index
    %0 = vector.load %arg5[%c0, %c0_0, %c0_1] : memref<1x1x8xf32, #tpu.memory_space<vmem>>, vector<1x1x8xf32>
    %1 = vector.shape_cast %0 : vector<1x1x8xf32> to vector<1x8xf32>
    %cst = arith.constant 5.000000e-01 : f32
    %2 = vector.broadcast %cst : f32 to vector<1x8xf32>
    %3 = arith.cmpf ogt, %1, %2 : vector<1x8xf32>
    %c0_2 = arith.constant 0 : index
    %c0_3 = arith.constant 0 : index
    %c0_4 = arith.constant 0 : index
    %4 = vector.load %arg2[%c0_2, %c0_3, %c0_4] : memref<1x8x128xbf16, #tpu.memory_space<vmem>>, vector<1x8x32xbf16>
    %5 = vector.shape_cast %4 : vector<1x8x32xbf16> to vector<8x32xbf16>
    %c0_5 = arith.constant 0 : index
    %c0_6 = arith.constant 0 : index
    %c0_7 = arith.constant 0 : index
    %6 = vector.load %arg3[%c0_5, %c0_6, %c0_7] : memref<1x8x128xbf16, #tpu.memory_space<vmem>>, vector<1x8x32xbf16>
    %7 = vector.shape_cast %6 : vector<1x8x32xbf16> to vector<8x32xbf16>
    %c0_8 = arith.constant 0 : index
    %c0_9 = arith.constant 0 : index
    %c0_10 = arith.constant 0 : index
    %8 = vector.load %arg4[%c0_8, %c0_9, %c0_10] : memref<1x8x128xbf16, #tpu.memory_space<vmem>>, vector<1x8x32xbf16>
    %9 = vector.shape_cast %8 : vector<1x8x32xbf16> to vector<8x32xbf16>
    "tpu.trace_start"() <{level = 10 : i32, message = "qd,kd->qk"}> : () -> ()
    %cst_11 = arith.constant dense<0.000000e+00> : vector<8x8xf32>
    %10 = tpu.matmul %5, %7, %cst_11 {dimension_numbers = #tpu.dot_dimension_numbers<[1], [1], [0], [0], [0, 0, 1, 0], [], []>} : vector<8x32xbf16>, vector<8x32xbf16>, vector<8x8xf32> -> vector<8x8xf32>
    "tpu.trace_stop"() : () -> ()
    %cst_12 = arith.constant 0.176776692 : f32
    %11 = vector.broadcast %cst_12 : f32 to vector<8x8xf32>
    %12 = arith.mulf %10, %11 : vector<8x8xf32>
    %cst_13 = arith.constant -1.000000e+09 : f32
    %13 = vector.shape_cast %3 : vector<1x8xi1> to vector<1x8xi1>
    %14 = vector.broadcast %13 : vector<1x8xi1> to vector<8x8xi1>
    %15 = vector.broadcast %cst_13 : f32 to vector<8x8xf32>
    %16 = arith.select %14, %12, %15 : vector<8x8xi1>, vector<8x8xf32>
    %cst_14 = arith.constant dense<0xFF800000> : vector<8xf32>
    %17 = vector.multi_reduction <maximumf>, %16, %cst_14 [1] : vector<8x8xf32> to vector<8xf32>
    %18 = vector.shape_cast %17 : vector<8xf32> to vector<8x1xf32>
    %19 = vector.broadcast %18 : vector<8x1xf32> to vector<8x8xf32>
    %20 = arith.subf %16, %19 : vector<8x8xf32>
    %21 = math.exp %20 : vector<8x8xf32>
    %cst_15 = arith.constant dense<0.000000e+00> : vector<8xf32>
    %22 = vector.multi_reduction <add>, %21, %cst_15 [1] : vector<8x8xf32> to vector<8xf32>
    %23 = vector.shape_cast %22 : vector<8xf32> to vector<8x1xf32>
    %24 = tpu.reciprocal %23 {approx = true} : vector<8x1xf32> -> vector<8x1xf32>
    %25 = vector.broadcast %24 : vector<8x1xf32> to vector<8x8xf32>
    %26 = arith.mulf %21, %25 : vector<8x8xf32>
    %27 = arith.truncf %26 : vector<8x8xf32> to vector<8x8xbf16>
    %cst_16 = arith.constant dense<0.000000e+00> : vector<8x32xf32>
    %28 = tpu.matmul %27, %9, %cst_16 {dimension_numbers = #tpu.dot_dimension_numbers<[1], [0], [0], [1], [0, 0, 1, 1], [], []>} : vector<8x8xbf16>, vector<8x32xbf16>, vector<8x32xf32> -> vector<8x32xf32>
    %29 = arith.truncf %28 : vector<8x32xf32> to vector<8x32xbf16>
    %c0_17 = arith.constant 0 : index
    %c0_18 = arith.constant 0 : index
    %c0_19 = arith.constant 0 : index
    %30 = vector.load %arg6[%c0_17, %c0_18, %c0_19] : memref<1x8x128xbf16, #tpu.memory_space<vmem>>, vector<1x8x32xbf16>
    %31 = vector.shape_cast %30 : vector<1x8x32xbf16> to vector<8x32xbf16>
    %32 = vector.shape_cast %29 : vector<8x32xbf16> to vector<1x8x32xbf16>
    tpu.vector_store %arg6[%c0_17, %c0_18, %c0_19], %32 {strides = array<i32>} : memref<1x8x128xbf16, #tpu.memory_space<vmem>>, vector<1x8x32xbf16>,
    %c0_20 = arith.constant 0 : index
    %c0_21 = arith.constant 0 : index
    %c32 = arith.constant 32 : index
    %33 = vector.load %arg2[%c0_20, %c0_21, %c32] : memref<1x8x128xbf16, #tpu.memory_space<vmem>>, vector<1x8x32xbf16>
    %34 = vector.shape_cast %33 : vector<1x8x32xbf16> to vector<8x32xbf16>
    %c0_22 = arith.constant 0 : index
    %c0_23 = arith.constant 0 : index
    %c32_24 = arith.constant 32 : index
    %35 = vector.load %arg3[%c0_22, %c0_23, %c32_24] : memref<1x8x128xbf16, #tpu.memory_space<vmem>>, vector<1x8x32xbf16>
    %36 = vector.shape_cast %35 : vector<1x8x32xbf16> to vector<8x32xbf16>
    %c0_25 = arith.constant 0 : index
    %c0_26 = arith.constant 0 : index
    %c32_27 = arith.constant 32 : index
    %37 = vector.load %arg4[%c0_25, %c0_26, %c32_27] : memref<1x8x128xbf16, #tpu.memory_space<vmem>>, vector<1x8x32xbf16>
    %38 = vector.shape_cast %37 : vector<1x8x32xbf16> to vector<8x32xbf16>
    "tpu.trace_start"() <{level = 10 : i32, message = "qd,kd->qk"}> : () -> ()
    %cst_28 = arith.constant dense<0.000000e+00> : vector<8x8xf32>
    %39 = tpu.matmul %34, %36, %cst_28 {dimension_numbers = #tpu.dot_dimension_numbers<[1], [1], [0], [0], [0, 0, 1, 0], [], []>} : vector<8x32xbf16>, vector<8x32xbf16>, vector<8x8xf32> -> vector<8x8xf32>
    "tpu.trace_stop"() : () -> ()
    %cst_29 = arith.constant 0.176776692 : f32
    %40 = vector.broadcast %cst_29 : f32 to vector<8x8xf32>
    %41 = arith.mulf %39, %40 : vector<8x8xf32>
    %cst_30 = arith.constant -1.000000e+09 : f32
    %42 = vector.shape_cast %3 : vector<1x8xi1> to vector<1x8xi1>
    %43 = vector.broadcast %42 : vector<1x8xi1> to vector<8x8xi1>
    %44 = vector.broadcast %cst_30 : f32 to vector<8x8xf32>
    %45 = arith.select %43, %41, %44 : vector<8x8xi1>, vector<8x8xf32>
    %cst_31 = arith.constant dense<0xFF800000> : vector<8xf32>
    %46 = vector.multi_reduction <maximumf>, %45, %cst_31 [1] : vector<8x8xf32> to vector<8xf32>
    %47 = vector.shape_cast %46 : vector<8xf32> to vector<8x1xf32>
    %48 = vector.broadcast %47 : vector<8x1xf32> to vector<8x8xf32>
    %49 = arith.subf %45, %48 : vector<8x8xf32>
    %50 = math.exp %49 : vector<8x8xf32>
    %cst_32 = arith.constant dense<0.000000e+00> : vector<8xf32>
    %51 = vector.multi_reduction <add>, %50, %cst_32 [1] : vector<8x8xf32> to vector<8xf32>
    %52 = vector.shape_cast %51 : vector<8xf32> to vector<8x1xf32>
    %53 = tpu.reciprocal %52 {approx = true} : vector<8x1xf32> -> vector<8x1xf32>
    %54 = vector.broadcast %53 : vector<8x1xf32> to vector<8x8xf32>
    %55 = arith.mulf %50, %54 : vector<8x8xf32>
    %56 = arith.truncf %55 : vector<8x8xf32> to vector<8x8xbf16>
    %cst_33 = arith.constant dense<0.000000e+00> : vector<8x32xf32>
    %57 = tpu.matmul %56, %38, %cst_33 {dimension_numbers = #tpu.dot_dimension_numbers<[1], [0], [0], [1], [0, 0, 1, 1], [], []>} : vector<8x8xbf16>, vector<8x32xbf16>, vector<8x32xf32> -> vector<8x32xf32>
    %58 = arith.truncf %57 : vector<8x32xf32> to vector<8x32xbf16>
    %c0_34 = arith.constant 0 : index
    %c0_35 = arith.constant 0 : index
    %c32_36 = arith.constant 32 : index
    %59 = vector.load %arg6[%c0_34, %c0_35, %c32_36] : memref<1x8x128xbf16, #tpu.memory_space<vmem>>, vector<1x8x32xbf16>
    %60 = vector.shape_cast %59 : vector<1x8x32xbf16> to vector<8x32xbf16>
    %61 = vector.shape_cast %58 : vector<8x32xbf16> to vector<1x8x32xbf16>
    tpu.vector_store %arg6[%c0_34, %c0_35, %c32_36], %61 {strides = array<i32>} : memref<1x8x128xbf16, #tpu.memory_space<vmem>>, vector<1x8x32xbf16>,
    %c0_37 = arith.constant 0 : index
    %c0_38 = arith.constant 0 : index
    %c64 = arith.constant 64 : index
    %62 = vector.load %arg2[%c0_37, %c0_38, %c64] : memref<1x8x128xbf16, #tpu.memory_space<vmem>>, vector<1x8x32xbf16>
    %63 = vector.shape_cast %62 : vector<1x8x32xbf16> to vector<8x32xbf16>
    %c0_39 = arith.constant 0 : index
    %c0_40 = arith.constant 0 : index
    %c64_41 = arith.constant 64 : index
    %64 = vector.load %arg3[%c0_39, %c0_40, %c64_41] : memref<1x8x128xbf16, #tpu.memory_space<vmem>>, vector<1x8x32xbf16>
    %65 = vector.shape_cast %64 : vector<1x8x32xbf16> to vector<8x32xbf16>
    %c0_42 = arith.constant 0 : index
    %c0_43 = arith.constant 0 : index
    %c64_44 = arith.constant 64 : index
    %66 = vector.load %arg4[%c0_42, %c0_43, %c64_44] : memref<1x8x128xbf16, #tpu.memory_space<vmem>>, vector<1x8x32xbf16>
    %67 = vector.shape_cast %66 : vector<1x8x32xbf16> to vector<8x32xbf16>
    "tpu.trace_start"() <{level = 10 : i32, message = "qd,kd->qk"}> : () -> ()
    %cst_45 = arith.constant dense<0.000000e+00> : vector<8x8xf32>
    %68 = tpu.matmul %63, %65, %cst_45 {dimension_numbers = #tpu.dot_dimension_numbers<[1], [1], [0], [0], [0, 0, 1, 0], [], []>} : vector<8x32xbf16>, vector<8x32xbf16>, vector<8x8xf32> -> vector<8x8xf32>
    "tpu.trace_stop"() : () -> ()
    %cst_46 = arith.constant 0.176776692 : f32
    %69 = vector.broadcast %cst_46 : f32 to vector<8x8xf32>
    %70 = arith.mulf %68, %69 : vector<8x8xf32>
    %cst_47 = arith.constant -1.000000e+09 : f32
    %71 = vector.shape_cast %3 : vector<1x8xi1> to vector<1x8xi1>
    %72 = vector.broadcast %71 : vector<1x8xi1> to vector<8x8xi1>
    %73 = vector.broadcast %cst_47 : f32 to vector<8x8xf32>
    %74 = arith.select %72, %70, %73 : vector<8x8xi1>, vector<8x8xf32>
    %cst_48 = arith.constant dense<0xFF800000> : vector<8xf32>
    %75 = vector.multi_reduction <maximumf>, %74, %cst_48 [1] : vector<8x8xf32> to vector<8xf32>
    %76 = vector.shape_cast %75 : vector<8xf32> to vector<8x1xf32>
    %77 = vector.broadcast %76 : vector<8x1xf32> to vector<8x8xf32>
    %78 = arith.subf %74, %77 : vector<8x8xf32>
    %79 = math.exp %78 : vector<8x8xf32>
    %cst_49 = arith.constant dense<0.000000e+00> : vector<8xf32>
    %80 = vector.multi_reduction <add>, %79, %cst_49 [1] : vector<8x8xf32> to vector<8xf32>
    %81 = vector.shape_cast %80 : vector<8xf32> to vector<8x1xf32>
    %82 = tpu.reciprocal %81 {approx = true} : vector<8x1xf32> -> vector<8x1xf32>
    %83 = vector.broadcast %82 : vector<8x1xf32> to vector<8x8xf32>
    %84 = arith.mulf %79, %83 : vector<8x8xf32>
    %85 = arith.truncf %84 : vector<8x8xf32> to vector<8x8xbf16>
    %cst_50 = arith.constant dense<0.000000e+00> : vector<8x32xf32>
    %86 = tpu.matmul %85, %67, %cst_50 {dimension_numbers = #tpu.dot_dimension_numbers<[1], [0], [0], [1], [0, 0, 1, 1], [], []>} : vector<8x8xbf16>, vector<8x32xbf16>, vector<8x32xf32> -> vector<8x32xf32>
    %87 = arith.truncf %86 : vector<8x32xf32> to vector<8x32xbf16>
    %c0_51 = arith.constant 0 : index
    %c0_52 = arith.constant 0 : index
    %c64_53 = arith.constant 64 : index
    %88 = vector.load %arg6[%c0_51, %c0_52, %c64_53] : memref<1x8x128xbf16, #tpu.memory_space<vmem>>, vector<1x8x32xbf16>
    %89 = vector.shape_cast %88 : vector<1x8x32xbf16> to vector<8x32xbf16>
    %90 = vector.shape_cast %87 : vector<8x32xbf16> to vector<1x8x32xbf16>
    tpu.vector_store %arg6[%c0_51, %c0_52, %c64_53], %90 {strides = array<i32>} : memref<1x8x128xbf16, #tpu.memory_space<vmem>>, vector<1x8x32xbf16>,
    %c0_54 = arith.constant 0 : index
    %c0_55 = arith.constant 0 : index
    %c96 = arith.constant 96 : index
    %91 = vector.load %arg2[%c0_54, %c0_55, %c96] : memref<1x8x128xbf16, #tpu.memory_space<vmem>>, vector<1x8x32xbf16>
    %92 = vector.shape_cast %91 : vector<1x8x32xbf16> to vector<8x32xbf16>
    %c0_56 = arith.constant 0 : index
    %c0_57 = arith.constant 0 : index
    %c96_58 = arith.constant 96 : index
    %93 = vector.load %arg3[%c0_56, %c0_57, %c96_58] : memref<1x8x128xbf16, #tpu.memory_space<vmem>>, vector<1x8x32xbf16>
    %94 = vector.shape_cast %93 : vector<1x8x32xbf16> to vector<8x32xbf16>
    %c0_59 = arith.constant 0 : index
    %c0_60 = arith.constant 0 : index
    %c96_61 = arith.constant 96 : index
    %95 = vector.load %arg4[%c0_59, %c0_60, %c96_61] : memref<1x8x128xbf16, #tpu.memory_space<vmem>>, vector<1x8x32xbf16>
    %96 = vector.shape_cast %95 : vector<1x8x32xbf16> to vector<8x32xbf16>
    "tpu.trace_start"() <{level = 10 : i32, message = "qd,kd->qk"}> : () -> ()
    %cst_62 = arith.constant dense<0.000000e+00> : vector<8x8xf32>
    %97 = tpu.matmul %92, %94, %cst_62 {dimension_numbers = #tpu.dot_dimension_numbers<[1], [1], [0], [0], [0, 0, 1, 0], [], []>} : vector<8x32xbf16>, vector<8x32xbf16>, vector<8x8xf32> -> vector<8x8xf32>
    "tpu.trace_stop"() : () -> ()
    %cst_63 = arith.constant 0.176776692 : f32
    %98 = vector.broadcast %cst_63 : f32 to vector<8x8xf32>
    %99 = arith.mulf %97, %98 : vector<8x8xf32>
    %cst_64 = arith.constant -1.000000e+09 : f32
    %100 = vector.shape_cast %3 : vector<1x8xi1> to vector<1x8xi1>
    %101 = vector.broadcast %100 : vector<1x8xi1> to vector<8x8xi1>
    %102 = vector.broadcast %cst_64 : f32 to vector<8x8xf32>
    %103 = arith.select %101, %99, %102 : vector<8x8xi1>, vector<8x8xf32>
    %cst_65 = arith.constant dense<0xFF800000> : vector<8xf32>
    %104 = vector.multi_reduction <maximumf>, %103, %cst_65 [1] : vector<8x8xf32> to vector<8xf32>
    %105 = vector.shape_cast %104 : vector<8xf32> to vector<8x1xf32>
    %106 = vector.broadcast %105 : vector<8x1xf32> to vector<8x8xf32>
    %107 = arith.subf %103, %106 : vector<8x8xf32>
    %108 = math.exp %107 : vector<8x8xf32>
    %cst_66 = arith.constant dense<0.000000e+00> : vector<8xf32>
    %109 = vector.multi_reduction <add>, %108, %cst_66 [1] : vector<8x8xf32> to vector<8xf32>
    %110 = vector.shape_cast %109 : vector<8xf32> to vector<8x1xf32>
    %111 = tpu.reciprocal %110 {approx = true} : vector<8x1xf32> -> vector<8x1xf32>
    %112 = vector.broadcast %111 : vector<8x1xf32> to vector<8x8xf32>
    %113 = arith.mulf %108, %112 : vector<8x8xf32>
    %114 = arith.truncf %113 : vector<8x8xf32> to vector<8x8xbf16>
    %cst_67 = arith.constant dense<0.000000e+00> : vector<8x32xf32>
    %115 = tpu.matmul %114, %96, %cst_67 {dimension_numbers = #tpu.dot_dimension_numbers<[1], [0], [0], [1], [0, 0, 1, 1], [], []>} : vector<8x8xbf16>, vector<8x32xbf16>, vector<8x32xf32> -> vector<8x32xf32>
    %116 = arith.truncf %115 : vector<8x32xf32> to vector<8x32xbf16>
    %c0_68 = arith.constant 0 : index
    %c0_69 = arith.constant 0 : index
    %c96_70 = arith.constant 96 : index
    %117 = vector.load %arg6[%c0_68, %c0_69, %c96_70] : memref<1x8x128xbf16, #tpu.memory_space<vmem>>, vector<1x8x32xbf16>
    %118 = vector.shape_cast %117 : vector<1x8x32xbf16> to vector<8x32xbf16>
    %119 = vector.shape_cast %116 : vector<8x32xbf16> to vector<1x8x32xbf16>
    tpu.vector_store %arg6[%c0_68, %c0_69, %c96_70], %119 {strides = array<i32>} : memref<1x8x128xbf16, #tpu.memory_space<vmem>>, vector<1x8x32xbf16>,
    return
  }
  func.func @transform_0(%arg0: i32, %arg1: i32) -> (i32, i32, i32) {
    %c0_i32 = arith.constant 0 : i32
    %c0_i32_0 = arith.constant 0 : i32
    return %arg0, %arg1, %c0_i32 : i32, i32, i32
  }
  func.func @transform_1(%arg0: i32, %arg1: i32) -> (i32, i32, i32) {
    %c0_i32 = arith.constant 0 : i32
    %c0_i32_0 = arith.constant 0 : i32
    %c0_i32_1 = arith.constant 0 : i32
    return %arg0, %c0_i32, %c0_i32_0 : i32, i32, i32
  }
  func.func @transform_2(%arg0: i32, %arg1: i32) -> (i32, i32, i32) {
    %c0_i32 = arith.constant 0 : i32
    %c1_i32 = arith.constant 1 : i32
    %c0_i32_0 = arith.constant 0 : i32
    return %arg0, %c0_i32, %c1_i32 : i32, i32, i32
  }
  func.func @transform_3(%arg0: i32, %arg1: i32) -> (i32, i32, i32) {
    %c0_i32 = arith.constant 0 : i32
    %c0_i32_0 = arith.constant 0 : i32
    %c0_i32_1 = arith.constant 0 : i32
    return %arg0, %c0_i32, %c0_i32_0 : i32, i32, i32
  }
  func.func @transform_4(%arg0: i32, %arg1: i32) -> (i32, i32, i32) {
    %c0_i32 = arith.constant 0 : i32
    %c0_i32_0 = arith.constant 0 : i32
    return %arg0, %arg1, %c0_i32 : i32, i32, i32
  }
}

module attributes {stable_mosaic.version = 11 : i64} {
  func.func @_linear_kernel(%arg0: i32, %arg1: i32, %arg2: i32, %arg3: memref<16x128xbf16, #tpu.memory_space<vmem>>, %arg4: memref<128x128xbf16, #tpu.memory_space<vmem>>, %arg5: memref<1x128xf32, #tpu.memory_space<vmem>>, %arg6: memref<16x128xbf16, #tpu.memory_space<vmem>>, %arg7: memref<16x128xf32, #tpu.memory_space<vmem>>) attributes {dimension_semantics = [#tpu.dimension_semantics<parallel>, #tpu.dimension_semantics<parallel>, #tpu.dimension_semantics<arbitrary>], iteration_bounds = array<i64: 1, 2, 1>, scalar_prefetch = 0 : i64, scratch_operands = 1 : i64, tpu.core_type = #tpu.core_type<tc>, window_params = [{transform_indices = @transform_0, window_bounds = array<i64: 16, 128>}, {transform_indices = @transform_1, window_bounds = array<i64: 128, 128>}, {transform_indices = @transform_2, window_bounds = array<i64: 1, 128>}, {transform_indices = @transform_3, window_bounds = array<i64: 16, 128>}]} {
    %c0_i32 = arith.constant 0 : i32
    %0 = arith.cmpi eq, %arg2, %c0_i32 : i32
    %1 = arith.extui %0 : i1 to i32
    %c0_i32_0 = arith.constant 0 : i32
    %2 = arith.cmpi ne, %1, %c0_i32_0 : i32
    scf.if %2 {
      %cst_10 = arith.constant 0.000000e+00 : f32
      %12 = vector.broadcast %cst_10 : f32 to vector<16x128xf32>
      %c0_11 = arith.constant 0 : index
      %c0_12 = arith.constant 0 : index
      %13 = vector.load %arg7[%c0_11, %c0_12] : memref<16x128xf32, #tpu.memory_space<vmem>>, vector<16x128xf32>
      tpu.vector_store %arg7[%c0_11, %c0_12], %12 {strides = array<i32>} : memref<16x128xf32, #tpu.memory_space<vmem>>, vector<16x128xf32>,
    } else {
    }
    %c0 = arith.constant 0 : index
    %c0_1 = arith.constant 0 : index
    %3 = vector.load %arg7[%c0, %c0_1] : memref<16x128xf32, #tpu.memory_space<vmem>>, vector<16x128xf32>
    %c0_2 = arith.constant 0 : index
    %c0_3 = arith.constant 0 : index
    %4 = vector.load %arg3[%c0_2, %c0_3] : memref<16x128xbf16, #tpu.memory_space<vmem>>, vector<16x128xbf16>
    %c0_4 = arith.constant 0 : index
    %c0_5 = arith.constant 0 : index
    %5 = vector.load %arg4[%c0_4, %c0_5] : memref<128x128xbf16, #tpu.memory_space<vmem>>, vector<128x128xbf16>
    %cst = arith.constant dense<0.000000e+00> : vector<16x128xf32>
    %6 = tpu.matmul %4, %5, %cst {dimension_numbers = #tpu.dot_dimension_numbers<[1], [0], [0], [1], [0, 0, 1, 1], [], []>} : vector<16x128xbf16>, vector<128x128xbf16>, vector<16x128xf32> -> vector<16x128xf32>
    %7 = arith.addf %3, %6 : vector<16x128xf32>
    %c0_6 = arith.constant 0 : index
    %c0_7 = arith.constant 0 : index
    %8 = vector.load %arg7[%c0_6, %c0_7] : memref<16x128xf32, #tpu.memory_space<vmem>>, vector<16x128xf32>
    tpu.vector_store %arg7[%c0_6, %c0_7], %7 {strides = array<i32>} : memref<16x128xf32, #tpu.memory_space<vmem>>, vector<16x128xf32>,
    %c0_i32_8 = arith.constant 0 : i32
    %9 = arith.cmpi eq, %arg2, %c0_i32_8 : i32
    %10 = arith.extui %9 : i1 to i32
    %c0_i32_9 = arith.constant 0 : i32
    %11 = arith.cmpi ne, %10, %c0_i32_9 : i32
    scf.if %11 {
      %c0_10 = arith.constant 0 : index
      %c0_11 = arith.constant 0 : index
      %12 = vector.load %arg7[%c0_10, %c0_11] : memref<16x128xf32, #tpu.memory_space<vmem>>, vector<16x128xf32>
      %c0_12 = arith.constant 0 : index
      %c0_13 = arith.constant 0 : index
      %13 = vector.load %arg5[%c0_12, %c0_13] : memref<1x128xf32, #tpu.memory_space<vmem>>, vector<1x128xf32>
      %14 = vector.broadcast %13 : vector<1x128xf32> to vector<16x128xf32>
      %15 = arith.addf %12, %14 : vector<16x128xf32>
      %cst_14 = arith.constant 0.000000e+00 : f32
      %16 = vector.broadcast %cst_14 : f32 to vector<16x128xf32>
      %17 = arith.maximumf %15, %16 : vector<16x128xf32>
      %18 = arith.truncf %17 : vector<16x128xf32> to vector<16x128xbf16>
      %c0_15 = arith.constant 0 : index
      %c0_16 = arith.constant 0 : index
      %19 = vector.load %arg6[%c0_15, %c0_16] : memref<16x128xbf16, #tpu.memory_space<vmem>>, vector<16x128xbf16>
      tpu.vector_store %arg6[%c0_15, %c0_16], %18 {strides = array<i32>} : memref<16x128xbf16, #tpu.memory_space<vmem>>, vector<16x128xbf16>,
    } else {
    }
    return
  }
  func.func @transform_0(%arg0: i32, %arg1: i32, %arg2: i32) -> (i32, i32) {
    %c0_i32 = arith.constant 0 : i32
    return %arg0, %arg2 : i32, i32
  }
  func.func @transform_1(%arg0: i32, %arg1: i32, %arg2: i32) -> (i32, i32) {
    %c0_i32 = arith.constant 0 : i32
    return %arg2, %arg1 : i32, i32
  }
  func.func @transform_2(%arg0: i32, %arg1: i32, %arg2: i32) -> (i32, i32) {
    %c0_i32 = arith.constant 0 : i32
    %c0_i32_0 = arith.constant 0 : i32
    return %c0_i32, %arg1 : i32, i32
  }
  func.func @transform_3(%arg0: i32, %arg1: i32, %arg2: i32) -> (i32, i32) {
    %c0_i32 = arith.constant 0 : i32
    return %arg0, %arg1 : i32, i32
  }
}

module attributes {stable_mosaic.version = 11 : i64} {
  func.func @_linear_kernel(%arg0: i32, %arg1: i32, %arg2: i32, %arg3: memref<16x128xbf16, #tpu.memory_space<vmem>>, %arg4: memref<128x64xbf16, #tpu.memory_space<vmem>>, %arg5: memref<1x64xf32, #tpu.memory_space<vmem>>, %arg6: memref<16x64xf32, #tpu.memory_space<vmem>>, %arg7: memref<16x64xf32, #tpu.memory_space<vmem>>) attributes {dimension_semantics = [#tpu.dimension_semantics<parallel>, #tpu.dimension_semantics<parallel>, #tpu.dimension_semantics<arbitrary>], iteration_bounds = array<i64: 1, 1, 1>, scalar_prefetch = 0 : i64, scratch_operands = 1 : i64, tpu.core_type = #tpu.core_type<tc>, window_params = [{transform_indices = @transform_0, window_bounds = array<i64: 16, 128>}, {transform_indices = @transform_1, window_bounds = array<i64: 128, 64>}, {transform_indices = @transform_2, window_bounds = array<i64: 1, 64>}, {transform_indices = @transform_3, window_bounds = array<i64: 16, 64>}]} {
    %c0_i32 = arith.constant 0 : i32
    %0 = arith.cmpi eq, %arg2, %c0_i32 : i32
    %1 = arith.extui %0 : i1 to i32
    %c0_i32_0 = arith.constant 0 : i32
    %2 = arith.cmpi ne, %1, %c0_i32_0 : i32
    scf.if %2 {
      %cst_10 = arith.constant 0.000000e+00 : f32
      %12 = vector.broadcast %cst_10 : f32 to vector<16x64xf32>
      %c0_11 = arith.constant 0 : index
      %c0_12 = arith.constant 0 : index
      %13 = vector.load %arg7[%c0_11, %c0_12] : memref<16x64xf32, #tpu.memory_space<vmem>>, vector<16x64xf32>
      tpu.vector_store %arg7[%c0_11, %c0_12], %12 {strides = array<i32>} : memref<16x64xf32, #tpu.memory_space<vmem>>, vector<16x64xf32>,
    } else {
    }
    %c0 = arith.constant 0 : index
    %c0_1 = arith.constant 0 : index
    %3 = vector.load %arg7[%c0, %c0_1] : memref<16x64xf32, #tpu.memory_space<vmem>>, vector<16x64xf32>
    %c0_2 = arith.constant 0 : index
    %c0_3 = arith.constant 0 : index
    %4 = vector.load %arg3[%c0_2, %c0_3] : memref<16x128xbf16, #tpu.memory_space<vmem>>, vector<16x128xbf16>
    %c0_4 = arith.constant 0 : index
    %c0_5 = arith.constant 0 : index
    %5 = vector.load %arg4[%c0_4, %c0_5] : memref<128x64xbf16, #tpu.memory_space<vmem>>, vector<128x64xbf16>
    %cst = arith.constant dense<0.000000e+00> : vector<16x64xf32>
    %6 = tpu.matmul %4, %5, %cst {dimension_numbers = #tpu.dot_dimension_numbers<[1], [0], [0], [1], [0, 0, 1, 1], [], []>} : vector<16x128xbf16>, vector<128x64xbf16>, vector<16x64xf32> -> vector<16x64xf32>
    %7 = arith.addf %3, %6 : vector<16x64xf32>
    %c0_6 = arith.constant 0 : index
    %c0_7 = arith.constant 0 : index
    %8 = vector.load %arg7[%c0_6, %c0_7] : memref<16x64xf32, #tpu.memory_space<vmem>>, vector<16x64xf32>
    tpu.vector_store %arg7[%c0_6, %c0_7], %7 {strides = array<i32>} : memref<16x64xf32, #tpu.memory_space<vmem>>, vector<16x64xf32>,
    %c0_i32_8 = arith.constant 0 : i32
    %9 = arith.cmpi eq, %arg2, %c0_i32_8 : i32
    %10 = arith.extui %9 : i1 to i32
    %c0_i32_9 = arith.constant 0 : i32
    %11 = arith.cmpi ne, %10, %c0_i32_9 : i32
    scf.if %11 {
      %c0_10 = arith.constant 0 : index
      %c0_11 = arith.constant 0 : index
      %12 = vector.load %arg7[%c0_10, %c0_11] : memref<16x64xf32, #tpu.memory_space<vmem>>, vector<16x64xf32>
      %c0_12 = arith.constant 0 : index
      %c0_13 = arith.constant 0 : index
      %13 = vector.load %arg5[%c0_12, %c0_13] : memref<1x64xf32, #tpu.memory_space<vmem>>, vector<1x64xf32>
      %14 = vector.broadcast %13 : vector<1x64xf32> to vector<16x64xf32>
      %15 = arith.addf %12, %14 : vector<16x64xf32>
      %c0_14 = arith.constant 0 : index
      %c0_15 = arith.constant 0 : index
      %16 = vector.load %arg6[%c0_14, %c0_15] : memref<16x64xf32, #tpu.memory_space<vmem>>, vector<16x64xf32>
      tpu.vector_store %arg6[%c0_14, %c0_15], %15 {strides = array<i32>} : memref<16x64xf32, #tpu.memory_space<vmem>>, vector<16x64xf32>,
    } else {
    }
    return
  }
  func.func @transform_0(%arg0: i32, %arg1: i32, %arg2: i32) -> (i32, i32) {
    %c0_i32 = arith.constant 0 : i32
    return %arg0, %arg2 : i32, i32
  }
  func.func @transform_1(%arg0: i32, %arg1: i32, %arg2: i32) -> (i32, i32) {
    %c0_i32 = arith.constant 0 : i32
    return %arg2, %arg1 : i32, i32
  }
  func.func @transform_2(%arg0: i32, %arg1: i32, %arg2: i32) -> (i32, i32) {
    %c0_i32 = arith.constant 0 : i32
    %c0_i32_0 = arith.constant 0 : i32
    return %c0_i32, %arg1 : i32, i32
  }
  func.func @transform_3(%arg0: i32, %arg1: i32, %arg2: i32) -> (i32, i32) {
    %c0_i32 = arith.constant 0 : i32
    return %arg0, %arg1 : i32, i32
  }
}

</mosaic_0001>

<bundles_post_ra>
// kernel: closed_call.44
= control target key start
LH: loop header
LB: loop body
LE: loop exit
PB: predicated region body
PF: predicated region fallthrough
CT: control target
= control target key end

     0   :  { %s779_s12 = smov 0   ;;  %s781_s13 = smov 0   ;;  %s877_s0 = inlined_call_operand.vmem [shape: bf16[16,128], index: 0, kind: input, shape index: {}]   ;;  %s878_s1 = inlined_call_operand.vmem [shape: bf16[128,256], index: 1, kind: input, shape index: {}]   ;;  %s879_s2 = inlined_call_operand.vmem [shape: f32[1,256], index: 2, kind: input, shape index: {}]   ;;  %s880_s3 = inlined_call_operand.vmem [shape: bf16[16,256], index: 3, kind: output, shape index: {}]  }
   0x1   :  { %s783_s14 = smov 0   ;;  %s785_s15 = smov 0  }
   0x2   :  { %s787_s16 = smov 0  }
   0x3 LB: > { %s28_s17 = sadd.s32 1, %s753_s15  ;;  %s614_s18 = sadd.s32 4294967295, %s757_s16   ;;  %s757_s16 = sphi %s787_s16, %s13_s16   ;;  %s753_s15 = sphi %s785_s15, %s885_s15   ;;  %s749_s14 = sphi %s783_s14, %s884_s14   ;;  %s745_s13 = sphi %s781_s13, %s883_s13   ;;  %s741_s12 = sphi %s779_s12, %s882_s12  }
   0x4   : > { %p30_p0 = scmp.ge.s32.totalorder %s28_s17, 2  ;;  %p76_p1 = scmp.ne.s32.totalorder %s745_s13, %s741_s12 }
   0x5   : > { %p77_p2 = scmp.eq.s32.totalorder %s757_s16, 0  ;;  %p134_p4 = scmp.eq.s32.totalorder %s614_s18, 1 }
   0x6   : > { %s887_s17 = smov (%p30_p0, %s28_s17), 0  ;;  %s69_s20 = sadd.s32 1, %s745_s13 }
   0x7   : > { %p78_p3 = por %p77_p2, %p76_p1  ;;  %s65_s19 = ssub.s32 %s753_s15, %s887_s17 }
   0x8   : > { %p67_p5 = scmp.eq.s32.totalorder %s65_s19, 0  ;;  %p814_p6 = por %p134_p4, %p76_p1 }
   0x9   : > { %p618_p7 = scmp.ge.s32.totalorder %s757_s16, 2 }
   0xa   : > { %s819_s22 = scalar_select %p67_p5, %s745_s13, %s69_s20  }
   0xb   : > { %168 = sbr.rel (%p618_p7) target bundleno = 36 (0x24), region = 20 }
  0x10   : > { %171 = sbr.rel (!%p78_p3) target bundleno = 36 (0x24), region = 24  ;;  %s173_s23 = sand.u32 (%p78_p3), 1, %s745_s13  }
  0x11   : > { %s620_s24 = sshll.u32 (%p78_p3), %s753_s15, 2  ;;  %s619_s25 = sshll.u32 (%p78_p3), %s173_s23, 6 }
  0x12   : > { %s827_s28 = scalar_lea.vmem (%p78_p3), %s878_s1, %s620_s24  ;;  %s175_s29 = scalar_lea.vmem (%p78_p3), [#allocation3], %s619_s25 }
  0x13   : > { %v197_v0 = vld [vmem:[%s827_s28] sm:$0xf] (%p78_p3)  ;;  %v199_v1 = vld [vmem:[%s827_s28 + $0x8] sm:$0xf] (%p78_p3)  ;;  %v201_v2 = vld [vmem:[%s827_s28 + $0x10] sm:$0xf] (%p78_p3) }
  0x14   : > { %198 = vst [vmem:[%s175_s29] sm:$0xf] (%p78_p3), %v197_v0  ;;  %v203_v3 = vld [vmem:[%s827_s28 + $0x18] sm:$0xf] (%p78_p3)  ;;  %v205_v4 = vld [vmem:[%s827_s28 + $0x20] sm:$0xf] (%p78_p3) }
  0x15   : > { %200 = vst [vmem:[%s175_s29 + $0x4] sm:$0xf] %v199_v1  ;;  %v207_v5 = vld [vmem:[%s827_s28 + $0x28] sm:$0xf]  ;;  %v209_v6 = vld [vmem:[%s827_s28 + $0x30] sm:$0xf] }
  0x16   : > { %202 = vst [vmem:[%s175_s29 + $0x8] sm:$0xf] %v201_v2  ;;  %v211_v7 = vld [vmem:[%s827_s28 + $0x38] sm:$0xf]  ;;  %v213_v8 = vld [vmem:[%s827_s28 + $0x40] sm:$0xf] }
  0x17   : > { %204 = vst [vmem:[%s175_s29 + $0xc] sm:$0xf] %v203_v3  ;;  %v215_v9 = vld [vmem:[%s827_s28 + $0x48] sm:$0xf]  ;;  %v217_v10 = vld [vmem:[%s827_s28 + $0x50] sm:$0xf] }
  0x18   : > { %206 = vst [vmem:[%s175_s29 + $0x10] sm:$0xf] %v205_v4  ;;  %v219_v11 = vld [vmem:[%s827_s28 + $0x58] sm:$0xf]  ;;  %v221_v12 = vld [vmem:[%s827_s28 + $0x60] sm:$0xf] }
  0x19   : > { %208 = vst [vmem:[%s175_s29 + $0x14] sm:$0xf] %v207_v5  ;;  %v223_v13 = vld [vmem:[%s827_s28 + $0x68] sm:$0xf]  ;;  %v225_v14 = vld [vmem:[%s827_s28 + $0x70] sm:$0xf] }
  0x1a   : > { %210 = vst [vmem:[%s175_s29 + $0x18] sm:$0xf] %v209_v6  ;;  %v227_v15 = vld [vmem:[%s827_s28 + $0x78] sm:$0xf] }
  0x1b   : > { %212 = vst [vmem:[%s175_s29 + $0x1c] sm:$0xf] %v211_v7 }
  0x1c   : > { %214 = vst [vmem:[%s175_s29 + $0x20] sm:$0xf] %v213_v8 }
  0x1d   : > { %216 = vst [vmem:[%s175_s29 + $0x24] sm:$0xf] %v215_v9 }
  0x1e   : > { %218 = vst [vmem:[%s175_s29 + $0x28] sm:$0xf] %v217_v10 }
  0x1f   : > { %220 = vst [vmem:[%s175_s29 + $0x2c] sm:$0xf] %v219_v11 }
  0x20   : > { %222 = vst [vmem:[%s175_s29 + $0x30] sm:$0xf] %v221_v12 }
  0x21   : > { %224 = vst [vmem:[%s175_s29 + $0x34] sm:$0xf] %v223_v13 }
  0x22   : > { %226 = vst [vmem:[%s175_s29 + $0x38] sm:$0xf] %v225_v14 }
  0x23   : > { %228 = vst [vmem:[%s175_s29 + $0x3c] sm:$0xf] %v227_v15 }
  0x24 PF: > { %p621_p8 = scmp.ge.s32.totalorder %s757_s16, 1  ;;  %p289_p9 = scmp.lt.s32.totalorder %s757_s16, 3 }
  0x26   : > { %p290_p10 = pnand %p621_p8, %p289_p9 }
  0x27   : > { %s296_s30 = sand.u32 (!%p290_p10), 1, %s741_s12   ;;  %p339_p11 = scmp.lt.s32.totalorder (!%p290_p10), %s749_s14, 1 }
  0x28   : > { %293 = sbr.rel (%p290_p10) target bundleno = 227 (0xe3), region = 69  ;;  %s622_s4 = sshll.u32 (!%p290_p10), %s296_s30, 6 }
  0x29   : > { %s298_s5 = scalar_lea.vmem (!%p290_p10), [#allocation3], %s622_s4  ;;  %s623_s12 = sshll.u32 (!%p290_p10), %s296_s30, 3 }
  0x2a   : > { %s328_s18 = scalar_lea.vmem (!%p290_p10), [#allocation4], %s623_s12 }
  0x2d   : > { %v672_v16 = vld [vmem:[%s298_s5 + $0x38] sm:$0xff]  ;;  %s340_s6 = scalar_select %p339_p11, %s749_s14, 1  ;;  %v671_v17 = vld [vmem:[%s298_s5 + $0x30] sm:$0xff]  ;;  %v670_v18 = vld [vmem:[%s298_s5 + $0x28] sm:$0xff] }
  0x2e   : > { %423 = vmatpush.bf16.msra.mxu0 %v672_v16  ;;  %v669_v19 = vld [vmem:[%s298_s5 + $0x20] sm:$0xff]  ;;  %v668_v20 = vld [vmem:[%s298_s5 + $0x18] sm:$0xff]  ;;  %v667_v21 = vld [vmem:[%s298_s5 + $0x10] sm:$0xff]  ;;  %s661_s19 = sshll.u32 (%p814_p6), %s749_s14, 2 }
  0x2f   : > { %s341_s9 = scalar_lea.vmem %s879_s2, %s340_s6  ;;  %v666_v22 = vld [vmem:[%s298_s5 + $0x8] sm:$0xff]  ;;  %v665_v23 = vld [vmem:[%s298_s5] sm:$0xff]  ;;  %s469_s24 = scalar_lea.vmem (%p814_p6), %s880_s3, %s661_s19 }
  0x30   : > { %v664_v24 = vld [vmem:[%s877_s0] sm:$0xff] }
  0x31   : > { %v718_v26 = vld [vmem:[%s341_s9] ss:$0 sm:$0xff] }
  0x32   : > { %424 = vmatpush.bf16.msra.mxu0 %v671_v17 }
  0x36   : > { %425 = vmatpush.bf16.msra.mxu0 %v670_v18 }
  0x3a   : > { %426 = vmatpush.bf16.msra.mxu0 %v669_v19 }
  0x3e   : > { %427 = vmatpush.bf16.msra.mxu0 %v668_v20 }
  0x42   : > { %428 = vmatpush.bf16.msra.mxu0 %v667_v21 }
  0x46   : > { %429 = vmatpush.bf16.msra.mxu0 %v666_v22 }
  0x4a   : > { %430 = vmatpush.bf16.msra.mxu0 %v665_v23 }
  0x4d   : > { %431 = vmatmul.bf16.vlgmr.msra.gmra.mxu0 %v664_v24 }
  0xca   : > { %v432_v25 = vpop.f32.mrf.mxu0 }
  0xcb   : > { %v450_v27 = vadd.f32 %v718_v26, %v432_v25 }
  0xcd   : > { %v452_v30 = vmax.f32 %v450_v27, 0.0 }
  0xd2   : > { %v434_v28 = vpop.f32.mrf.mxu0 }
  0xd3   : > { %v451_v29 = vadd.f32 %v718_v26, %v434_v28 }
  0xd5   : > { %v453_v31 = vmax.f32 %v451_v29, 0.0  ;;  %464 = sbr.rel (!%p814_p6) target bundleno = 227 (0xe3), region = 85 }
  0xd7   : > { %v676_v32 = vpack.c.bf16 %v453_v31, %v452_v30 }
  0xd9   : > { %677 = vst [vmem:[%s328_s18] sm:$0xff] %v676_v32  }
  0xe0   : > { %v486_v33 = vld [vmem:[%s328_s18] sm:$0xf]  ;;  %v488_v34 = vld [vmem:[%s328_s18 + $0x4] sm:$0xf] }
  0xe1   : > { %487 = vst [vmem:[%s469_s24] sm:$0xf] %v486_v33 }
  0xe2   : > { %489 = vst [vmem:[%s469_s24 + $0x8] sm:$0xf] %v488_v34 }
  0xe3 PF: > { %s13_s16 = sadd.s32 1, %s757_s16   ;;  %s882_s12 = smov %s745_s13 }
  0xe4   : > { %p10_p12 = scmp.ge.s32.totalorder %s13_s16, 4   ;;  %s883_s13 = smov %s819_s22 }
  0xe5   : > { %s884_s14 = smov %s753_s15  ;;  %s885_s15 = smov %s887_s17 }
  0xe6   :  { %12 = sbr.rel (!%p10_p12) target bundleno = 3 (0x3), region = 163 }

// kernel: closed_call.43
= control target key start
LH: loop header
LB: loop body
LE: loop exit
PB: predicated region body
PF: predicated region fallthrough
CT: control target
= control target key end

     0   :  { %v269_v19 = vmov 128.0   ;;  %s347_s1 = inlined_call_operand.vmem [shape: bf16[128,128], index: 1, kind: input, shape index: {}]   ;;  %s348_s2 = inlined_call_operand.vmem [shape: f32[1,128], index: 2, kind: input, shape index: {}]   ;;  %s349_s0 = inlined_call_operand.vmem [shape: bf16[16,128], index: 0, kind: input, shape index: {}]   ;;  %s350_s3 = inlined_call_operand.vmem [shape: bf16[16,128], index: 3, kind: input, shape index: {}]   ;;  %s351_s4 = inlined_call_operand.vmem [shape: f32[1,128], index: 4, kind: input, shape index: {}]   ;;  %s352_s5 = inlined_call_operand.vmem [shape: f32[1,128], index: 5, kind: input, shape index: {}]   ;;  %s353_s6 = inlined_call_operand.vmem [shape: bf16[16,128], index: 6, kind: output, shape index: {}]  }
   0x1   :  { %v249_v0 = vld [vmem:[%s347_s1 + $0x38] sm:$0xff]  ;;  %v248_v1 = vld [vmem:[%s347_s1 + $0x30] sm:$0xff]  ;;  %v247_v2 = vld [vmem:[%s347_s1 + $0x28] sm:$0xff]  ;;  %263 = vrcp.f32 %v269_v19 }
   0x2   :  { %103 = vmatpush.bf16.msra.mxu0 %v249_v0  ;;  %v246_v3 = vld [vmem:[%s347_s1 + $0x20] sm:$0xff]  ;;  %v245_v4 = vld [vmem:[%s347_s1 + $0x18] sm:$0xff]  ;;  %v244_v5 = vld [vmem:[%s347_s1 + $0x10] sm:$0xff] }
   0x3   :  { %v243_v6 = vld [vmem:[%s347_s1 + $0x8] sm:$0xff]  ;;  %v242_v7 = vld [vmem:[%s347_s1] sm:$0xff] }
   0x4   :  { %v241_v8 = vld [vmem:[%s349_s0] sm:$0xff] }
   0x5   :  { %v251_v9 = vld [vmem:[%s350_s3] sm:$0xff]  }
   0x6   :  { %104 = vmatpush.bf16.msra.mxu0 %v248_v1  ;;  %v260_v10 = vld [vmem:[%s348_s2] ss:$0 sm:$0xff]  ;;  %v252_v11 = vunpack.c.l.bf16 %v251_v9  ;;  %v253_v15 = vunpack.c.h.bf16 %v251_v9 }
   0x7   :  { %v264_v20 = vpop.eup %263  ;;  %v261_v52 = vld [vmem:[%s351_s4] ss:$0 sm:$0xff] }
   0x8   :  { %v143_v21 = vmul.f32 128.0, %v264_v20  ;;  %vm147_vm0 = vweird.f32 %v264_v20  ;;  %v262_v56 = vld [vmem:[%s352_s5] ss:$0 sm:$0xff] }
   0xa   :  { %105 = vmatpush.bf16.msra.mxu0 %v247_v2  ;;  %v144_v22 = vsub.f32 1.0, %v143_v21 }
   0xc   :  { %v145_v23 = vmul.f32 %v264_v20, %v144_v22 }
   0xe   :  { %106 = vmatpush.bf16.msra.mxu0 %v246_v3  ;;  %v146_v24 = vadd.f32 %v264_v20, %v145_v23 }
  0x10   :  { %v148_v25 = vsel %vm147_vm0, %v264_v20, %v146_v24 }
  0x12   :  { %107 = vmatpush.bf16.msra.mxu0 %v245_v4 }
  0x16   :  { %108 = vmatpush.bf16.msra.mxu0 %v244_v5 }
  0x1a   :  { %109 = vmatpush.bf16.msra.mxu0 %v243_v6 }
  0x1e   :  { %110 = vmatpush.bf16.msra.mxu0 %v242_v7 }
  0x21   :  { %111 = vmatmul.bf16.vlgmr.msra.gmra.mxu0 %v241_v8 }
  0x9e   :  { %v112_v12 = vpop.f32.mrf.mxu0 }
  0x9f   :  { %v130_v13 = vadd.f32 %v260_v10, %v112_v12 }
  0xa1   :  { %v136_v14 = vadd.f32 %v252_v11, %v130_v13 }
  0xa3   :  { %138 = vadd.xlane.f32.xlu0 %v136_v14 }
  0xa6   :  { %v114_v16 = vpop.f32.mrf.mxu0 }
  0xa7   :  { %v131_v17 = vadd.f32 %v260_v10, %v114_v16 }
  0xa9   :  { %v137_v18 = vadd.f32 %v253_v15, %v131_v17 }
  0xab   :  { %140 = vadd.xlane.f32.xlu0 %v137_v18 }
 0x116   :  { %v139_v26 = vpop.xlane.xlu0 %138 }
 0x117   :  { %v149_v27 = vmul.f32 %v148_v25, %v139_v26 }
 0x119   :  { %v151_v28 = vsub.f32 %v136_v14, %v149_v27 }
 0x11b   :  { %v153_v29 = vmul.f32 %v151_v28, %v151_v28 }
 0x11d   :  { %155 = vadd.xlane.f32.xlu1 %v153_v29 }
 0x11e   :  { %v141_v30 = vpop.xlane.xlu0 %140 }
 0x11f   :  { %v150_v31 = vmul.f32 %v148_v25, %v141_v30 }
 0x121   :  { %v152_v32 = vsub.f32 %v137_v18, %v150_v31 }
 0x123   :  { %v154_v33 = vmul.f32 %v152_v32, %v152_v32 }
 0x125   :  { %157 = vadd.xlane.f32.xlu1 %v154_v33 }
 0x190   :  { %v156_v34 = vpop.xlane.xlu1 %155 }
 0x191   :  { %v159_v35 = vmul.f32 %v156_v34, %v148_v25 }
 0x193   :  { %v161_v36 = vadd.f32 1e-05, %v159_v35 }
 0x195   :  { %265 = vrsqrt.f32 %v161_v36  ;;  %vm169_vm2 = vweird.f32 %v161_v36 }
 0x198   :  { %v158_v37 = vpop.xlane.xlu1 %157 }
 0x199   :  { %v160_v38 = vmul.f32 %v158_v37, %v148_v25 }
 0x19b   :  { %v266_v39 = vpop.eup %265  ;;  %v162_v40 = vadd.f32 1e-05, %v160_v38 }
 0x19c   :  { %v164_v41 = vmul.f32 %v266_v39, %v161_v36  ;;  %vm170_vm1 = vweird.f32 %v266_v39 }
 0x19d   :  { %267 = vrsqrt.f32 %v162_v40  ;;  %vm171_vm3 = vmor %vm169_vm2, %vm170_vm1  ;;  %vm179_vm5 = vweird.f32 %v162_v40 }
 0x19e   :  { %v165_v42 = vmul.f32 %v266_v39, %v164_v41 }
 0x1a0   :  { %v166_v43 = vmul.f32 0.5, %v165_v42 }
 0x1a2   :  { %v167_v44 = vsub.f32 1.5, %v166_v43 }
 0x1a3   :  { %v268_v45 = vpop.eup %267 }
 0x1a4   :  { %v168_v46 = vmul.f32 %v266_v39, %v167_v44  ;;  %v174_v47 = vmul.f32 %v268_v45, %v162_v40  ;;  %vm180_vm4 = vweird.f32 %v268_v45 }
 0x1a5   :  { %vm181_vm6 = vmor %vm179_vm5, %vm180_vm4 }
 0x1a6   :  { %v175_v48 = vmul.f32 %v268_v45, %v174_v47  ;;  %v172_v49 = vsel %vm171_vm3, %v266_v39, %v168_v46 }
 0x1a7   :  { %v183_v53 = vmul.f32 %v172_v49, %v151_v28 }
 0x1a8   :  { %v176_v50 = vmul.f32 0.5, %v175_v48 }
 0x1a9   :  { %v189_v57 = vmul.f32 %v261_v52, %v183_v53 }
 0x1aa   :  { %v177_v51 = vsub.f32 1.5, %v176_v50 }
 0x1ab   :  { %v195_v60 = vadd.f32 %v262_v56, %v189_v57 }
 0x1ac   :  { %v178_v54 = vmul.f32 %v268_v45, %v177_v51 }
 0x1ae   :  { %v182_v55 = vsel %vm181_vm6, %v268_v45, %v178_v54 }
 0x1af   :  { %v184_v58 = vmul.f32 %v182_v55, %v152_v32 }
 0x1b1   :  { %v190_v59 = vmul.f32 %v261_v52, %v184_v58 }
 0x1b3   :  { %v196_v61 = vadd.f32 %v262_v56, %v190_v59 }
 0x1b5   :  { %v257_v62 = vpack.c.bf16 %v196_v61, %v195_v60 }
 0x1b7   :  { %258 = vst [vmem:[%s353_s6] sm:$0xff] %v257_v62  }

// kernel: closed_call.41
= control target key start
LH: loop header
LB: loop body
LE: loop exit
PB: predicated region body
PF: predicated region fallthrough
CT: control target
= control target key end

     0   :  { %s777_s12 = smov 0   ;;  %s779_s13 = smov 0   ;;  %s875_s0 = inlined_call_operand.vmem [shape: bf16[16,128], index: 0, kind: input, shape index: {}]   ;;  %s876_s1 = inlined_call_operand.vmem [shape: bf16[128,384], index: 1, kind: input, shape index: {}]   ;;  %s877_s2 = inlined_call_operand.vmem [shape: f32[1,384], index: 2, kind: input, shape index: {}]   ;;  %s878_s3 = inlined_call_operand.vmem [shape: bf16[16,384], index: 3, kind: output, shape index: {}]  }
   0x1   :  { %s781_s14 = smov 0   ;;  %s783_s15 = smov 0  }
   0x2   :  { %s785_s16 = smov 0  }
   0x3 LB: > { %s28_s17 = sadd.s32 1, %s751_s15  ;;  %s612_s18 = sadd.s32 4294967295, %s755_s16   ;;  %s755_s16 = sphi %s785_s16, %s13_s16   ;;  %s751_s15 = sphi %s783_s15, %s883_s15   ;;  %s747_s14 = sphi %s781_s14, %s882_s14   ;;  %s743_s13 = sphi %s779_s13, %s881_s13   ;;  %s739_s12 = sphi %s777_s12, %s880_s12  }
   0x4   : > { %p30_p0 = scmp.ge.s32.totalorder %s28_s17, 3  ;;  %p76_p1 = scmp.ne.s32.totalorder %s743_s13, %s739_s12 }
   0x5   : > { %p77_p2 = scmp.eq.s32.totalorder %s755_s16, 0  ;;  %p134_p4 = scmp.eq.s32.totalorder %s612_s18, 2 }
   0x6   : > { %s885_s17 = smov (%p30_p0, %s28_s17), 0  ;;  %s69_s20 = sadd.s32 1, %s743_s13 }
   0x7   : > { %p78_p3 = por %p77_p2, %p76_p1  ;;  %s65_s19 = ssub.s32 %s751_s15, %s885_s17 }
   0x8   : > { %p67_p5 = scmp.eq.s32.totalorder %s65_s19, 0  ;;  %p812_p6 = por %p134_p4, %p76_p1 }
   0x9   : > { %p616_p7 = scmp.ge.s32.totalorder %s755_s16, 3 }
   0xa   : > { %s817_s22 = scalar_select %p67_p5, %s743_s13, %s69_s20  }
   0xb   : > { %168 = sbr.rel (%p616_p7) target bundleno = 36 (0x24), region = 20 }
  0x10   : > { %171 = sbr.rel (!%p78_p3) target bundleno = 36 (0x24), region = 24  ;;  %s173_s23 = sand.u32 (%p78_p3), 1, %s743_s13  }
  0x11   : > { %s618_s24 = sshll.u32 (%p78_p3), %s751_s15, 2  ;;  %s617_s25 = sshll.u32 (%p78_p3), %s173_s23, 6 }
  0x12   : > { %s825_s28 = scalar_lea.vmem (%p78_p3), %s876_s1, %s618_s24  ;;  %s175_s29 = scalar_lea.vmem (%p78_p3), [#allocation3], %s617_s25 }
  0x13   : > { %v197_v0 = vld [vmem:[%s825_s28] sm:$0xf] (%p78_p3)  ;;  %v199_v1 = vld [vmem:[%s825_s28 + $0xc] sm:$0xf] (%p78_p3)  ;;  %v201_v2 = vld [vmem:[%s825_s28 + $0x18] sm:$0xf] (%p78_p3) }
  0x14   : > { %198 = vst [vmem:[%s175_s29] sm:$0xf] (%p78_p3), %v197_v0  ;;  %v203_v3 = vld [vmem:[%s825_s28 + $0x24] sm:$0xf] (%p78_p3)  ;;  %v205_v4 = vld [vmem:[%s825_s28 + $0x30] sm:$0xf] (%p78_p3) }
  0x15   : > { %200 = vst [vmem:[%s175_s29 + $0x4] sm:$0xf] %v199_v1  ;;  %v207_v5 = vld [vmem:[%s825_s28 + $0x3c] sm:$0xf]  ;;  %v209_v6 = vld [vmem:[%s825_s28 + $0x48] sm:$0xf] }
  0x16   : > { %202 = vst [vmem:[%s175_s29 + $0x8] sm:$0xf] %v201_v2  ;;  %v211_v7 = vld [vmem:[%s825_s28 + $0x54] sm:$0xf]  ;;  %v213_v8 = vld [vmem:[%s825_s28 + $0x60] sm:$0xf] }
  0x17   : > { %204 = vst [vmem:[%s175_s29 + $0xc] sm:$0xf] %v203_v3  ;;  %v215_v9 = vld [vmem:[%s825_s28 + $0x6c] sm:$0xf]  ;;  %v217_v10 = vld [vmem:[%s825_s28 + $0x78] sm:$0xf] }
  0x18   : > { %206 = vst [vmem:[%s175_s29 + $0x10] sm:$0xf] %v205_v4  ;;  %v219_v11 = vld [vmem:[%s825_s28 + $0x84] sm:$0xf]  ;;  %v221_v12 = vld [vmem:[%s825_s28 + $0x90] sm:$0xf] }
  0x19   : > { %208 = vst [vmem:[%s175_s29 + $0x14] sm:$0xf] %v207_v5  ;;  %v223_v13 = vld [vmem:[%s825_s28 + $0x9c] sm:$0xf]  ;;  %v225_v14 = vld [vmem:[%s825_s28 + $0xa8] sm:$0xf] }
  0x1a   : > { %210 = vst [vmem:[%s175_s29 + $0x18] sm:$0xf] %v209_v6  ;;  %v227_v15 = vld [vmem:[%s825_s28 + $0xb4] sm:$0xf] }
  0x1b   : > { %212 = vst [vmem:[%s175_s29 + $0x1c] sm:$0xf] %v211_v7 }
  0x1c   : > { %214 = vst [vmem:[%s175_s29 + $0x20] sm:$0xf] %v213_v8 }
  0x1d   : > { %216 = vst [vmem:[%s175_s29 + $0x24] sm:$0xf] %v215_v9 }
  0x1e   : > { %218 = vst [vmem:[%s175_s29 + $0x28] sm:$0xf] %v217_v10 }
  0x1f   : > { %220 = vst [vmem:[%s175_s29 + $0x2c] sm:$0xf] %v219_v11 }
  0x20   : > { %222 = vst [vmem:[%s175_s29 + $0x30] sm:$0xf] %v221_v12 }
  0x21   : > { %224 = vst [vmem:[%s175_s29 + $0x34] sm:$0xf] %v223_v13 }
  0x22   : > { %226 = vst [vmem:[%s175_s29 + $0x38] sm:$0xf] %v225_v14 }
  0x23   : > { %228 = vst [vmem:[%s175_s29 + $0x3c] sm:$0xf] %v227_v15 }
  0x24 PF: > { %p619_p8 = scmp.ge.s32.totalorder %s755_s16, 1  ;;  %p289_p9 = scmp.lt.s32.totalorder %s755_s16, 4 }
  0x26   : > { %p290_p10 = pnand %p619_p8, %p289_p9 }
  0x27   : > { %s296_s30 = sand.u32 (!%p290_p10), 1, %s739_s12   ;;  %p339_p11 = scmp.lt.s32.totalorder (!%p290_p10), %s747_s14, 2 }
  0x28   : > { %293 = sbr.rel (%p290_p10) target bundleno = 225 (0xe1), region = 69  ;;  %s620_s4 = sshll.u32 (!%p290_p10), %s296_s30, 6 }
  0x29   : > { %s298_s5 = scalar_lea.vmem (!%p290_p10), [#allocation3], %s620_s4  ;;  %s621_s12 = sshll.u32 (!%p290_p10), %s296_s30, 3 }
  0x2a   : > { %s328_s18 = scalar_lea.vmem (!%p290_p10), [#allocation4], %s621_s12 }
  0x2d   : > { %v670_v16 = vld [vmem:[%s298_s5 + $0x38] sm:$0xff]  ;;  %s340_s6 = scalar_select %p339_p11, %s747_s14, 2  ;;  %v669_v17 = vld [vmem:[%s298_s5 + $0x30] sm:$0xff]  ;;  %v668_v18 = vld [vmem:[%s298_s5 + $0x28] sm:$0xff] }
  0x2e   : > { %423 = vmatpush.bf16.msra.mxu0 %v670_v16  ;;  %v667_v19 = vld [vmem:[%s298_s5 + $0x20] sm:$0xff]  ;;  %v666_v20 = vld [vmem:[%s298_s5 + $0x18] sm:$0xff]  ;;  %v665_v21 = vld [vmem:[%s298_s5 + $0x10] sm:$0xff]  ;;  %s659_s19 = sshll.u32 (%p812_p6), %s747_s14, 2 }
  0x2f   : > { %s341_s9 = scalar_lea.vmem %s877_s2, %s340_s6  ;;  %v664_v22 = vld [vmem:[%s298_s5 + $0x8] sm:$0xff]  ;;  %v663_v23 = vld [vmem:[%s298_s5] sm:$0xff]  ;;  %s467_s24 = scalar_lea.vmem (%p812_p6), %s878_s3, %s659_s19 }
  0x30   : > { %v662_v24 = vld [vmem:[%s875_s0] sm:$0xff] }
  0x31   : > { %v716_v26 = vld [vmem:[%s341_s9] ss:$0 sm:$0xff] }
  0x32   : > { %424 = vmatpush.bf16.msra.mxu0 %v669_v17 }
  0x36   : > { %425 = vmatpush.bf16.msra.mxu0 %v668_v18 }
  0x3a   : > { %426 = vmatpush.bf16.msra.mxu0 %v667_v19 }
  0x3e   : > { %427 = vmatpush.bf16.msra.mxu0 %v666_v20 }
  0x42   : > { %428 = vmatpush.bf16.msra.mxu0 %v665_v21 }
  0x46   : > { %429 = vmatpush.bf16.msra.mxu0 %v664_v22 }
  0x4a   : > { %430 = vmatpush.bf16.msra.mxu0 %v663_v23 }
  0x4d   : > { %431 = vmatmul.bf16.vlgmr.msra.gmra.mxu0 %v662_v24 }
  0xca   : > { %v432_v25 = vpop.f32.mrf.mxu0 }
  0xcb   : > { %v450_v28 = vadd.f32 %v716_v26, %v432_v25 }
  0xd2   : > { %v434_v27 = vpop.f32.mrf.mxu0 }
  0xd3   : > { %v451_v29 = vadd.f32 %v716_v26, %v434_v27  ;;  %462 = sbr.rel (!%p812_p6) target bundleno = 225 (0xe1), region = 85 }
  0xd5   : > { %v674_v30 = vpack.c.bf16 %v451_v29, %v450_v28 }
  0xd7   : > { %675 = vst [vmem:[%s328_s18] sm:$0xff] %v674_v30  }
  0xde   : > { %v484_v31 = vld [vmem:[%s328_s18] sm:$0xf]  ;;  %v486_v32 = vld [vmem:[%s328_s18 + $0x4] sm:$0xf] }
  0xdf   : > { %485 = vst [vmem:[%s467_s24] sm:$0xf] %v484_v31 }
  0xe0   : > { %487 = vst [vmem:[%s467_s24 + $0xc] sm:$0xf] %v486_v32 }
  0xe1 PF: > { %s13_s16 = sadd.s32 1, %s755_s16   ;;  %s880_s12 = smov %s743_s13 }
  0xe2   : > { %p10_p12 = scmp.ge.s32.totalorder %s13_s16, 5   ;;  %s881_s13 = smov %s817_s22 }
  0xe3   : > { %s882_s14 = smov %s751_s15  ;;  %s883_s15 = smov %s885_s17 }
  0xe4   :  { %12 = sbr.rel (!%p10_p12) target bundleno = 3 (0x3), region = 163 }

// kernel: closed_call.42
= control target key start
LH: loop header
LB: loop body
LE: loop exit
PB: predicated region body
PF: predicated region fallthrough
CT: control target
= control target key end

     0   :  { %s838_s15 = smov 0   ;;  %s840_s16 = smov 0   ;;  %s962_s0 = inlined_call_operand.vmem [shape: bf16[2,8,384], index: 0, kind: input, shape index: {}, may-alias: {0,1,2}]   ;;  %s963_s1 = inlined_call_operand.vmem [shape: bf16[2,8,384], index: 1, kind: input, shape index: {}, may-alias: {0,1,2}]   ;;  %s964_s2 = inlined_call_operand.vmem [shape: bf16[2,8,384], index: 2, kind: input, shape index: {}, may-alias: {0,1,2}]   ;;  %s965_s3 = inlined_call_operand.vmem [shape: f32[2,1,8], index: 3, kind: input, shape index: {}]   ;;  %s966_s4 = inlined_call_operand.vmem [shape: bf16[2,8,128], index: 4, kind: output, shape index: {}]  }
   0x1   :  { %s842_s17 = smov 0  }
   0x2 LB: > { %s26_s18 = sadd.s32 1, %s803_s16  ;;  %p717_p0 = scmp.ge.s32.totalorder %s807_s17, 1  ;;  %s807_s17 = sphi %s842_s17, %s14_s17   ;;  %s803_s16 = sphi %s840_s16, %s970_s16   ;;  %s799_s15 = sphi %s838_s15, %s969_s15  }
   0x3   : > { %p28_p1 = scmp.ge.s32.totalorder %s26_s18, 2  ;;  %p212_p2 = scmp.lt.s32.totalorder %s807_s17, 3 }
   0x5   : > { %s972_s18 = smov (%p28_p1, %s26_s18), 0  ;;  %p213_p3 = pnand %p717_p0, %p212_p2 }
   0x6   : > { %p259_p4 = scmp.lt.s32.totalorder (!%p213_p3), %s799_s15, 1  ;;  %s809_s26 = smov (!%p213_p3), 64  }
   0x7   : > { %216 = sbr.rel (%p213_p3) target bundleno = 1084 (0x43c), region = 36  ;;  %s810_s30 = smov (!%p213_p3), 32  }
   0x8   : > { %s812_s5 = smov (!%p213_p3), 96  }
   0xc   : > { %s974_s15 = smov (!%p259_p4, %s799_s15), 1  ;;  %vm296_vm0 = vcmask 261120   ;;  %v811_v12 = vmov 0   ;;  %vm321_vm3 = vcmask 64512   ;;  %vm337_vm4 = vcmask 1043456  }
   0xd   : > { %s859_s19 = smul.u32 12, %s974_s15  ;;  %s282_s29 = scalar_lea.vmem %s965_s3, %s974_s15  ;;  %vm355_vm5 = vcmask 257024   ;;  %vm432_vm6 = vcmask 519424   ;;  %vm509_vm7 = vcmask 781824   ;;  %vm586_vm8 = vcmask 1044224  }
   0xe   : > { %v291_v10 = vld [vmem:[%s282_s29] sm:$0x1]  ;;  %s721_s9 = sshll.u32 %s974_s15, 2 }
   0xf   : > { %s865_s22 = scalar_lea.vmem %s963_s1, %s859_s19  ;;  %s873_s25 = scalar_lea.vmem %s962_s0, %s859_s19  ;;  %vm292_vm1 = vcmp.gt.f32.partialorder %v291_v10, 0.5 }
  0x10   : > { %v722_v0 = vld [vmem:[%s865_s22 + $0x4] sm:$0xf]  ;;  %v293_v2 = vld [vmem:[%s873_s25] sm:$0xf]  ;;  %v317_v13 = vsel %vm292_vm1, 1, %v811_v12  ;;  %s907_s8 = scalar_lea.vmem %s964_s2, %s859_s19  ;;  %s923_s12 = scalar_lea.vmem %s966_s4, %s721_s9 }
  0x11   : > { %v301_v1 = vsel %vm296_vm0, %v722_v0, 0  ;;  %v730_v3 = vld [vmem:[%s865_s22 + $0x4] sm:$0xf]  ;;  %v434_v9 = vld [vmem:[%s873_s25] sm:$0xf]  ;;  %v318_v16 = vperm.slane %v317_v13, 0 }
  0x12   : > { %310 = vmatpush.bf16.xpose.msra.mxu0 %v301_v1  ;;  %v443_v4 = vunpack.c.l.b16 %v730_v3  ;;  %v734_v5 = vld [vmem:[%s865_s22 + $0x4] sm:$0xf]  ;;  %v438_v11 = vunpack.c.l.b16 %v434_v9  ;;  %v511_v15 = vld [vmem:[%s873_s25] sm:$0xf]  ;;  %v723_v41 = vld [vmem:[%s907_s8 + $0x8] sm:$0xf] }
  0x13   : > { %v520_v7 = vunpack.c.l.b16 %v734_v5  ;;  %v515_v17 = vunpack.c.l.b16 %v511_v15  ;;  %vm888_vm2 = vcmp.eq.s32.totalorder %v318_v16, 1  ;;  %v726_v25 = vld [vmem:[%s865_s22 + $0x4] sm:$0xf]  ;;  %v357_v38 = vld [vmem:[%s873_s25] sm:$0xf]  ;;  %v339_v42 = vsel %vm337_vm4, %v723_v41, 0 }
  0x14   : > { %v444_v6 = vpack.c.b16 %v443_v4, %v443_v4  ;;  %v439_v14 = vpack.c.b16 %v438_v11, %v438_v11  ;;  %v366_v26 = vunpack.c.l.b16 %v726_v25  ;;  %v361_v39 = vunpack.c.l.b16 %v357_v38  ;;  %348 = vmatpush.bf16.msra.mxu1 %v339_v42  ;;  %v727_v15 = vld [vmem:[%s907_s8 + $0x8] sm:$0xf] }
  0x15   : > { %v521_v8 = vpack.c.b16 %v520_v7, %v520_v7  ;;  %v516_v21 = vpack.c.b16 %v515_v17, %v515_v17  ;;  %v404_v17 = vunpack.c.l.b16 %v727_v15  ;;  %v735_v25 = vld [vmem:[%s907_s8 + $0x8] sm:$0xf] }
  0x16   : > { %445 = vrot.lane.b32.xlu2 %v444_v6, %s809_s26  ;;  %v367_v27 = vpack.c.b16 %v366_v26, %v366_v26  ;;  %v362_v40 = vpack.c.b16 %v361_v39, %v361_v39 }
  0x17   : > { %v405_v19 = vpack.c.b16 %v404_v17, %v404_v17 }
  0x19   : > { %724 = vmatmul.msk.bf16.vlgmr.msra.gmra.mxu0 %vm296_vm0, %v293_v2 }
  0x1e   : > { %522 = vrot.lane.b32.xlu2 %v521_v8, %s810_s30 }
  0x26   : > { %440 = vrot.lane.b32.xlu2 %v439_v14, %s809_s26 }
  0x2e   : > { %517 = vrot.lane.b32.xlu2 %v516_v21, %s810_s30 }
  0x70   : > { %v446_v28 = vpop.permute.xlu2 %445 }
  0x71   : > { %v451_v43 = vsel %vm296_vm0, %v446_v28, 0 }
  0x72   : > { %460 = vmatpush.bf16.xpose.msrb.mxu1 %v451_v43 }
  0x78   : > { %v523_v29 = vpop.permute.xlu2 %522 }
  0x79   : > { %v528_v34 = vsel %vm296_vm0, %v523_v29, 0 }
  0x7a   : > { %537 = vmatpush.bf16.xpose.msrb.mxu0 %v528_v34 }
  0x80   : > { %v441_v33 = vpop.permute.xlu2 %440 }
  0x88   : > { %v518_v37 = vpop.permute.xlu2 %517 }
  0x89   : > { %736 = vmatmul.msk.bf16.vlgmr.msrb.gmra.mxu0 %vm296_vm0, %v518_v37 }
  0x96   : > { %v312_v18 = vpop.f32.mrf.mxu0 }
  0x97   : > { %v316_v20 = vmul.f32 0.17677669, %v312_v18 }
  0x99   : > { %v320_v22 = vsel %vm888_vm2, %v316_v20, -1e+09 }
  0x9a   : > { %v322_v23 = vsel %vm321_vm3, %v320_v22, -inf }
  0x9b   : > { %323 = vmax.xlane.f32.xlu0 %v322_v23  ;;  %v731_v23 = vld [vmem:[%s907_s8 + $0x8] sm:$0xf] }
  0x9e   : > { %v314_v24 = vpop.f32.mrf.mxu0 }
  0x9f   : > { %v481_v24 = vunpack.c.l.b16 %v731_v23 }
  0xa1   : > { %v482_v26 = vpack.c.b16 %v481_v24, %v481_v24 }
  0xaf   : > { %368 = vrot.lane.b32.xlu0 %v367_v27, %s812_s5  ;;  %v558_v27 = vunpack.c.l.b16 %v735_v25 }
  0xb1   : > { %v559_v28 = vpack.c.b16 %v558_v27, %v558_v27 }
 0x106   : > { %v539_v50 = vpop.f32.mrf.mxu0 }
 0x107   : > { %v543_v51 = vmul.f32 0.17677669, %v539_v50 }
 0x109   : > { %v544_v52 = vsel %vm888_vm2, %v543_v51, -1e+09 }
 0x10a   : > { %v545_v53 = vsel %vm321_vm3, %v544_v52, -inf }
 0x10e   : > { %v324_v30 = vpop.xlane.xlu0 %323  ;;  %v541_v54 = vpop.f32.mrf.mxu0 }
 0x10f   : > { %v325_v31 = vsub.f32 %v320_v22, %v324_v30 }
 0x111   : > { %v326_v32 = vmul.f32 1.442695, %v325_v31 }
 0x113   : > { %769 = vpow2.f32 %v326_v32 }
 0x119   : > { %v770_v35 = vpop.eup %769 }
 0x11a   : > { %v328_v36 = vsel %vm321_vm3, %v770_v35, 0.0 }
 0x11b   : > { %329 = vadd.xlane.f32.xlu1 %v328_v36 }
 0x121   : > { %v369_v44 = vpop.permute.xlu0 %368 }
 0x122   : > { %v374_v45 = vsel %vm296_vm0, %v369_v44, 0 }
 0x123   : > { %383 = vmatpush.bf16.xpose.msra.mxu2 %v374_v45 }
 0x134   : > { %363 = vrot.lane.b32.xlu1 %v362_v40, %s812_s5 }
 0x15e   : > { %546 = vmax.xlane.f32.xlu1 %v545_v53 }
 0x18e   : > { %v330_v46 = vpop.xlane.xlu1 %329 }
 0x18f   : > { %771 = vrcp.f32 %v330_v46 }
 0x195   : > { %v772_v47 = vpop.eup %771 }
 0x196   : > { %v332_v48 = vmul.f32 %v772_v47, %v770_v35 }
 0x198   : > { %v333_v49 = vpack.c.bf16 %v332_v48, %v332_v48 }
 0x19a   : > { %725 = vmatmul.msk.bf16.vlgmr.msra.gmra.mxu1 %vm321_vm3, %v333_v49 }
 0x1a6   : > { %v364_v55 = vpop.permute.xlu1 %363 }
 0x1a7   : > { %728 = vmatmul.msk.bf16.vlgmr.msra.gmra.mxu2 %vm296_vm0, %v364_v55 }
 0x1aa   : > { %732 = vmatmul.msk.bf16.vlgmr.msrb.gmra.mxu1 %vm296_vm0, %v441_v33 }
 0x1d1   : > { %v547_v7 = vpop.xlane.xlu1 %546 }
 0x1d2   : > { %v548_v11 = vsub.f32 %v544_v52, %v547_v7 }
 0x1d4   : > { %v549_v13 = vmul.f32 1.442695, %v548_v11 }
 0x217   : > { %v350_v56 = vpop.f32.mrf.mxu1 }
 0x218   : > { %v354_v57 = vpack.c.bf16 %v350_v56, %v350_v56 }
 0x21a   : > { %356 = vst.msk [vmem:[%s923_s12] sm:$0xf] %vm355_vm5, %v354_v57 }
 0x21f   : > { %v352_v58 = vpop.f32.mrf.mxu1 }
 0x227   : > { %v462_v59 = vpop.f32.mrf.mxu1 }
 0x228   : > { %v466_v60 = vmul.f32 0.17677669, %v462_v59 }
 0x22a   : > { %v385_v61 = vpop.f32.mrf.mxu2  ;;  %v467_v62 = vsel %vm888_vm2, %v466_v60, -1e+09 }
 0x22b   : > { %v389_v63 = vmul.f32 0.17677669, %v385_v61  ;;  %v468_v0 = vsel %vm321_vm3, %v467_v62, -inf }
 0x22c   : > { %469 = vmax.xlane.f32.xlu2 %v468_v0 }
 0x22d   : > { %v390_v1 = vsel %vm888_vm2, %v389_v63, -1e+09 }
 0x22e   : > { %v391_v2 = vsel %vm321_vm3, %v390_v1, -inf }
 0x22f   : > { %v464_v3 = vpop.f32.mrf.mxu1  ;;  %392 = vmax.xlane.f32.xlu0 %v391_v2 }
 0x232   : > { %v387_v4 = vpop.f32.mrf.mxu2 }
 0x244   : > { %406 = vrot.lane.b32.xlu2 %v405_v19, %s812_s5 }
 0x29f   : > { %v470_v5 = vpop.xlane.xlu2 %469 }
 0x2a0   : > { %v471_v6 = vsub.f32 %v467_v62, %v470_v5 }
 0x2a2   : > { %v472_v8 = vmul.f32 1.442695, %v471_v6  ;;  %v393_v9 = vpop.xlane.xlu0 %392 }
 0x2a3   : > { %v394_v10 = vsub.f32 %v390_v1, %v393_v9 }
 0x2a4   : > { %773 = vpow2.f32 %v472_v8 }
 0x2a5   : > { %v395_v12 = vmul.f32 1.442695, %v394_v10 }
 0x2a7   : > { %775 = vpow2.f32 %v395_v12  ;;  %v407_v29 = vpop.permute.xlu2 %406 }
 0x2a8   : > { %777 = vpow2.f32 %v549_v13  ;;  %v412_v30 = vsel %vm337_vm4, %v407_v29, 0 }
 0x2a9   : > { %421 = vmatpush.bf16.msra.mxu3 %v412_v30 }
 0x2aa   : > { %v774_v14 = vpop.eup %773 }
 0x2ab   : > { %v474_v16 = vsel %vm321_vm3, %v774_v14, 0.0 }
 0x2ac   : > { %475 = vadd.xlane.f32.xlu1 %v474_v16 }
 0x2ad   : > { %v776_v18 = vpop.eup %775 }
 0x2ae   : > { %v397_v20 = vsel %vm321_vm3, %v776_v18, 0.0  ;;  %v778_v21 = vpop.eup %777 }
 0x2af   : > { %398 = vadd.xlane.f32.xlu0 %v397_v20  ;;  %v551_v22 = vsel %vm321_vm3, %v778_v21, 0.0 }
 0x2b7   : > { %552 = vadd.xlane.f32.xlu0 %v551_v22 }
 0x2c5   : > { %483 = vrot.lane.b32.xlu1 %v482_v26, %s809_s26 }
 0x2cb   : > { %560 = vrot.lane.b32.xlu0 %v559_v28, %s810_s30 }
 0x31f   : > { %v476_v34 = vpop.xlane.xlu1 %475 }
 0x322   : > { %v399_v31 = vpop.xlane.xlu0 %398 }
 0x323   : > { %779 = vrcp.f32 %v399_v31 }
 0x324   : > { %781 = vrcp.f32 %v476_v34 }
 0x329   : > { %v780_v32 = vpop.eup %779 }
 0x32a   : > { %v401_v33 = vmul.f32 %v780_v32, %v776_v18  ;;  %v553_v36 = vpop.xlane.xlu0 %552  ;;  %v782_v37 = vpop.eup %781 }
 0x32b   : > { %783 = vrcp.f32 %v553_v36  ;;  %v478_v39 = vmul.f32 %v782_v37, %v774_v14 }
 0x32c   : > { %v402_v35 = vpack.c.bf16 %v401_v33, %v401_v33 }
 0x32d   : > { %v479_v43 = vpack.c.bf16 %v478_v39, %v478_v39 }
 0x32e   : > { %729 = vmatmul.msk.bf16.vlgmr.msra.gmra.mxu3 %vm321_vm3, %v402_v35 }
 0x331   : > { %v784_v41 = vpop.eup %783 }
 0x332   : > { %v555_v42 = vmul.f32 %v784_v41, %v778_v21 }
 0x334   : > { %v556_v46 = vpack.c.bf16 %v555_v42, %v555_v42 }
 0x337   : > { %v484_v38 = vpop.permute.xlu1 %483 }
 0x338   : > { %v489_v40 = vsel %vm337_vm4, %v484_v38, 0 }
 0x339   : > { %498 = vmatpush.bf16.msrb.mxu3 %v489_v40 }
 0x33d   : > { %v561_v44 = vpop.permute.xlu0 %560 }
 0x33e   : > { %733 = vmatmul.msk.bf16.vlgmr.msrb.gmra.mxu3 %vm321_vm3, %v479_v43  ;;  %v566_v45 = vsel %vm337_vm4, %v561_v44, 0 }
 0x33f   : > { %575 = vmatpush.bf16.msrb.mxu2 %v566_v45 }
 0x342   : > { %737 = vmatmul.msk.bf16.vlgmr.msrb.gmra.mxu2 %vm321_vm3, %v556_v46 }
 0x3b1   : > { %v423_v47 = vpop.f32.mrf.mxu3 }
 0x3b2   : > { %v427_v48 = vpack.c.bf16 %v423_v47, %v423_v47 }
 0x3b4   : > { %429 = vrot.lane.b32.xlu2 %v427_v48, %s810_s30 }
 0x3b9   : > { %v425_v49 = vpop.f32.mrf.mxu3 }
 0x3c1   : > { %v500_v50 = vpop.f32.mrf.mxu3 }
 0x3c2   : > { %v504_v51 = vpack.c.bf16 %v500_v50, %v500_v50 }
 0x3c4   : > { %506 = vrot.lane.b32.xlu2 %v504_v51, %s809_s26 }
 0x3c5   : > { %v577_v52 = vpop.f32.mrf.mxu2 }
 0x3c6   : > { %v581_v53 = vpack.c.bf16 %v577_v52, %v577_v52 }
 0x3c8   : > { %583 = vrot.lane.b32.xlu0 %v581_v53, %s812_s5 }
 0x3c9   : > { %v502_v54 = vpop.f32.mrf.mxu3 }
 0x3cd   : > { %v579_v55 = vpop.f32.mrf.mxu2 }
 0x40e   : > { %v430_v56 = vpop.permute.xlu2 %429 }
 0x40f   : > { %433 = vst.msk [vmem:[%s923_s12] sm:$0xf] %vm432_vm6, %v430_v56 }
 0x41e   : > { %v507_v57 = vpop.permute.xlu2 %506 }
 0x41f   : > { %510 = vst.msk [vmem:[%s923_s12] sm:$0xf] %vm509_vm7, %v507_v57 }
 0x43a   : > { %v584_v58 = vpop.permute.xlu0 %583 }
 0x43b   : > { %587 = vst.msk [vmem:[%s923_s12] sm:$0xf] %vm586_vm8, %v584_v58 }
 0x43c PF: > { %s14_s17 = sadd.s32 1, %s807_s17   ;;  %s969_s15 = smov %s803_s16 }
 0x43d   : > { %p11_p5 = scmp.ge.s32.totalorder %s14_s17, 4   ;;  %s970_s16 = smov %s972_s18 }
 0x43f   :  { %13 = sbr.rel (!%p11_p5) target bundleno = 2 (0x2), region = 75 }

// kernel: closed_call.46
= control target key start
LH: loop header
LB: loop body
LE: loop exit
PB: predicated region body
PF: predicated region fallthrough
CT: control target
= control target key end

     0   :  { %8 = vsyncpa [#allocation4], 0  ;;  %s869_s0 = inlined_call_operand.vmem [shape: bf16[16,128], index: 0, kind: input, shape index: {}]   ;;  %s870_s1 = inlined_call_operand.hbm [shape: bf16[128,384], index: 1, kind: input, shape index: {}]   ;;  %s871_s2 = inlined_call_operand.vmem [shape: f32[1,384], index: 2, kind: input, shape index: {}]   ;;  %s872_s3 = inlined_call_operand.vmem [shape: bf16[16,384], index: 3, kind: output, shape index: {}]  }
   0x1   :  { %10 = vsyncpa [#allocation4 + $0x1], 0  ;;  %s763_s12 = smov 0   ;;  %s765_s13 = smov 0  }
   0x2   :  { %s767_s14 = smov 0   ;;  %s769_s15 = smov 0  }
   0x3   :  { %s771_s16 = smov 0   ;;  %s773_s17 = smov 0  }
   0x4 LB: > { %s535_s18 = sadd.s32 4294967295, %s738_s17   ;;  %s31_s19 = sadd.s32 1, %s734_s16  ;;  %s738_s17 = sphi %s773_s17, %s16_s17   ;;  %s734_s16 = sphi %s771_s16, %s880_s16   ;;  %s730_s15 = sphi %s769_s15, %s879_s15   ;;  %s726_s14 = sphi %s767_s14, %s878_s14   ;;  %s722_s13 = sphi %s765_s13, %s877_s13   ;;  %s718_s12 = sphi %s763_s12, %s876_s12  }
   0x5   : > { %p33_p0 = scmp.ge.s32.totalorder %s31_s19, 3  ;;  %s72_s20 = sadd.s32 1, %s726_s14 }
   0x6   : > { %p79_p1 = scmp.ne.s32.totalorder %s726_s14, %s722_s13  ;;  %p80_p2 = scmp.eq.s32.totalorder %s738_s17, 0 }
   0x7   : > { %s882_s19 = smov (%p33_p0, %s31_s19), 0  ;;  %p85_p4 = scmp.ne.s32.totalorder %s722_s13, %s718_s12 }
   0x8   : > { %p799_p3 = por %p80_p2, %p79_p1  ;;  %s68_s22 = ssub.s32 %s734_s16, %s882_s19 }
   0x9   : > { %p86_p5 = scmp.eq.s32.totalorder %s535_s18, 0  ;;  %p70_p6 = scmp.eq.s32.totalorder %s68_s22, 0 }
   0xa   : > { %p137_p7 = scmp.eq.s32.totalorder %s535_s18, 2  ;;  %p605_p10 = scmp.lt.s32.totalorder %s738_s17, 3 }
   0xb   : > { %p806_p8 = por %p86_p5, %p85_p4  ;;  %s175_s26 = sand.u32 1, %s726_s14  }
   0xc   : > { %s811_s24 = scalar_select %p70_p6, %s726_s14, %s72_s20  }
   0xd   : > { %p813_p9 = por %p137_p7, %p79_p1  ;;  %s541_s27 = sshll.u32 %s734_s16, 2 }
   0xe   : > { %s540_s28 = sshll.u32 %s175_s26, 6  ;;  %s186_s4 = scalar_lea.hbm %s870_s1, %s541_s27 }
   0xf   : > { %s187_s5 = sshll.u32 %s186_s4, 4  ;;  %s179_s6 = scalar_lea.vmem [#allocation3], %s540_s28  ;;  %s188_s5 = int_to_ptr.hbm [resolvable:$true] %s187_s5 }
  0x10   : > { %s189_s7 = sshll.u32 %s179_s6, 4  ;;  %p602_p11 = pnand %p605_p10, %p799_p3  ;;  %s190_s7 = int_to_ptr.vmem [resolvable:$true] %s189_s7 }
  0x11   : > { %p542_p12 = scmp.ge.s32.totalorder %s738_s17, 1  ;;  %s176_s8 = scalar_lea.sflag [#allocation4], %s175_s26 }
  0x12   : > { %s740_s9 = smov 192   ;;  %s741_s10 = smov 64  }
  0x13   : > { %s742_s11 = smov 4   ;;  %p203_p13 = scmp.lt.s32.totalorder %s738_s17, 4 }
  0x14   : > { %604 = dma.hbm_to_vmem [thread:$0]  (!%p602_p11), %s188_s5, 1024, %s190_s7, %s176_s8, %s740_s9, %s741_s10, %s742_s11  }
  0x15   : > { %p204_p0 = pnand %p542_p12, %p203_p13 }
  0x16   : > { %s828_s12 = sand.u32 (!%p204_p0), 1, %s722_s13  }
  0x17   : > { %207 = sbr.rel (%p204_p0) target bundleno = 209 (0xd1), region = 32  ;;  %s543_s18 = sshll.u32 (!%p204_p0), %s828_s12, 6 }
  0x18   : > { %s210_s20 = scalar_lea.sflag (!%p204_p0), [#allocation4], %s828_s12  ;;  %s213_s22 = scalar_lea.vmem (!%p204_p0), [#allocation3], %s543_s18 }
  0x1c   : > { %713 = dma.done.wait (%p806_p8), %s210_s20, 1024  }
  0x1d   : > { %715 = vsyncadd (%p806_p8), %s210_s20, 4294966272  ;;  %p257_p1 = scmp.lt.s32.totalorder %s730_s15, 2  ;;  %v593_v0 = vld [vmem:[%s213_s22 + $0x38] sm:$0xff]  ;;  %v592_v1 = vld [vmem:[%s213_s22 + $0x30] sm:$0xff]  ;;  %s544_s30 = sshll.u32 %s828_s12, 3 }
  0x1e   : > { %341 = vmatpush.bf16.msra.mxu0 %v593_v0  ;;  %v591_v2 = vld [vmem:[%s213_s22 + $0x28] sm:$0xff]  ;;  %v590_v3 = vld [vmem:[%s213_s22 + $0x20] sm:$0xff]  ;;  %v589_v4 = vld [vmem:[%s213_s22 + $0x18] sm:$0xff]  ;;  %s246_s4 = scalar_lea.vmem [#allocation5], %s544_s30  ;;  %s582_s5 = sshll.u32 (%p813_p9), %s730_s15, 2 }
  0x1f   : > { %s258_s21 = scalar_select %p257_p1, %s730_s15, 2  ;;  %v588_v5 = vld [vmem:[%s213_s22 + $0x10] sm:$0xff]  ;;  %v587_v6 = vld [vmem:[%s213_s22 + $0x8] sm:$0xff]  ;;  %v586_v7 = vld [vmem:[%s213_s22] sm:$0xff] }
  0x20   : > { %v585_v8 = vld [vmem:[%s869_s0] sm:$0xff]  ;;  %s385_s8 = scalar_lea.vmem (%p813_p9), %s872_s3, %s582_s5 }
  0x21   : > { %s259_s28 = scalar_lea.vmem %s871_s2, %s258_s21 }
  0x22   : > { %342 = vmatpush.bf16.msra.mxu0 %v592_v1  ;;  %v657_v10 = vld [vmem:[%s259_s28] ss:$0 sm:$0xff] }
  0x26   : > { %343 = vmatpush.bf16.msra.mxu0 %v591_v2 }
  0x2a   : > { %344 = vmatpush.bf16.msra.mxu0 %v590_v3 }
  0x2e   : > { %345 = vmatpush.bf16.msra.mxu0 %v589_v4 }
  0x32   : > { %346 = vmatpush.bf16.msra.mxu0 %v588_v5 }
  0x36   : > { %347 = vmatpush.bf16.msra.mxu0 %v587_v6 }
  0x3a   : > { %348 = vmatpush.bf16.msra.mxu0 %v586_v7 }
  0x3d   : > { %349 = vmatmul.bf16.vlgmr.msra.gmra.mxu0 %v585_v8 }
  0xba   : > { %v350_v9 = vpop.f32.mrf.mxu0 }
  0xbb   : > { %v368_v12 = vadd.f32 %v657_v10, %v350_v9 }
  0xc2   : > { %v352_v11 = vpop.f32.mrf.mxu0 }
  0xc3   : > { %v369_v13 = vadd.f32 %v657_v10, %v352_v11  ;;  %380 = sbr.rel (!%p813_p9) target bundleno = 209 (0xd1), region = 48 }
  0xc5   : > { %v597_v14 = vpack.c.bf16 %v369_v13, %v368_v12 }
  0xc7   : > { %598 = vst [vmem:[%s246_s4] sm:$0xff] %v597_v14  }
  0xce   : > { %v402_v15 = vld [vmem:[%s246_s4] sm:$0xf]  ;;  %v404_v16 = vld [vmem:[%s246_s4 + $0x4] sm:$0xf] }
  0xcf   : > { %403 = vst [vmem:[%s385_s8] sm:$0xf] %v402_v15 }
  0xd0   : > { %405 = vst [vmem:[%s385_s8 + $0xc] sm:$0xf] %v404_v16 }
  0xd1 PF: > { %s16_s17 = sadd.s32 1, %s738_s17   ;;  %s876_s12 = smov %s722_s13 }
  0xd2   : > { %p13_p2 = scmp.ge.s32.totalorder %s16_s17, 5   ;;  %s877_s13 = smov %s726_s14 }
  0xd3   : > { %s878_s14 = smov %s811_s24  ;;  %s879_s15 = smov %s734_s16 }
  0xd4   : > { %s880_s16 = smov %s882_s19  ;;  %15 = sbr.rel (!%p13_p2) target bundleno = 4 (0x4), region = 127 }
  0xd9   :  { %443 = vsyncpa [#allocation4], 1 }
  0xda   :  { %445 = vsyncpa [#allocation4 + $0x1], 1 }

// kernel: generator_forward.2
= control target key start
LH: loop header
LB: loop body
LE: loop exit
PB: predicated region body
PF: predicated region fallthrough
CT: control target
= control target key end

     0   :  { %8 = vsyncpa [#allocation4], 0  ;;  %s869_s0 = inlined_call_operand.vmem [shape: bf16[16,128], index: 0, kind: input, shape index: {}]   ;;  %s870_s1 = inlined_call_operand.hbm [shape: bf16[128,256], index: 1, kind: input, shape index: {}]   ;;  %s871_s2 = inlined_call_operand.vmem [shape: f32[1,256], index: 2, kind: input, shape index: {}]   ;;  %s872_s3 = inlined_call_operand.vmem [shape: bf16[16,256], index: 3, kind: output, shape index: {}]  }
   0x1   :  { %10 = vsyncpa [#allocation4 + $0x1], 0  ;;  %s763_s12 = smov 0   ;;  %s765_s13 = smov 0  }
   0x2   :  { %s767_s14 = smov 0   ;;  %s769_s15 = smov 0  }
   0x3   :  { %s771_s16 = smov 0   ;;  %s773_s17 = smov 0  }
   0x4 LB: > { %s535_s18 = sadd.s32 4294967295, %s738_s17   ;;  %s31_s19 = sadd.s32 1, %s734_s16  ;;  %s738_s17 = sphi %s773_s17, %s16_s17   ;;  %s734_s16 = sphi %s771_s16, %s880_s16   ;;  %s730_s15 = sphi %s769_s15, %s879_s15   ;;  %s726_s14 = sphi %s767_s14, %s878_s14   ;;  %s722_s13 = sphi %s765_s13, %s877_s13   ;;  %s718_s12 = sphi %s763_s12, %s876_s12  }
   0x5   : > { %p33_p0 = scmp.ge.s32.totalorder %s31_s19, 2  ;;  %s72_s20 = sadd.s32 1, %s726_s14 }
   0x6   : > { %p79_p1 = scmp.ne.s32.totalorder %s726_s14, %s722_s13  ;;  %p80_p2 = scmp.eq.s32.totalorder %s738_s17, 0 }
   0x7   : > { %s882_s19 = smov (%p33_p0, %s31_s19), 0  ;;  %p85_p4 = scmp.ne.s32.totalorder %s722_s13, %s718_s12 }
   0x8   : > { %p799_p3 = por %p80_p2, %p79_p1  ;;  %s68_s22 = ssub.s32 %s734_s16, %s882_s19 }
   0x9   : > { %p86_p5 = scmp.eq.s32.totalorder %s535_s18, 0  ;;  %p70_p6 = scmp.eq.s32.totalorder %s68_s22, 0 }
   0xa   : > { %p137_p7 = scmp.eq.s32.totalorder %s535_s18, 1  ;;  %p605_p10 = scmp.lt.s32.totalorder %s738_s17, 2 }
   0xb   : > { %p806_p8 = por %p86_p5, %p85_p4  ;;  %s175_s26 = sand.u32 1, %s726_s14  }
   0xc   : > { %s811_s24 = scalar_select %p70_p6, %s726_s14, %s72_s20  }
   0xd   : > { %p813_p9 = por %p137_p7, %p79_p1  ;;  %s541_s27 = sshll.u32 %s734_s16, 2 }
   0xe   : > { %s540_s28 = sshll.u32 %s175_s26, 6  ;;  %s186_s4 = scalar_lea.hbm %s870_s1, %s541_s27 }
   0xf   : > { %s187_s5 = sshll.u32 %s186_s4, 4  ;;  %s179_s6 = scalar_lea.vmem [#allocation3], %s540_s28  ;;  %s188_s5 = int_to_ptr.hbm [resolvable:$true] %s187_s5 }
  0x10   : > { %s189_s7 = sshll.u32 %s179_s6, 4  ;;  %p602_p11 = pnand %p605_p10, %p799_p3  ;;  %s190_s7 = int_to_ptr.vmem [resolvable:$true] %s189_s7 }
  0x11   : > { %p542_p12 = scmp.ge.s32.totalorder %s738_s17, 1  ;;  %s176_s8 = scalar_lea.sflag [#allocation4], %s175_s26 }
  0x12   : > { %s740_s9 = smov 128   ;;  %s741_s10 = smov 64  }
  0x13   : > { %s742_s11 = smov 4   ;;  %p203_p13 = scmp.lt.s32.totalorder %s738_s17, 3 }
  0x14   : > { %604 = dma.hbm_to_vmem [thread:$0]  (!%p602_p11), %s188_s5, 1024, %s190_s7, %s176_s8, %s740_s9, %s741_s10, %s742_s11  }
  0x15   : > { %p204_p0 = pnand %p542_p12, %p203_p13 }
  0x16   : > { %s828_s12 = sand.u32 (!%p204_p0), 1, %s722_s13  }
  0x17   : > { %207 = sbr.rel (%p204_p0) target bundleno = 209 (0xd1), region = 32  ;;  %s543_s18 = sshll.u32 (!%p204_p0), %s828_s12, 6 }
  0x18   : > { %s210_s20 = scalar_lea.sflag (!%p204_p0), [#allocation4], %s828_s12  ;;  %s213_s22 = scalar_lea.vmem (!%p204_p0), [#allocation3], %s543_s18 }
  0x1c   : > { %713 = dma.done.wait (%p806_p8), %s210_s20, 1024  }
  0x1d   : > { %715 = vsyncadd (%p806_p8), %s210_s20, 4294966272  ;;  %p257_p1 = scmp.lt.s32.totalorder %s730_s15, 1  ;;  %v593_v0 = vld [vmem:[%s213_s22 + $0x38] sm:$0xff]  ;;  %v592_v1 = vld [vmem:[%s213_s22 + $0x30] sm:$0xff]  ;;  %s544_s30 = sshll.u32 %s828_s12, 3 }
  0x1e   : > { %341 = vmatpush.bf16.msra.mxu0 %v593_v0  ;;  %v591_v2 = vld [vmem:[%s213_s22 + $0x28] sm:$0xff]  ;;  %v590_v3 = vld [vmem:[%s213_s22 + $0x20] sm:$0xff]  ;;  %v589_v4 = vld [vmem:[%s213_s22 + $0x18] sm:$0xff]  ;;  %s246_s4 = scalar_lea.vmem [#allocation5], %s544_s30  ;;  %s582_s5 = sshll.u32 (%p813_p9), %s730_s15, 2 }
  0x1f   : > { %s258_s21 = scalar_select %p257_p1, %s730_s15, 1  ;;  %v588_v5 = vld [vmem:[%s213_s22 + $0x10] sm:$0xff]  ;;  %v587_v6 = vld [vmem:[%s213_s22 + $0x8] sm:$0xff]  ;;  %v586_v7 = vld [vmem:[%s213_s22] sm:$0xff] }
  0x20   : > { %v585_v8 = vld [vmem:[%s869_s0] sm:$0xff]  ;;  %s385_s8 = scalar_lea.vmem (%p813_p9), %s872_s3, %s582_s5 }
  0x21   : > { %s259_s28 = scalar_lea.vmem %s871_s2, %s258_s21 }
  0x22   : > { %342 = vmatpush.bf16.msra.mxu0 %v592_v1  ;;  %v657_v10 = vld [vmem:[%s259_s28] ss:$0 sm:$0xff] }
  0x26   : > { %343 = vmatpush.bf16.msra.mxu0 %v591_v2 }
  0x2a   : > { %344 = vmatpush.bf16.msra.mxu0 %v590_v3 }
  0x2e   : > { %345 = vmatpush.bf16.msra.mxu0 %v589_v4 }
  0x32   : > { %346 = vmatpush.bf16.msra.mxu0 %v588_v5 }
  0x36   : > { %347 = vmatpush.bf16.msra.mxu0 %v587_v6 }
  0x3a   : > { %348 = vmatpush.bf16.msra.mxu0 %v586_v7 }
  0x3d   : > { %349 = vmatmul.bf16.vlgmr.msra.gmra.mxu0 %v585_v8 }
  0xba   : > { %v350_v9 = vpop.f32.mrf.mxu0 }
  0xbb   : > { %v368_v12 = vadd.f32 %v657_v10, %v350_v9 }
  0xc2   : > { %v352_v11 = vpop.f32.mrf.mxu0 }
  0xc3   : > { %v369_v13 = vadd.f32 %v657_v10, %v352_v11  ;;  %380 = sbr.rel (!%p813_p9) target bundleno = 209 (0xd1), region = 48 }
  0xc5   : > { %v597_v14 = vpack.c.bf16 %v369_v13, %v368_v12 }
  0xc7   : > { %598 = vst [vmem:[%s246_s4] sm:$0xff] %v597_v14  }
  0xce   : > { %v402_v15 = vld [vmem:[%s246_s4] sm:$0xf]  ;;  %v404_v16 = vld [vmem:[%s246_s4 + $0x4] sm:$0xf] }
  0xcf   : > { %403 = vst [vmem:[%s385_s8] sm:$0xf] %v402_v15 }
  0xd0   : > { %405 = vst [vmem:[%s385_s8 + $0x8] sm:$0xf] %v404_v16 }
  0xd1 PF: > { %s16_s17 = sadd.s32 1, %s738_s17   ;;  %s876_s12 = smov %s722_s13 }
  0xd2   : > { %p13_p2 = scmp.ge.s32.totalorder %s16_s17, 4   ;;  %s877_s13 = smov %s726_s14 }
  0xd3   : > { %s878_s14 = smov %s811_s24  ;;  %s879_s15 = smov %s734_s16 }
  0xd4   : > { %s880_s16 = smov %s882_s19  ;;  %15 = sbr.rel (!%p13_p2) target bundleno = 4 (0x4), region = 127 }
  0xd9   :  { %443 = vsyncpa [#allocation4], 1 }
  0xda   :  { %445 = vsyncpa [#allocation4 + $0x1], 1 }

// kernel: closed_call.45
= control target key start
LH: loop header
LB: loop body
LE: loop exit
PB: predicated region body
PF: predicated region fallthrough
CT: control target
= control target key end

     0   :  { %11 = vsyncpa [#allocation4], 0  ;;  %s442_s24 = smov [#allocation3]   ;;  %s443_s26 = smov 64   ;;  %s511_s0 = inlined_call_operand.vmem [shape: bf16[16,256], index: 0, kind: input, shape index: {}]   ;;  %s512_s1 = inlined_call_operand.hbm [shape: bf16[256,128], index: 1, kind: input, shape index: {}]   ;;  %s513_s2 = inlined_call_operand.vmem [shape: f32[1,128], index: 2, kind: input, shape index: {}]   ;;  %s514_s3 = inlined_call_operand.vmem [shape: bf16[16,128], index: 3, kind: input, shape index: {}]   ;;  %s515_s4 = inlined_call_operand.vmem [shape: f32[1,128], index: 4, kind: input, shape index: {}]   ;;  %s516_s5 = inlined_call_operand.vmem [shape: f32[1,128], index: 5, kind: input, shape index: {}]   ;;  %s517_s6 = inlined_call_operand.vmem [shape: bf16[16,128], index: 6, kind: output, shape index: {}]  }
   0x1   :  { %s18_s23 = sshll.u32 %s512_s1, 4  ;;  %s20_s25 = sshll.u32 %s442_s24, 4  ;;  %s19_s23 = int_to_ptr.hbm [resolvable:$true] %s18_s23  ;;  %s21_s25 = int_to_ptr.vmem [resolvable:$true] %s20_s25 }
   0x2   :  { %s444_s27 = smov 4  }
   0x3   :  { %26 = dma.hbm_to_vmem [thread:$0]  %s19_s23, 2048, %s21_s25, [#allocation4], %s443_s26, %s443_s26, %s444_s27  }
   0x4   :  { %440 = dma.done.wait [#allocation4], 2048  }
   0x5   :  { %441 = vsyncadd [#allocation4], 4294965248  ;;  %v385_v0 = vld [vmem:[#allocation3 + $0x38] sm:$0xff]  ;;  %v384_v2 = vld [vmem:[#allocation3 + $0x30] sm:$0xff]  ;;  %v445_v36 = vmov 128.0  }
   0x6   :  { %v393_v1 = vld [vmem:[#allocation3 + $0x78] sm:$0xff]  ;;  %187 = vmatpush.bf16.msra.mxu0 %v385_v0  ;;  %v392_v3 = vld [vmem:[#allocation3 + $0x70] sm:$0xff]  ;;  %v383_v4 = vld [vmem:[#allocation3 + $0x28] sm:$0xff]  ;;  %410 = vrcp.f32 %v445_v36 }
   0x7   :  { %201 = vmatpush.bf16.msra.mxu1 %v393_v1  ;;  %v391_v5 = vld [vmem:[#allocation3 + $0x68] sm:$0xff]  ;;  %v382_v6 = vld [vmem:[#allocation3 + $0x20] sm:$0xff]  ;;  %v381_v8 = vld [vmem:[#allocation3 + $0x18] sm:$0xff] }
   0x8   :  { %v390_v7 = vld [vmem:[#allocation3 + $0x60] sm:$0xff]  ;;  %v389_v9 = vld [vmem:[#allocation3 + $0x58] sm:$0xff]  ;;  %v380_v10 = vld [vmem:[#allocation3 + $0x10] sm:$0xff] }
   0x9   :  { %v388_v11 = vld [vmem:[#allocation3 + $0x50] sm:$0xff]  ;;  %v379_v12 = vld [vmem:[#allocation3 + $0x8] sm:$0xff]  ;;  %v378_v14 = vld [vmem:[#allocation3] sm:$0xff] }
   0xa   :  { %188 = vmatpush.bf16.msra.mxu0 %v384_v2  ;;  %v387_v13 = vld [vmem:[#allocation3 + $0x48] sm:$0xff]  ;;  %v386_v15 = vld [vmem:[#allocation3 + $0x40] sm:$0xff] }
   0xb   :  { %202 = vmatpush.bf16.msra.mxu1 %v392_v3  ;;  %v306_v16 = vld [vmem:[%s511_s0] sm:$0xf]  ;;  %v377_v17 = vld [vmem:[%s511_s0 + $0x4] sm:$0xf0]  ;;  %v376_v18 = vld [vmem:[%s511_s0 + $0x4] sm:$0xf] }
   0xc   :  { %v308_v19 = vld [vmem:[%s511_s0 + $0x8] sm:$0xf0]  ;;  %v307_v20 = vor.u32 %v377_v17, %v306_v16  ;;  %v395_v22 = vld [vmem:[%s514_s3] sm:$0xff]   ;;  %v411_v37 = vpop.eup %410 }
   0xd   :  { %v311_v21 = vor.u32 %v376_v18, %v308_v19  ;;  %v407_v23 = vld [vmem:[%s513_s2] ss:$0 sm:$0xff]  ;;  %v396_v27 = vunpack.c.l.bf16 %v395_v22  ;;  %v397_v33 = vunpack.c.h.bf16 %v395_v22  ;;  %v241_v38 = vmul.f32 128.0, %v411_v37 }
   0xe   :  { %189 = vmatpush.bf16.msra.mxu0 %v383_v4  ;;  %vm245_vm0 = vweird.f32 %v411_v37 }
   0xf   :  { %203 = vmatpush.bf16.msra.mxu1 %v391_v5  ;;  %v242_v39 = vsub.f32 1.0, %v241_v38  ;;  %v408_v5 = vld [vmem:[%s515_s4] ss:$0 sm:$0xff] }
  0x11   :  { %v243_v40 = vmul.f32 %v411_v37, %v242_v39 }
  0x12   :  { %190 = vmatpush.bf16.msra.mxu0 %v382_v6 }
  0x13   :  { %204 = vmatpush.bf16.msra.mxu1 %v390_v7  ;;  %v244_v41 = vadd.f32 %v411_v37, %v243_v40 }
  0x15   :  { %v246_v42 = vsel %vm245_vm0, %v411_v37, %v244_v41 }
  0x16   :  { %191 = vmatpush.bf16.msra.mxu0 %v381_v8 }
  0x17   :  { %205 = vmatpush.bf16.msra.mxu1 %v389_v9  ;;  %v409_v9 = vld [vmem:[%s516_s5] ss:$0 sm:$0xff] }
  0x1a   :  { %192 = vmatpush.bf16.msra.mxu0 %v380_v10 }
  0x1b   :  { %206 = vmatpush.bf16.msra.mxu1 %v388_v11 }
  0x1e   :  { %193 = vmatpush.bf16.msra.mxu0 %v379_v12 }
  0x1f   :  { %207 = vmatpush.bf16.msra.mxu1 %v387_v13 }
  0x22   :  { %194 = vmatpush.bf16.msra.mxu0 %v378_v14 }
  0x23   :  { %208 = vmatpush.bf16.msra.mxu1 %v386_v15 }
  0x25   :  { %195 = vmatmul.bf16.vlgmr.msra.gmra.mxu0 %v307_v20 }
  0x26   :  { %209 = vmatmul.bf16.vlgmr.msra.gmra.mxu1 %v311_v21 }
  0xa2   :  { %v196_v24 = vpop.f32.mrf.mxu0 }
  0xa3   :  { %v210_v25 = vpop.f32.mrf.mxu1 }
  0xa4   :  { %v211_v26 = vadd.f32 %v210_v25, %v196_v24 }
  0xa6   :  { %v228_v28 = vadd.f32 %v407_v23, %v211_v26 }
  0xa8   :  { %v234_v29 = vadd.f32 %v396_v27, %v228_v28 }
  0xaa   :  { %236 = vadd.xlane.f32.xlu0 %v234_v29  ;;  %v198_v30 = vpop.f32.mrf.mxu0 }
  0xab   :  { %v212_v31 = vpop.f32.mrf.mxu1 }
  0xac   :  { %v213_v32 = vadd.f32 %v212_v31, %v198_v30 }
  0xae   :  { %v229_v34 = vadd.f32 %v407_v23, %v213_v32 }
  0xb0   :  { %v235_v35 = vadd.f32 %v397_v33, %v229_v34 }
  0xb2   :  { %238 = vadd.xlane.f32.xlu0 %v235_v35 }
 0x11d   :  { %v237_v43 = vpop.xlane.xlu0 %236 }
 0x11e   :  { %v247_v44 = vmul.f32 %v246_v42, %v237_v43 }
 0x120   :  { %v249_v45 = vsub.f32 %v234_v29, %v247_v44 }
 0x122   :  { %v251_v46 = vmul.f32 %v249_v45, %v249_v45 }
 0x124   :  { %253 = vadd.xlane.f32.xlu1 %v251_v46 }
 0x125   :  { %v239_v47 = vpop.xlane.xlu0 %238 }
 0x126   :  { %v248_v48 = vmul.f32 %v246_v42, %v239_v47 }
 0x128   :  { %v250_v49 = vsub.f32 %v235_v35, %v248_v48 }
 0x12a   :  { %v252_v50 = vmul.f32 %v250_v49, %v250_v49 }
 0x12c   :  { %255 = vadd.xlane.f32.xlu1 %v252_v50 }
 0x197   :  { %v254_v51 = vpop.xlane.xlu1 %253 }
 0x198   :  { %v257_v52 = vmul.f32 %v254_v51, %v246_v42 }
 0x19a   :  { %v259_v53 = vadd.f32 1e-05, %v257_v52 }
 0x19c   :  { %412 = vrsqrt.f32 %v259_v53  ;;  %vm267_vm2 = vweird.f32 %v259_v53 }
 0x19f   :  { %v256_v54 = vpop.xlane.xlu1 %255 }
 0x1a0   :  { %v258_v55 = vmul.f32 %v256_v54, %v246_v42 }
 0x1a2   :  { %v413_v56 = vpop.eup %412  ;;  %v260_v57 = vadd.f32 1e-05, %v258_v55 }
 0x1a3   :  { %v262_v58 = vmul.f32 %v413_v56, %v259_v53  ;;  %vm268_vm1 = vweird.f32 %v413_v56 }
 0x1a4   :  { %414 = vrsqrt.f32 %v260_v57  ;;  %vm269_vm3 = vmor %vm267_vm2, %vm268_vm1  ;;  %vm277_vm5 = vweird.f32 %v260_v57 }
 0x1a5   :  { %v263_v59 = vmul.f32 %v413_v56, %v262_v58 }
 0x1a7   :  { %v264_v60 = vmul.f32 0.5, %v263_v59 }
 0x1a9   :  { %v265_v61 = vsub.f32 1.5, %v264_v60 }
 0x1aa   :  { %v415_v62 = vpop.eup %414 }
 0x1ab   :  { %v266_v63 = vmul.f32 %v413_v56, %v265_v61  ;;  %v272_v0 = vmul.f32 %v415_v62, %v260_v57  ;;  %vm278_vm4 = vweird.f32 %v415_v62 }
 0x1ac   :  { %vm279_vm6 = vmor %vm277_vm5, %vm278_vm4 }
 0x1ad   :  { %v273_v1 = vmul.f32 %v415_v62, %v272_v0  ;;  %v270_v2 = vsel %vm269_vm3, %v413_v56, %v266_v63 }
 0x1ae   :  { %v281_v6 = vmul.f32 %v270_v2, %v249_v45 }
 0x1af   :  { %v274_v3 = vmul.f32 0.5, %v273_v1 }
 0x1b0   :  { %v287_v10 = vmul.f32 %v408_v5, %v281_v6 }
 0x1b1   :  { %v275_v4 = vsub.f32 1.5, %v274_v3 }
 0x1b2   :  { %v293_v13 = vadd.f32 %v409_v9, %v287_v10 }
 0x1b3   :  { %v276_v7 = vmul.f32 %v415_v62, %v275_v4 }
 0x1b5   :  { %v280_v8 = vsel %vm279_vm6, %v415_v62, %v276_v7 }
 0x1b6   :  { %v282_v11 = vmul.f32 %v280_v8, %v250_v49 }
 0x1b8   :  { %v288_v12 = vmul.f32 %v408_v5, %v282_v11 }
 0x1ba   :  { %v294_v14 = vadd.f32 %v409_v9, %v288_v12 }
 0x1bc   :  { %v401_v15 = vpack.c.bf16 %v294_v14, %v293_v13 }
 0x1be   :  { %402 = vst [vmem:[%s517_s6] sm:$0xff] %v401_v15  }
 0x1bf   :  { %303 = vsyncpa [#allocation4], 1 }

// kernel: closed_call.47
= control target key start
LH: loop header
LB: loop body
LE: loop exit
PB: predicated region body
PF: predicated region fallthrough
CT: control target
= control target key end

     0   :  { %s847_s15 = smov 0   ;;  %s849_s16 = smov 0   ;;  %s971_s0 = inlined_call_operand.vmem [shape: bf16[2,8,384], index: 0, kind: input, shape index: {}, may-alias: {0,1,2}]   ;;  %s972_s1 = inlined_call_operand.vmem [shape: bf16[2,8,384], index: 1, kind: input, shape index: {}, may-alias: {0,1,2}]   ;;  %s973_s2 = inlined_call_operand.vmem [shape: bf16[2,8,384], index: 2, kind: input, shape index: {}, may-alias: {0,1,2}]   ;;  %s974_s3 = inlined_call_operand.vmem [shape: f32[2,1,8], index: 3, kind: input, shape index: {}]   ;;  %s975_s4 = inlined_call_operand.vmem [shape: bf16[2,8,128], index: 4, kind: output, shape index: {}]  }
   0x1   :  { %s851_s17 = smov 0  }
   0x2 LB: > { %s26_s18 = sadd.s32 1, %s812_s16  ;;  %p726_p0 = scmp.ge.s32.totalorder %s816_s17, 1  ;;  %s816_s17 = sphi %s851_s17, %s14_s17   ;;  %s812_s16 = sphi %s849_s16, %s979_s16   ;;  %s808_s15 = sphi %s847_s15, %s978_s15  }
   0x3   : > { %p28_p1 = scmp.ge.s32.totalorder %s26_s18, 2  ;;  %p212_p2 = scmp.lt.s32.totalorder %s816_s17, 3 }
   0x5   : > { %s981_s18 = smov (%p28_p1, %s26_s18), 0  ;;  %p213_p3 = pnand %p726_p0, %p212_p2 }
   0x6   : > { %p259_p4 = scmp.lt.s32.totalorder (!%p213_p3), %s808_s15, 1  ;;  %s818_s29 = smov (!%p213_p3), 64  }
   0x7   : > { %216 = sbr.rel (%p213_p3) target bundleno = 1084 (0x43c), region = 36  ;;  %s819_s30 = smov (!%p213_p3), 32  }
   0x8   : > { %s821_s5 = smov (!%p213_p3), 96  }
   0xc   : > { %s983_s15 = smov (!%p259_p4, %s808_s15), 1  ;;  %vm308_vm0 = vcmask 261120   ;;  %v294_v11 = vlaneseq  ;;  %v820_v13 = vmov 0   ;;  %vm330_vm5 = vcmask 64512  }
   0xd   : > { %s868_s19 = smul.u32 12, %s983_s15  ;;  %s282_s28 = scalar_lea.vmem %s974_s3, %s983_s15  ;;  %vm346_vm6 = vcmask 1043456   ;;  %vm364_vm7 = vcmask 257024   ;;  %vm441_vm8 = vcmask 519424   ;;  %vm518_vm9 = vcmask 781824  }
   0xe   : > { %v291_v8 = vld [vmem:[%s282_s28] sm:$0x1]  ;;  %v295_v15 = vshrl.u32 %v294_v11, 7  ;;  %v299_v16 = vand.u32 127, %v294_v11  ;;  %s730_s9 = sshll.u32 %s983_s15, 2  ;;  %vm595_vm10 = vcmask 1044224  }
   0xf   : > { %s874_s22 = scalar_lea.vmem %s972_s1, %s868_s19  ;;  %s882_s25 = scalar_lea.vmem %s971_s0, %s868_s19  ;;  %vm292_vm1 = vcmp.gt.f32.partialorder %v291_v8, 0.5 }
  0x10   : > { %v731_v0 = vld [vmem:[%s874_s22 + $0x4] sm:$0xf]  ;;  %v305_v2 = vld [vmem:[%s882_s25] sm:$0xf]  ;;  %v301_v14 = vsel %vm292_vm1, 1, %v820_v13  ;;  %vm300_vm2 = vcmp.ge.s32.totalorder %v295_v15, %v299_v16  ;;  %s916_s8 = scalar_lea.vmem %s973_s2, %s868_s19  ;;  %s932_s12 = scalar_lea.vmem %s975_s4, %s730_s9 }
  0x11   : > { %v313_v1 = vsel %vm308_vm0, %v731_v0, 0  ;;  %v739_v3 = vld [vmem:[%s874_s22 + $0x4] sm:$0xf]  ;;  %v443_v10 = vld [vmem:[%s882_s25] sm:$0xf]  ;;  %v302_v17 = vperm.slane %v301_v14, 0 }
  0x12   : > { %322 = vmatpush.bf16.xpose.msra.mxu0 %v313_v1  ;;  %v452_v4 = vunpack.c.l.b16 %v739_v3  ;;  %v743_v5 = vld [vmem:[%s874_s22 + $0x4] sm:$0xf]  ;;  %v447_v12 = vunpack.c.l.b16 %v443_v10  ;;  %v520_v19 = vld [vmem:[%s882_s25] sm:$0xf]  ;;  %v732_v44 = vld [vmem:[%s916_s8 + $0x8] sm:$0xf] }
  0x13   : > { %v529_v7 = vunpack.c.l.b16 %v743_v5  ;;  %vm303_vm3 = vcmp.eq.s32.totalorder %v302_v17, 1  ;;  %v524_v20 = vunpack.c.l.b16 %v520_v19  ;;  %v735_v28 = vld [vmem:[%s874_s22 + $0x4] sm:$0xf]  ;;  %v366_v41 = vld [vmem:[%s882_s25] sm:$0xf]  ;;  %v348_v45 = vsel %vm346_vm6, %v732_v44, 0 }
  0x14   : > { %v453_v6 = vpack.c.b16 %v452_v4, %v452_v4  ;;  %v448_v18 = vpack.c.b16 %v447_v12, %v447_v12  ;;  %vm897_vm4 = vmand %vm303_vm3, %vm300_vm2  ;;  %v375_v29 = vunpack.c.l.b16 %v735_v28  ;;  %v370_v42 = vunpack.c.l.b16 %v366_v41  ;;  %357 = vmatpush.bf16.msra.mxu1 %v348_v45  ;;  %v744_v28 = vld [vmem:[%s916_s8 + $0x8] sm:$0xf] }
  0x15   : > { %v530_v9 = vpack.c.b16 %v529_v7, %v529_v7  ;;  %v525_v24 = vpack.c.b16 %v524_v20, %v524_v20 }
  0x16   : > { %454 = vrot.lane.b32.xlu2 %v453_v6, %s818_s29  ;;  %v376_v30 = vpack.c.b16 %v375_v29, %v375_v29  ;;  %v371_v43 = vpack.c.b16 %v370_v42, %v370_v42 }
  0x19   : > { %733 = vmatmul.msk.bf16.vlgmr.msra.gmra.mxu0 %vm308_vm0, %v305_v2 }
  0x1e   : > { %531 = vrot.lane.b32.xlu2 %v530_v9, %s819_s30 }
  0x26   : > { %449 = vrot.lane.b32.xlu2 %v448_v18, %s818_s29  ;;  %v736_v18 = vld [vmem:[%s916_s8 + $0x8] sm:$0xf] }
  0x27   : > { %v413_v20 = vunpack.c.l.b16 %v736_v18 }
  0x29   : > { %v414_v22 = vpack.c.b16 %v413_v20, %v413_v20 }
  0x2e   : > { %526 = vrot.lane.b32.xlu2 %v525_v24, %s819_s30 }
  0x70   : > { %v455_v31 = vpop.permute.xlu2 %454 }
  0x71   : > { %v460_v46 = vsel %vm308_vm0, %v455_v31, 0 }
  0x72   : > { %469 = vmatpush.bf16.xpose.msrb.mxu1 %v460_v46 }
  0x78   : > { %v532_v32 = vpop.permute.xlu2 %531 }
  0x79   : > { %v537_v37 = vsel %vm308_vm0, %v532_v32, 0 }
  0x7a   : > { %546 = vmatpush.bf16.xpose.msrb.mxu0 %v537_v37 }
  0x80   : > { %v450_v36 = vpop.permute.xlu2 %449 }
  0x88   : > { %v527_v40 = vpop.permute.xlu2 %526 }
  0x89   : > { %745 = vmatmul.msk.bf16.vlgmr.msrb.gmra.mxu0 %vm308_vm0, %v527_v40 }
  0x96   : > { %v324_v21 = vpop.f32.mrf.mxu0 }
  0x97   : > { %v328_v23 = vmul.f32 0.17677669, %v324_v21 }
  0x99   : > { %v329_v25 = vsel %vm897_vm4, %v328_v23, -1e+09 }
  0x9a   : > { %v331_v26 = vsel %vm330_vm5, %v329_v25, -inf }
  0x9b   : > { %332 = vmax.xlane.f32.xlu0 %v331_v26  ;;  %v740_v26 = vld [vmem:[%s916_s8 + $0x8] sm:$0xf] }
  0x9e   : > { %v326_v27 = vpop.f32.mrf.mxu0 }
  0x9f   : > { %v490_v27 = vunpack.c.l.b16 %v740_v26 }
  0xa1   : > { %v491_v29 = vpack.c.b16 %v490_v27, %v490_v27 }
  0xaf   : > { %377 = vrot.lane.b32.xlu0 %v376_v30, %s821_s5  ;;  %v567_v30 = vunpack.c.l.b16 %v744_v28 }
  0xb1   : > { %v568_v31 = vpack.c.b16 %v567_v30, %v567_v30 }
 0x106   : > { %v548_v53 = vpop.f32.mrf.mxu0 }
 0x107   : > { %v552_v54 = vmul.f32 0.17677669, %v548_v53 }
 0x109   : > { %v553_v55 = vsel %vm897_vm4, %v552_v54, -1e+09 }
 0x10a   : > { %v554_v56 = vsel %vm330_vm5, %v553_v55, -inf }
 0x10e   : > { %v333_v33 = vpop.xlane.xlu0 %332  ;;  %v550_v57 = vpop.f32.mrf.mxu0 }
 0x10f   : > { %v334_v34 = vsub.f32 %v329_v25, %v333_v33 }
 0x111   : > { %v335_v35 = vmul.f32 1.442695, %v334_v34 }
 0x113   : > { %778 = vpow2.f32 %v335_v35 }
 0x119   : > { %v779_v38 = vpop.eup %778 }
 0x11a   : > { %v337_v39 = vsel %vm330_vm5, %v779_v38, 0.0 }
 0x11b   : > { %338 = vadd.xlane.f32.xlu1 %v337_v39 }
 0x121   : > { %v378_v47 = vpop.permute.xlu0 %377 }
 0x122   : > { %v383_v48 = vsel %vm308_vm0, %v378_v47, 0 }
 0x123   : > { %392 = vmatpush.bf16.xpose.msra.mxu2 %v383_v48 }
 0x134   : > { %372 = vrot.lane.b32.xlu1 %v371_v43, %s821_s5 }
 0x15e   : > { %555 = vmax.xlane.f32.xlu1 %v554_v56 }
 0x18e   : > { %v339_v49 = vpop.xlane.xlu1 %338 }
 0x18f   : > { %780 = vrcp.f32 %v339_v49 }
 0x195   : > { %v781_v50 = vpop.eup %780 }
 0x196   : > { %v341_v51 = vmul.f32 %v781_v50, %v779_v38 }
 0x198   : > { %v342_v52 = vpack.c.bf16 %v341_v51, %v341_v51 }
 0x19a   : > { %734 = vmatmul.msk.bf16.vlgmr.msra.gmra.mxu1 %vm330_vm5, %v342_v52 }
 0x1a6   : > { %v373_v58 = vpop.permute.xlu1 %372 }
 0x1a7   : > { %737 = vmatmul.msk.bf16.vlgmr.msra.gmra.mxu2 %vm308_vm0, %v373_v58 }
 0x1aa   : > { %741 = vmatmul.msk.bf16.vlgmr.msrb.gmra.mxu1 %vm308_vm0, %v450_v36 }
 0x1d1   : > { %v556_v10 = vpop.xlane.xlu1 %555 }
 0x1d2   : > { %v557_v14 = vsub.f32 %v553_v55, %v556_v10 }
 0x1d4   : > { %v558_v16 = vmul.f32 1.442695, %v557_v14 }
 0x217   : > { %v359_v59 = vpop.f32.mrf.mxu1 }
 0x218   : > { %v363_v60 = vpack.c.bf16 %v359_v59, %v359_v59 }
 0x21a   : > { %365 = vst.msk [vmem:[%s932_s12] sm:$0xf] %vm364_vm7, %v363_v60 }
 0x21f   : > { %v361_v61 = vpop.f32.mrf.mxu1 }
 0x227   : > { %v471_v62 = vpop.f32.mrf.mxu1 }
 0x228   : > { %v475_v63 = vmul.f32 0.17677669, %v471_v62 }
 0x22a   : > { %v394_v0 = vpop.f32.mrf.mxu2  ;;  %v476_v1 = vsel %vm897_vm4, %v475_v63, -1e+09 }
 0x22b   : > { %v398_v2 = vmul.f32 0.17677669, %v394_v0  ;;  %v477_v3 = vsel %vm330_vm5, %v476_v1, -inf }
 0x22c   : > { %478 = vmax.xlane.f32.xlu2 %v477_v3 }
 0x22d   : > { %v399_v4 = vsel %vm897_vm4, %v398_v2, -1e+09 }
 0x22e   : > { %v400_v5 = vsel %vm330_vm5, %v399_v4, -inf }
 0x22f   : > { %v473_v6 = vpop.f32.mrf.mxu1  ;;  %401 = vmax.xlane.f32.xlu0 %v400_v5 }
 0x232   : > { %v396_v7 = vpop.f32.mrf.mxu2 }
 0x244   : > { %415 = vrot.lane.b32.xlu2 %v414_v22, %s821_s5 }
 0x29f   : > { %v479_v8 = vpop.xlane.xlu2 %478 }
 0x2a0   : > { %v480_v9 = vsub.f32 %v476_v1, %v479_v8 }
 0x2a2   : > { %v481_v11 = vmul.f32 1.442695, %v480_v9  ;;  %v402_v12 = vpop.xlane.xlu0 %401 }
 0x2a3   : > { %v403_v13 = vsub.f32 %v399_v4, %v402_v12 }
 0x2a4   : > { %782 = vpow2.f32 %v481_v11 }
 0x2a5   : > { %v404_v15 = vmul.f32 1.442695, %v403_v13 }
 0x2a7   : > { %784 = vpow2.f32 %v404_v15  ;;  %v416_v32 = vpop.permute.xlu2 %415 }
 0x2a8   : > { %786 = vpow2.f32 %v558_v16  ;;  %v421_v33 = vsel %vm346_vm6, %v416_v32, 0 }
 0x2a9   : > { %430 = vmatpush.bf16.msra.mxu3 %v421_v33 }
 0x2aa   : > { %v783_v17 = vpop.eup %782 }
 0x2ab   : > { %v483_v19 = vsel %vm330_vm5, %v783_v17, 0.0 }
 0x2ac   : > { %484 = vadd.xlane.f32.xlu1 %v483_v19 }
 0x2ad   : > { %v785_v21 = vpop.eup %784 }
 0x2ae   : > { %v406_v23 = vsel %vm330_vm5, %v785_v21, 0.0  ;;  %v787_v24 = vpop.eup %786 }
 0x2af   : > { %407 = vadd.xlane.f32.xlu0 %v406_v23  ;;  %v560_v25 = vsel %vm330_vm5, %v787_v24, 0.0 }
 0x2b7   : > { %561 = vadd.xlane.f32.xlu0 %v560_v25 }
 0x2c5   : > { %492 = vrot.lane.b32.xlu1 %v491_v29, %s818_s29 }
 0x2cb   : > { %569 = vrot.lane.b32.xlu0 %v568_v31, %s819_s30 }
 0x31f   : > { %v485_v37 = vpop.xlane.xlu1 %484 }
 0x322   : > { %v408_v34 = vpop.xlane.xlu0 %407 }
 0x323   : > { %788 = vrcp.f32 %v408_v34 }
 0x324   : > { %790 = vrcp.f32 %v485_v37 }
 0x329   : > { %v789_v35 = vpop.eup %788 }
 0x32a   : > { %v410_v36 = vmul.f32 %v789_v35, %v785_v21  ;;  %v562_v39 = vpop.xlane.xlu0 %561  ;;  %v791_v40 = vpop.eup %790 }
 0x32b   : > { %792 = vrcp.f32 %v562_v39  ;;  %v487_v42 = vmul.f32 %v791_v40, %v783_v17 }
 0x32c   : > { %v411_v38 = vpack.c.bf16 %v410_v36, %v410_v36 }
 0x32d   : > { %v488_v46 = vpack.c.bf16 %v487_v42, %v487_v42 }
 0x32e   : > { %738 = vmatmul.msk.bf16.vlgmr.msra.gmra.mxu3 %vm330_vm5, %v411_v38 }
 0x331   : > { %v793_v44 = vpop.eup %792 }
 0x332   : > { %v564_v45 = vmul.f32 %v793_v44, %v787_v24 }
 0x334   : > { %v565_v49 = vpack.c.bf16 %v564_v45, %v564_v45 }
 0x337   : > { %v493_v41 = vpop.permute.xlu1 %492 }
 0x338   : > { %v498_v43 = vsel %vm346_vm6, %v493_v41, 0 }
 0x339   : > { %507 = vmatpush.bf16.msrb.mxu3 %v498_v43 }
 0x33d   : > { %v570_v47 = vpop.permute.xlu0 %569 }
 0x33e   : > { %742 = vmatmul.msk.bf16.vlgmr.msrb.gmra.mxu3 %vm330_vm5, %v488_v46  ;;  %v575_v48 = vsel %vm346_vm6, %v570_v47, 0 }
 0x33f   : > { %584 = vmatpush.bf16.msrb.mxu2 %v575_v48 }
 0x342   : > { %746 = vmatmul.msk.bf16.vlgmr.msrb.gmra.mxu2 %vm330_vm5, %v565_v49 }
 0x3b1   : > { %v432_v50 = vpop.f32.mrf.mxu3 }
 0x3b2   : > { %v436_v51 = vpack.c.bf16 %v432_v50, %v432_v50 }
 0x3b4   : > { %438 = vrot.lane.b32.xlu2 %v436_v51, %s819_s30 }
 0x3b9   : > { %v434_v52 = vpop.f32.mrf.mxu3 }
 0x3c1   : > { %v509_v53 = vpop.f32.mrf.mxu3 }
 0x3c2   : > { %v513_v54 = vpack.c.bf16 %v509_v53, %v509_v53 }
 0x3c4   : > { %515 = vrot.lane.b32.xlu2 %v513_v54, %s818_s29 }
 0x3c5   : > { %v586_v55 = vpop.f32.mrf.mxu2 }
 0x3c6   : > { %v590_v56 = vpack.c.bf16 %v586_v55, %v586_v55 }
 0x3c8   : > { %592 = vrot.lane.b32.xlu0 %v590_v56, %s821_s5 }
 0x3c9   : > { %v511_v57 = vpop.f32.mrf.mxu3 }
 0x3cd   : > { %v588_v58 = vpop.f32.mrf.mxu2 }
 0x40e   : > { %v439_v59 = vpop.permute.xlu2 %438 }
 0x40f   : > { %442 = vst.msk [vmem:[%s932_s12] sm:$0xf] %vm441_vm8, %v439_v59 }
 0x41e   : > { %v516_v60 = vpop.permute.xlu2 %515 }
 0x41f   : > { %519 = vst.msk [vmem:[%s932_s12] sm:$0xf] %vm518_vm9, %v516_v60 }
 0x43a   : > { %v593_v61 = vpop.permute.xlu0 %592 }
 0x43b   : > { %596 = vst.msk [vmem:[%s932_s12] sm:$0xf] %vm595_vm10, %v593_v61 }
 0x43c PF: > { %s14_s17 = sadd.s32 1, %s816_s17   ;;  %s978_s15 = smov %s812_s16 }
 0x43d   : > { %p11_p5 = scmp.ge.s32.totalorder %s14_s17, 4   ;;  %s979_s16 = smov %s981_s18 }
 0x43f   :  { %13 = sbr.rel (!%p11_p5) target bundleno = 2 (0x2), region = 75 }

// kernel: closed_call.48
= control target key start
LH: loop header
LB: loop body
LE: loop exit
PB: predicated region body
PF: predicated region fallthrough
CT: control target
= control target key end

     0   :  { %11 = vsyncpa [#allocation4], 0  ;;  %s315_s24 = smov [#allocation3]   ;;  %s316_s26 = smov 64   ;;  %s375_s0 = inlined_call_operand.vmem [shape: bf16[16,128], index: 0, kind: input, shape index: {}]   ;;  %s376_s1 = inlined_call_operand.hbm [shape: bf16[128,128], index: 1, kind: input, shape index: {}]   ;;  %s377_s2 = inlined_call_operand.vmem [shape: f32[1,128], index: 2, kind: input, shape index: {}]   ;;  %s378_s3 = inlined_call_operand.vmem [shape: bf16[16,128], index: 3, kind: input, shape index: {}]   ;;  %s379_s4 = inlined_call_operand.vmem [shape: f32[1,128], index: 4, kind: input, shape index: {}]   ;;  %s380_s5 = inlined_call_operand.vmem [shape: f32[1,128], index: 5, kind: input, shape index: {}]   ;;  %s381_s6 = inlined_call_operand.vmem [shape: bf16[16,128], index: 6, kind: output, shape index: {}]  }
   0x1   :  { %s18_s23 = sshll.u32 %s376_s1, 4  ;;  %s20_s25 = sshll.u32 %s315_s24, 4  ;;  %s19_s23 = int_to_ptr.hbm [resolvable:$true] %s18_s23  ;;  %s21_s25 = int_to_ptr.vmem [resolvable:$true] %s20_s25 }
   0x2   :  { %s317_s27 = smov 4  }
   0x3   :  { %26 = dma.hbm_to_vmem [thread:$0]  %s19_s23, 1024, %s21_s25, [#allocation4], %s316_s26, %s316_s26, %s317_s27  }
   0x4   :  { %313 = dma.done.wait [#allocation4], 1024  }
   0x5   :  { %314 = vsyncadd [#allocation4], 4294966272  ;;  %v266_v0 = vld [vmem:[#allocation3 + $0x38] sm:$0xff]  ;;  %v265_v1 = vld [vmem:[#allocation3 + $0x30] sm:$0xff]  ;;  %v318_v19 = vmov 128.0  }
   0x6   :  { %119 = vmatpush.bf16.msra.mxu0 %v266_v0  ;;  %v264_v2 = vld [vmem:[#allocation3 + $0x28] sm:$0xff]  ;;  %v263_v3 = vld [vmem:[#allocation3 + $0x20] sm:$0xff]  ;;  %v262_v4 = vld [vmem:[#allocation3 + $0x18] sm:$0xff]  ;;  %283 = vrcp.f32 %v318_v19 }
   0x7   :  { %v261_v5 = vld [vmem:[#allocation3 + $0x10] sm:$0xff]  ;;  %v260_v6 = vld [vmem:[#allocation3 + $0x8] sm:$0xff]  ;;  %v259_v7 = vld [vmem:[#allocation3] sm:$0xff] }
   0x8   :  { %v258_v8 = vld [vmem:[%s375_s0] sm:$0xff] }
   0x9   :  { %v268_v9 = vld [vmem:[%s378_s3] sm:$0xff]  }
   0xa   :  { %120 = vmatpush.bf16.msra.mxu0 %v265_v1  ;;  %v280_v10 = vld [vmem:[%s377_s2] ss:$0 sm:$0xff]  ;;  %v269_v11 = vunpack.c.l.bf16 %v268_v9  ;;  %v270_v15 = vunpack.c.h.bf16 %v268_v9 }
   0xb   :  { %v281_v52 = vld [vmem:[%s379_s4] ss:$0 sm:$0xff] }
   0xc   :  { %v284_v20 = vpop.eup %283  ;;  %v282_v56 = vld [vmem:[%s380_s5] ss:$0 sm:$0xff] }
   0xd   :  { %v159_v21 = vmul.f32 128.0, %v284_v20  ;;  %vm163_vm0 = vweird.f32 %v284_v20 }
   0xe   :  { %121 = vmatpush.bf16.msra.mxu0 %v264_v2 }
   0xf   :  { %v160_v22 = vsub.f32 1.0, %v159_v21 }
  0x11   :  { %v161_v23 = vmul.f32 %v284_v20, %v160_v22 }
  0x12   :  { %122 = vmatpush.bf16.msra.mxu0 %v263_v3 }
  0x13   :  { %v162_v24 = vadd.f32 %v284_v20, %v161_v23 }
  0x15   :  { %v164_v25 = vsel %vm163_vm0, %v284_v20, %v162_v24 }
  0x16   :  { %123 = vmatpush.bf16.msra.mxu0 %v262_v4 }
  0x1a   :  { %124 = vmatpush.bf16.msra.mxu0 %v261_v5 }
  0x1e   :  { %125 = vmatpush.bf16.msra.mxu0 %v260_v6 }
  0x22   :  { %126 = vmatpush.bf16.msra.mxu0 %v259_v7 }
  0x25   :  { %127 = vmatmul.bf16.vlgmr.msra.gmra.mxu0 %v258_v8 }
  0xa2   :  { %v128_v12 = vpop.f32.mrf.mxu0 }
  0xa3   :  { %v146_v13 = vadd.f32 %v280_v10, %v128_v12 }
  0xa5   :  { %v152_v14 = vadd.f32 %v269_v11, %v146_v13 }
  0xa7   :  { %154 = vadd.xlane.f32.xlu0 %v152_v14 }
  0xaa   :  { %v130_v16 = vpop.f32.mrf.mxu0 }
  0xab   :  { %v147_v17 = vadd.f32 %v280_v10, %v130_v16 }
  0xad   :  { %v153_v18 = vadd.f32 %v270_v15, %v147_v17 }
  0xaf   :  { %156 = vadd.xlane.f32.xlu0 %v153_v18 }
 0x11a   :  { %v155_v26 = vpop.xlane.xlu0 %154 }
 0x11b   :  { %v165_v27 = vmul.f32 %v164_v25, %v155_v26 }
 0x11d   :  { %v167_v28 = vsub.f32 %v152_v14, %v165_v27 }
 0x11f   :  { %v169_v29 = vmul.f32 %v167_v28, %v167_v28 }
 0x121   :  { %171 = vadd.xlane.f32.xlu1 %v169_v29 }
 0x122   :  { %v157_v30 = vpop.xlane.xlu0 %156 }
 0x123   :  { %v166_v31 = vmul.f32 %v164_v25, %v157_v30 }
 0x125   :  { %v168_v32 = vsub.f32 %v153_v18, %v166_v31 }
 0x127   :  { %v170_v33 = vmul.f32 %v168_v32, %v168_v32 }
 0x129   :  { %173 = vadd.xlane.f32.xlu1 %v170_v33 }
 0x194   :  { %v172_v34 = vpop.xlane.xlu1 %171 }
 0x195   :  { %v175_v35 = vmul.f32 %v172_v34, %v164_v25 }
 0x197   :  { %v177_v36 = vadd.f32 1e-05, %v175_v35 }
 0x199   :  { %285 = vrsqrt.f32 %v177_v36  ;;  %vm185_vm2 = vweird.f32 %v177_v36 }
 0x19c   :  { %v174_v37 = vpop.xlane.xlu1 %173 }
 0x19d   :  { %v176_v38 = vmul.f32 %v174_v37, %v164_v25 }
 0x19f   :  { %v286_v39 = vpop.eup %285  ;;  %v178_v40 = vadd.f32 1e-05, %v176_v38 }
 0x1a0   :  { %v180_v41 = vmul.f32 %v286_v39, %v177_v36  ;;  %vm186_vm1 = vweird.f32 %v286_v39 }
 0x1a1   :  { %287 = vrsqrt.f32 %v178_v40  ;;  %vm187_vm3 = vmor %vm185_vm2, %vm186_vm1  ;;  %vm195_vm5 = vweird.f32 %v178_v40 }
 0x1a2   :  { %v181_v42 = vmul.f32 %v286_v39, %v180_v41 }
 0x1a4   :  { %v182_v43 = vmul.f32 0.5, %v181_v42 }
 0x1a6   :  { %v183_v44 = vsub.f32 1.5, %v182_v43 }
 0x1a7   :  { %v288_v45 = vpop.eup %287 }
 0x1a8   :  { %v184_v46 = vmul.f32 %v286_v39, %v183_v44  ;;  %v190_v47 = vmul.f32 %v288_v45, %v178_v40  ;;  %vm196_vm4 = vweird.f32 %v288_v45 }
 0x1a9   :  { %vm197_vm6 = vmor %vm195_vm5, %vm196_vm4 }
 0x1aa   :  { %v191_v48 = vmul.f32 %v288_v45, %v190_v47  ;;  %v188_v49 = vsel %vm187_vm3, %v286_v39, %v184_v46 }
 0x1ab   :  { %v199_v53 = vmul.f32 %v188_v49, %v167_v28 }
 0x1ac   :  { %v192_v50 = vmul.f32 0.5, %v191_v48 }
 0x1ad   :  { %v205_v57 = vmul.f32 %v281_v52, %v199_v53 }
 0x1ae   :  { %v193_v51 = vsub.f32 1.5, %v192_v50 }
 0x1af   :  { %v211_v60 = vadd.f32 %v282_v56, %v205_v57 }
 0x1b0   :  { %v194_v54 = vmul.f32 %v288_v45, %v193_v51 }
 0x1b2   :  { %v198_v55 = vsel %vm197_vm6, %v288_v45, %v194_v54 }
 0x1b3   :  { %v200_v58 = vmul.f32 %v198_v55, %v168_v32 }
 0x1b5   :  { %v206_v59 = vmul.f32 %v281_v52, %v200_v58 }
 0x1b7   :  { %v212_v61 = vadd.f32 %v282_v56, %v206_v59 }
 0x1b9   :  { %v274_v62 = vpack.c.bf16 %v212_v61, %v211_v60 }
 0x1bb   :  { %275 = vst [vmem:[%s381_s6] sm:$0xff] %v274_v62  }
 0x1bc   :  { %221 = vsyncpa [#allocation4], 1 }

// kernel: closed_call.49
= control target key start
LH: loop header
LB: loop body
LE: loop exit
PB: predicated region body
PF: predicated region fallthrough
CT: control target
= control target key end

     0   :  { %8 = vsyncpa [#allocation4], 0  ;;  %s228_s15 = smov [#allocation3]   ;;  %s229_s17 = smov 64   ;;  %s263_s0 = inlined_call_operand.vmem [shape: bf16[16,128], index: 0, kind: input, shape index: {}]   ;;  %s264_s1 = inlined_call_operand.hbm [shape: bf16[128,128], index: 1, kind: input, shape index: {}]   ;;  %s265_s2 = inlined_call_operand.vmem [shape: f32[1,128], index: 2, kind: input, shape index: {}]   ;;  %s266_s3 = inlined_call_operand.vmem [shape: bf16[16,128], index: 3, kind: output, shape index: {}]  }
   0x1   :  { %s15_s14 = sshll.u32 %s264_s1, 4  ;;  %s17_s16 = sshll.u32 %s228_s15, 4  ;;  %s16_s14 = int_to_ptr.hbm [resolvable:$true] %s15_s14  ;;  %s18_s16 = int_to_ptr.vmem [resolvable:$true] %s17_s16 }
   0x2   :  { %s230_s18 = smov 4  }
   0x3   :  { %23 = dma.hbm_to_vmem [thread:$0]  %s16_s14, 1024, %s18_s16, [#allocation4], %s229_s17, %s229_s17, %s230_s18  }
   0x4   :  { %226 = dma.done.wait [#allocation4], 1024  }
   0x5   :  { %227 = vsyncadd [#allocation4], 4294966272  ;;  %v192_v0 = vld [vmem:[#allocation3 + $0x38] sm:$0xff]  ;;  %v191_v1 = vld [vmem:[#allocation3 + $0x30] sm:$0xff] }
   0x6   :  { %110 = vmatpush.bf16.msra.mxu0 %v192_v0  ;;  %v190_v2 = vld [vmem:[#allocation3 + $0x28] sm:$0xff]  ;;  %v189_v3 = vld [vmem:[#allocation3 + $0x20] sm:$0xff]  ;;  %v188_v4 = vld [vmem:[#allocation3 + $0x18] sm:$0xff] }
   0x7   :  { %v187_v5 = vld [vmem:[#allocation3 + $0x10] sm:$0xff]  ;;  %v186_v6 = vld [vmem:[#allocation3 + $0x8] sm:$0xff]  ;;  %v185_v7 = vld [vmem:[#allocation3] sm:$0xff] }
   0x8   :  { %v184_v8 = vld [vmem:[%s263_s0] sm:$0xff] }
   0x9   :  { %v201_v10 = vld [vmem:[%s265_s2] ss:$0 sm:$0xff] }
   0xa   :  { %111 = vmatpush.bf16.msra.mxu0 %v191_v1 }
   0xe   :  { %112 = vmatpush.bf16.msra.mxu0 %v190_v2 }
  0x12   :  { %113 = vmatpush.bf16.msra.mxu0 %v189_v3 }
  0x16   :  { %114 = vmatpush.bf16.msra.mxu0 %v188_v4 }
  0x1a   :  { %115 = vmatpush.bf16.msra.mxu0 %v187_v5 }
  0x1e   :  { %116 = vmatpush.bf16.msra.mxu0 %v186_v6 }
  0x22   :  { %117 = vmatpush.bf16.msra.mxu0 %v185_v7 }
  0x25   :  { %118 = vmatmul.bf16.vlgmr.msra.gmra.mxu0 %v184_v8 }
  0xa2   :  { %v119_v9 = vpop.f32.mrf.mxu0 }
  0xa3   :  { %v137_v12 = vadd.f32 %v201_v10, %v119_v9 }
  0xaa   :  { %v121_v11 = vpop.f32.mrf.mxu0 }
  0xab   :  { %v138_v13 = vadd.f32 %v201_v10, %v121_v11 }
  0xad   :  { %v196_v14 = vpack.c.bf16 %v138_v13, %v137_v12 }
  0xaf   :  { %197 = vst [vmem:[%s266_s3] sm:$0xff] %v196_v14  }
  0xb0   :  { %147 = vsyncpa [#allocation4], 1 }

// kernel: closed_call.52
= control target key start
LH: loop header
LB: loop body
LE: loop exit
PB: predicated region body
PF: predicated region fallthrough
CT: control target
= control target key end

     0   :  { %8 = vsyncpa [#allocation4], 0  ;;  %s871_s0 = inlined_call_operand.vmem [shape: bf16[16,128], index: 0, kind: input, shape index: {}]   ;;  %s872_s1 = inlined_call_operand.hbm [shape: bf16[128,256], index: 1, kind: input, shape index: {}]   ;;  %s873_s2 = inlined_call_operand.vmem [shape: f32[1,256], index: 2, kind: input, shape index: {}]   ;;  %s874_s3 = inlined_call_operand.vmem [shape: bf16[16,256], index: 3, kind: output, shape index: {}]  }
   0x1   :  { %10 = vsyncpa [#allocation4 + $0x1], 0  ;;  %s765_s12 = smov 0   ;;  %s767_s13 = smov 0  }
   0x2   :  { %s769_s14 = smov 0   ;;  %s771_s15 = smov 0  }
   0x3   :  { %s773_s16 = smov 0   ;;  %s775_s17 = smov 0  }
   0x4 LB: > { %s537_s18 = sadd.s32 4294967295, %s740_s17   ;;  %s31_s19 = sadd.s32 1, %s736_s16  ;;  %s740_s17 = sphi %s775_s17, %s16_s17   ;;  %s736_s16 = sphi %s773_s16, %s882_s16   ;;  %s732_s15 = sphi %s771_s15, %s881_s15   ;;  %s728_s14 = sphi %s769_s14, %s880_s14   ;;  %s724_s13 = sphi %s767_s13, %s879_s13   ;;  %s720_s12 = sphi %s765_s12, %s878_s12  }
   0x5   : > { %p33_p0 = scmp.ge.s32.totalorder %s31_s19, 2  ;;  %s72_s20 = sadd.s32 1, %s728_s14 }
   0x6   : > { %p79_p1 = scmp.ne.s32.totalorder %s728_s14, %s724_s13  ;;  %p80_p2 = scmp.eq.s32.totalorder %s740_s17, 0 }
   0x7   : > { %s884_s19 = smov (%p33_p0, %s31_s19), 0  ;;  %p85_p4 = scmp.ne.s32.totalorder %s724_s13, %s720_s12 }
   0x8   : > { %p801_p3 = por %p80_p2, %p79_p1  ;;  %s68_s22 = ssub.s32 %s736_s16, %s884_s19 }
   0x9   : > { %p86_p5 = scmp.eq.s32.totalorder %s537_s18, 0  ;;  %p70_p6 = scmp.eq.s32.totalorder %s68_s22, 0 }
   0xa   : > { %p137_p7 = scmp.eq.s32.totalorder %s537_s18, 1  ;;  %p607_p10 = scmp.lt.s32.totalorder %s740_s17, 2 }
   0xb   : > { %p808_p8 = por %p86_p5, %p85_p4  ;;  %s175_s26 = sand.u32 1, %s728_s14  }
   0xc   : > { %s813_s24 = scalar_select %p70_p6, %s728_s14, %s72_s20  }
   0xd   : > { %p815_p9 = por %p137_p7, %p79_p1  ;;  %s543_s27 = sshll.u32 %s736_s16, 2 }
   0xe   : > { %s542_s28 = sshll.u32 %s175_s26, 6  ;;  %s186_s4 = scalar_lea.hbm %s872_s1, %s543_s27 }
   0xf   : > { %s187_s5 = sshll.u32 %s186_s4, 4  ;;  %s179_s6 = scalar_lea.vmem [#allocation3], %s542_s28  ;;  %s188_s5 = int_to_ptr.hbm [resolvable:$true] %s187_s5 }
  0x10   : > { %s189_s7 = sshll.u32 %s179_s6, 4  ;;  %p604_p11 = pnand %p607_p10, %p801_p3  ;;  %s190_s7 = int_to_ptr.vmem [resolvable:$true] %s189_s7 }
  0x11   : > { %p544_p12 = scmp.ge.s32.totalorder %s740_s17, 1  ;;  %s176_s8 = scalar_lea.sflag [#allocation4], %s175_s26 }
  0x12   : > { %s742_s9 = smov 128   ;;  %s743_s10 = smov 64  }
  0x13   : > { %s744_s11 = smov 4   ;;  %p203_p13 = scmp.lt.s32.totalorder %s740_s17, 3 }
  0x14   : > { %606 = dma.hbm_to_vmem [thread:$0]  (!%p604_p11), %s188_s5, 1024, %s190_s7, %s176_s8, %s742_s9, %s743_s10, %s744_s11  }
  0x15   : > { %p204_p0 = pnand %p544_p12, %p203_p13 }
  0x16   : > { %s830_s12 = sand.u32 (!%p204_p0), 1, %s724_s13  }
  0x17   : > { %207 = sbr.rel (%p204_p0) target bundleno = 211 (0xd3), region = 32  ;;  %s545_s18 = sshll.u32 (!%p204_p0), %s830_s12, 6 }
  0x18   : > { %s210_s20 = scalar_lea.sflag (!%p204_p0), [#allocation4], %s830_s12  ;;  %s213_s22 = scalar_lea.vmem (!%p204_p0), [#allocation3], %s545_s18 }
  0x1c   : > { %715 = dma.done.wait (%p808_p8), %s210_s20, 1024  }
  0x1d   : > { %717 = vsyncadd (%p808_p8), %s210_s20, 4294966272  ;;  %p257_p1 = scmp.lt.s32.totalorder %s732_s15, 1  ;;  %v595_v0 = vld [vmem:[%s213_s22 + $0x38] sm:$0xff]  ;;  %v594_v1 = vld [vmem:[%s213_s22 + $0x30] sm:$0xff]  ;;  %s546_s30 = sshll.u32 %s830_s12, 3 }
  0x1e   : > { %341 = vmatpush.bf16.msra.mxu0 %v595_v0  ;;  %v593_v2 = vld [vmem:[%s213_s22 + $0x28] sm:$0xff]  ;;  %v592_v3 = vld [vmem:[%s213_s22 + $0x20] sm:$0xff]  ;;  %v591_v4 = vld [vmem:[%s213_s22 + $0x18] sm:$0xff]  ;;  %s246_s4 = scalar_lea.vmem [#allocation5], %s546_s30  ;;  %s584_s5 = sshll.u32 (%p815_p9), %s732_s15, 2 }
  0x1f   : > { %s258_s21 = scalar_select %p257_p1, %s732_s15, 1  ;;  %v590_v5 = vld [vmem:[%s213_s22 + $0x10] sm:$0xff]  ;;  %v589_v6 = vld [vmem:[%s213_s22 + $0x8] sm:$0xff]  ;;  %v588_v7 = vld [vmem:[%s213_s22] sm:$0xff] }
  0x20   : > { %v587_v8 = vld [vmem:[%s871_s0] sm:$0xff]  ;;  %s387_s8 = scalar_lea.vmem (%p815_p9), %s874_s3, %s584_s5 }
  0x21   : > { %s259_s28 = scalar_lea.vmem %s873_s2, %s258_s21 }
  0x22   : > { %342 = vmatpush.bf16.msra.mxu0 %v594_v1  ;;  %v659_v10 = vld [vmem:[%s259_s28] ss:$0 sm:$0xff] }
  0x26   : > { %343 = vmatpush.bf16.msra.mxu0 %v593_v2 }
  0x2a   : > { %344 = vmatpush.bf16.msra.mxu0 %v592_v3 }
  0x2e   : > { %345 = vmatpush.bf16.msra.mxu0 %v591_v4 }
  0x32   : > { %346 = vmatpush.bf16.msra.mxu0 %v590_v5 }
  0x36   : > { %347 = vmatpush.bf16.msra.mxu0 %v589_v6 }
  0x3a   : > { %348 = vmatpush.bf16.msra.mxu0 %v588_v7 }
  0x3d   : > { %349 = vmatmul.bf16.vlgmr.msra.gmra.mxu0 %v587_v8 }
  0xba   : > { %v350_v9 = vpop.f32.mrf.mxu0 }
  0xbb   : > { %v368_v11 = vadd.f32 %v659_v10, %v350_v9 }
  0xbd   : > { %v370_v14 = vmax.f32 %v368_v11, 0.0 }
  0xc2   : > { %v352_v12 = vpop.f32.mrf.mxu0 }
  0xc3   : > { %v369_v13 = vadd.f32 %v659_v10, %v352_v12 }
  0xc5   : > { %v371_v15 = vmax.f32 %v369_v13, 0.0  ;;  %382 = sbr.rel (!%p815_p9) target bundleno = 211 (0xd3), region = 48 }
  0xc7   : > { %v599_v16 = vpack.c.bf16 %v371_v15, %v370_v14 }
  0xc9   : > { %600 = vst [vmem:[%s246_s4] sm:$0xff] %v599_v16  }
  0xd0   : > { %v404_v17 = vld [vmem:[%s246_s4] sm:$0xf]  ;;  %v406_v18 = vld [vmem:[%s246_s4 + $0x4] sm:$0xf] }
  0xd1   : > { %405 = vst [vmem:[%s387_s8] sm:$0xf] %v404_v17 }
  0xd2   : > { %407 = vst [vmem:[%s387_s8 + $0x8] sm:$0xf] %v406_v18 }
  0xd3 PF: > { %s16_s17 = sadd.s32 1, %s740_s17   ;;  %s878_s12 = smov %s724_s13 }
  0xd4   : > { %p13_p2 = scmp.ge.s32.totalorder %s16_s17, 4   ;;  %s879_s13 = smov %s728_s14 }
  0xd5   : > { %s880_s14 = smov %s813_s24  ;;  %s881_s15 = smov %s736_s16 }
  0xd6   : > { %s882_s16 = smov %s884_s19  ;;  %15 = sbr.rel (!%p13_p2) target bundleno = 4 (0x4), region = 127 }
  0xdb   :  { %445 = vsyncpa [#allocation4], 1 }
  0xdc   :  { %447 = vsyncpa [#allocation4 + $0x1], 1 }

// kernel: closed_call.50
= control target key start
LH: loop header
LB: loop body
LE: loop exit
PB: predicated region body
PF: predicated region fallthrough
CT: control target
= control target key end

     0   :  { %s816_s15 = smov 0   ;;  %s818_s16 = smov 0   ;;  %s943_s0 = inlined_call_operand.vmem [shape: bf16[2,8,128], index: 0, kind: input, shape index: {}]   ;;  %s944_s1 = inlined_call_operand.vmem [shape: bf16[2,8,256], index: 1, kind: input, shape index: {}, may-alias: {1,2}]   ;;  %s945_s2 = inlined_call_operand.vmem [shape: bf16[2,8,256], index: 2, kind: input, shape index: {}, may-alias: {1,2}]   ;;  %s946_s3 = inlined_call_operand.vmem [shape: f32[2,1,8], index: 3, kind: input, shape index: {}]   ;;  %s947_s4 = inlined_call_operand.vmem [shape: bf16[2,8,128], index: 4, kind: output, shape index: {}]  }
   0x1   :  { %s820_s17 = smov 0  }
   0x2 LB: > { %s26_s18 = sadd.s32 1, %s781_s16  ;;  %p696_p0 = scmp.ge.s32.totalorder %s785_s17, 1  ;;  %s785_s17 = sphi %s820_s17, %s14_s17   ;;  %s781_s16 = sphi %s818_s16, %s951_s16   ;;  %s777_s15 = sphi %s816_s15, %s950_s15  }
   0x3   : > { %p28_p1 = scmp.ge.s32.totalorder %s26_s18, 2  ;;  %p209_p2 = scmp.lt.s32.totalorder %s785_s17, 3 }
   0x5   : > { %s953_s18 = smov (%p28_p1, %s26_s18), 0  ;;  %p210_p3 = pnand %p696_p0, %p209_p2 }
   0x6   : > { %p253_p4 = scmp.lt.s32.totalorder (!%p210_p3), %s777_s15, 1  ;;  %s787_s27 = smov (!%p210_p3), 64  }
   0x7   : > { %213 = sbr.rel (%p210_p3) target bundleno = 1083 (0x43b), region = 36  ;;  %s788_s5 = smov (!%p210_p3), 32  }
   0x8   : > { %s790_s6 = smov (!%p210_p3), 96  }
   0xc   : > { %s955_s15 = smov (!%p253_p4, %s777_s15), 1  ;;  %vm287_vm0 = vcmask 261120   ;;  %v789_v12 = vmov 0   ;;  %vm312_vm3 = vcmask 64512   ;;  %vm328_vm4 = vcmask 1043456  }
   0xd   : > { %s717_s19 = sshll.u32 %s955_s15, 3  ;;  %s697_s23 = sshll.u32 %s955_s15, 2  ;;  %vm346_vm5 = vcmask 257024   ;;  %vm423_vm6 = vcmask 519424   ;;  %vm500_vm7 = vcmask 781824   ;;  %vm577_vm8 = vcmask 1044224  }
   0xe   : > { %s842_s22 = scalar_lea.vmem %s944_s1, %s717_s19  ;;  %s852_s26 = scalar_lea.vmem %s943_s0, %s697_s23 }
   0xf   : > { %v285_v0 = vld [vmem:[%s842_s22] sm:$0xf]  ;;  %s273_s30 = scalar_lea.vmem %s946_s3, %s955_s15  ;;  %s887_s9 = scalar_lea.vmem %s945_s2, %s717_s19 }
  0x10   : > { %v292_v1 = vsel %vm287_vm0, %v285_v0, 0  ;;  %v284_v2 = vld [vmem:[%s852_s26] sm:$0xf]  ;;  %v703_v41 = vld [vmem:[%s887_s9 + $0x4] sm:$0xf]  ;;  %s904_s12 = scalar_lea.vmem %s947_s4, %s697_s23 }
  0x11   : > { %301 = vmatpush.bf16.xpose.msra.mxu0 %v292_v1  ;;  %v426_v3 = vld [vmem:[%s842_s22] sm:$0xf]  ;;  %v330_v42 = vsel %vm328_vm4, %v703_v41, 0 }
  0x12   : > { %v434_v4 = vunpack.c.l.b16 %v426_v3  ;;  %v503_v5 = vld [vmem:[%s842_s22] sm:$0xf]  ;;  %339 = vmatpush.bf16.msra.mxu1 %v330_v42 }
  0x13   : > { %v511_v7 = vunpack.c.l.b16 %v503_v5  ;;  %v425_v9 = vld [vmem:[%s852_s26] sm:$0xf] }
  0x14   : > { %v435_v6 = vpack.c.b16 %v434_v4, %v434_v4  ;;  %v282_v10 = vld [vmem:[%s273_s30] sm:$0x1]  ;;  %v429_v11 = vunpack.c.l.b16 %v425_v9 }
  0x15   : > { %v512_v8 = vpack.c.b16 %v511_v7, %v511_v7  ;;  %vm283_vm1 = vcmp.gt.f32.partialorder %v282_v10, 0.5  ;;  %v502_v15 = vld [vmem:[%s852_s26] sm:$0xf] }
  0x16   : > { %436 = vrot.lane.b32.xlu2 %v435_v6, %s787_s27  ;;  %v308_v13 = vsel %vm283_vm1, 1, %v789_v12  ;;  %v430_v14 = vpack.c.b16 %v429_v11, %v429_v11  ;;  %v506_v17 = vunpack.c.l.b16 %v502_v15  ;;  %v349_v25 = vld [vmem:[%s842_s22] sm:$0xf]  ;;  %v706_v15 = vld [vmem:[%s887_s9 + $0x4] sm:$0xf] }
  0x17   : > { %v309_v16 = vperm.slane %v308_v13, 0  ;;  %v357_v26 = vunpack.c.l.b16 %v349_v25  ;;  %v348_v38 = vld [vmem:[%s852_s26] sm:$0xf]  ;;  %v712_v25 = vld [vmem:[%s887_s9 + $0x4] sm:$0xf] }
  0x18   : > { %704 = vmatmul.msk.bf16.vlgmr.msra.gmra.mxu0 %vm287_vm0, %v284_v2  ;;  %v507_v21 = vpack.c.b16 %v506_v17, %v506_v17  ;;  %v352_v39 = vunpack.c.l.b16 %v348_v38  ;;  %v395_v17 = vunpack.c.l.b16 %v706_v15 }
  0x19   : > { %vm867_vm2 = vcmp.eq.s32.totalorder %v309_v16, 1  ;;  %v358_v27 = vpack.c.b16 %v357_v26, %v357_v26 }
  0x1a   : > { %v353_v40 = vpack.c.b16 %v352_v39, %v352_v39  ;;  %v396_v19 = vpack.c.b16 %v395_v17, %v395_v17 }
  0x1e   : > { %513 = vrot.lane.b32.xlu2 %v512_v8, %s788_s5 }
  0x26   : > { %431 = vrot.lane.b32.xlu2 %v430_v14, %s787_s27 }
  0x2e   : > { %508 = vrot.lane.b32.xlu2 %v507_v21, %s788_s5 }
  0x70   : > { %v437_v28 = vpop.permute.xlu2 %436 }
  0x71   : > { %v442_v43 = vsel %vm287_vm0, %v437_v28, 0 }
  0x72   : > { %451 = vmatpush.bf16.xpose.msrb.mxu1 %v442_v43 }
  0x78   : > { %v514_v29 = vpop.permute.xlu2 %513 }
  0x79   : > { %v519_v34 = vsel %vm287_vm0, %v514_v29, 0 }
  0x7a   : > { %528 = vmatpush.bf16.xpose.msrb.mxu0 %v519_v34 }
  0x80   : > { %v432_v33 = vpop.permute.xlu2 %431 }
  0x88   : > { %v509_v37 = vpop.permute.xlu2 %508 }
  0x89   : > { %713 = vmatmul.msk.bf16.vlgmr.msrb.gmra.mxu0 %vm287_vm0, %v509_v37 }
  0x95   : > { %v303_v18 = vpop.f32.mrf.mxu0 }
  0x96   : > { %v307_v20 = vmul.f32 0.17677669, %v303_v18 }
  0x98   : > { %v311_v22 = vsel %vm867_vm2, %v307_v20, -1e+09 }
  0x99   : > { %v313_v23 = vsel %vm312_vm3, %v311_v22, -inf }
  0x9a   : > { %314 = vmax.xlane.f32.xlu0 %v313_v23  ;;  %v709_v23 = vld [vmem:[%s887_s9 + $0x4] sm:$0xf] }
  0x9d   : > { %v305_v24 = vpop.f32.mrf.mxu0 }
  0x9e   : > { %v472_v24 = vunpack.c.l.b16 %v709_v23 }
  0xa0   : > { %v473_v26 = vpack.c.b16 %v472_v24, %v472_v24 }
  0xae   : > { %359 = vrot.lane.b32.xlu0 %v358_v27, %s790_s6  ;;  %v549_v27 = vunpack.c.l.b16 %v712_v25 }
  0xb0   : > { %v550_v28 = vpack.c.b16 %v549_v27, %v549_v27 }
 0x106   : > { %v530_v50 = vpop.f32.mrf.mxu0 }
 0x107   : > { %v534_v51 = vmul.f32 0.17677669, %v530_v50 }
 0x109   : > { %v535_v52 = vsel %vm867_vm2, %v534_v51, -1e+09 }
 0x10a   : > { %v536_v53 = vsel %vm312_vm3, %v535_v52, -inf }
 0x10d   : > { %v315_v30 = vpop.xlane.xlu0 %314 }
 0x10e   : > { %v316_v31 = vsub.f32 %v311_v22, %v315_v30  ;;  %v532_v54 = vpop.f32.mrf.mxu0 }
 0x110   : > { %v317_v32 = vmul.f32 1.442695, %v316_v31 }
 0x112   : > { %747 = vpow2.f32 %v317_v32 }
 0x118   : > { %v748_v35 = vpop.eup %747 }
 0x119   : > { %v319_v36 = vsel %vm312_vm3, %v748_v35, 0.0 }
 0x11a   : > { %320 = vadd.xlane.f32.xlu1 %v319_v36 }
 0x120   : > { %v360_v44 = vpop.permute.xlu0 %359 }
 0x121   : > { %v365_v45 = vsel %vm287_vm0, %v360_v44, 0 }
 0x122   : > { %374 = vmatpush.bf16.xpose.msra.mxu2 %v365_v45 }
 0x133   : > { %354 = vrot.lane.b32.xlu1 %v353_v40, %s790_s6 }
 0x15d   : > { %537 = vmax.xlane.f32.xlu1 %v536_v53 }
 0x18d   : > { %v321_v46 = vpop.xlane.xlu1 %320 }
 0x18e   : > { %749 = vrcp.f32 %v321_v46 }
 0x194   : > { %v750_v47 = vpop.eup %749 }
 0x195   : > { %v323_v48 = vmul.f32 %v750_v47, %v748_v35 }
 0x197   : > { %v324_v49 = vpack.c.bf16 %v323_v48, %v323_v48 }
 0x199   : > { %705 = vmatmul.msk.bf16.vlgmr.msra.gmra.mxu1 %vm312_vm3, %v324_v49 }
 0x1a5   : > { %v355_v55 = vpop.permute.xlu1 %354 }
 0x1a6   : > { %707 = vmatmul.msk.bf16.vlgmr.msra.gmra.mxu2 %vm287_vm0, %v355_v55 }
 0x1a9   : > { %710 = vmatmul.msk.bf16.vlgmr.msrb.gmra.mxu1 %vm287_vm0, %v432_v33 }
 0x1d0   : > { %v538_v7 = vpop.xlane.xlu1 %537 }
 0x1d1   : > { %v539_v11 = vsub.f32 %v535_v52, %v538_v7 }
 0x1d3   : > { %v540_v13 = vmul.f32 1.442695, %v539_v11 }
 0x216   : > { %v341_v56 = vpop.f32.mrf.mxu1 }
 0x217   : > { %v345_v57 = vpack.c.bf16 %v341_v56, %v341_v56 }
 0x219   : > { %347 = vst.msk [vmem:[%s904_s12] sm:$0xf] %vm346_vm5, %v345_v57 }
 0x21e   : > { %v343_v58 = vpop.f32.mrf.mxu1 }
 0x226   : > { %v453_v59 = vpop.f32.mrf.mxu1 }
 0x227   : > { %v457_v60 = vmul.f32 0.17677669, %v453_v59 }
 0x229   : > { %v376_v61 = vpop.f32.mrf.mxu2  ;;  %v458_v62 = vsel %vm867_vm2, %v457_v60, -1e+09 }
 0x22a   : > { %v380_v63 = vmul.f32 0.17677669, %v376_v61  ;;  %v459_v0 = vsel %vm312_vm3, %v458_v62, -inf }
 0x22b   : > { %460 = vmax.xlane.f32.xlu2 %v459_v0 }
 0x22c   : > { %v381_v1 = vsel %vm867_vm2, %v380_v63, -1e+09 }
 0x22d   : > { %v382_v2 = vsel %vm312_vm3, %v381_v1, -inf }
 0x22e   : > { %v455_v3 = vpop.f32.mrf.mxu1  ;;  %383 = vmax.xlane.f32.xlu0 %v382_v2 }
 0x231   : > { %v378_v4 = vpop.f32.mrf.mxu2 }
 0x243   : > { %397 = vrot.lane.b32.xlu2 %v396_v19, %s790_s6 }
 0x29e   : > { %v461_v5 = vpop.xlane.xlu2 %460 }
 0x29f   : > { %v462_v6 = vsub.f32 %v458_v62, %v461_v5 }
 0x2a1   : > { %v463_v8 = vmul.f32 1.442695, %v462_v6  ;;  %v384_v9 = vpop.xlane.xlu0 %383 }
 0x2a2   : > { %v385_v10 = vsub.f32 %v381_v1, %v384_v9 }
 0x2a3   : > { %751 = vpow2.f32 %v463_v8 }
 0x2a4   : > { %v386_v12 = vmul.f32 1.442695, %v385_v10 }
 0x2a6   : > { %753 = vpow2.f32 %v386_v12  ;;  %v398_v29 = vpop.permute.xlu2 %397 }
 0x2a7   : > { %755 = vpow2.f32 %v540_v13  ;;  %v403_v30 = vsel %vm328_vm4, %v398_v29, 0 }
 0x2a8   : > { %412 = vmatpush.bf16.msra.mxu3 %v403_v30 }
 0x2a9   : > { %v752_v14 = vpop.eup %751 }
 0x2aa   : > { %v465_v16 = vsel %vm312_vm3, %v752_v14, 0.0 }
 0x2ab   : > { %466 = vadd.xlane.f32.xlu1 %v465_v16 }
 0x2ac   : > { %v754_v18 = vpop.eup %753 }
 0x2ad   : > { %v388_v20 = vsel %vm312_vm3, %v754_v18, 0.0  ;;  %v756_v21 = vpop.eup %755 }
 0x2ae   : > { %389 = vadd.xlane.f32.xlu0 %v388_v20  ;;  %v542_v22 = vsel %vm312_vm3, %v756_v21, 0.0 }
 0x2b6   : > { %543 = vadd.xlane.f32.xlu0 %v542_v22 }
 0x2c4   : > { %474 = vrot.lane.b32.xlu1 %v473_v26, %s787_s27 }
 0x2ca   : > { %551 = vrot.lane.b32.xlu0 %v550_v28, %s788_s5 }
 0x31e   : > { %v467_v34 = vpop.xlane.xlu1 %466 }
 0x321   : > { %v390_v31 = vpop.xlane.xlu0 %389 }
 0x322   : > { %757 = vrcp.f32 %v390_v31 }
 0x323   : > { %759 = vrcp.f32 %v467_v34 }
 0x328   : > { %v758_v32 = vpop.eup %757 }
 0x329   : > { %v392_v33 = vmul.f32 %v758_v32, %v754_v18  ;;  %v544_v36 = vpop.xlane.xlu0 %543  ;;  %v760_v37 = vpop.eup %759 }
 0x32a   : > { %761 = vrcp.f32 %v544_v36  ;;  %v469_v39 = vmul.f32 %v760_v37, %v752_v14 }
 0x32b   : > { %v393_v35 = vpack.c.bf16 %v392_v33, %v392_v33 }
 0x32c   : > { %v470_v43 = vpack.c.bf16 %v469_v39, %v469_v39 }
 0x32d   : > { %708 = vmatmul.msk.bf16.vlgmr.msra.gmra.mxu3 %vm312_vm3, %v393_v35 }
 0x330   : > { %v762_v41 = vpop.eup %761 }
 0x331   : > { %v546_v42 = vmul.f32 %v762_v41, %v756_v21 }
 0x333   : > { %v547_v46 = vpack.c.bf16 %v546_v42, %v546_v42 }
 0x336   : > { %v475_v38 = vpop.permute.xlu1 %474 }
 0x337   : > { %v480_v40 = vsel %vm328_vm4, %v475_v38, 0 }
 0x338   : > { %489 = vmatpush.bf16.msrb.mxu3 %v480_v40 }
 0x33c   : > { %v552_v44 = vpop.permute.xlu0 %551 }
 0x33d   : > { %711 = vmatmul.msk.bf16.vlgmr.msrb.gmra.mxu3 %vm312_vm3, %v470_v43  ;;  %v557_v45 = vsel %vm328_vm4, %v552_v44, 0 }
 0x33e   : > { %566 = vmatpush.bf16.msrb.mxu2 %v557_v45 }
 0x341   : > { %714 = vmatmul.msk.bf16.vlgmr.msrb.gmra.mxu2 %vm312_vm3, %v547_v46 }
 0x3b0   : > { %v414_v47 = vpop.f32.mrf.mxu3 }
 0x3b1   : > { %v418_v48 = vpack.c.bf16 %v414_v47, %v414_v47 }
 0x3b3   : > { %420 = vrot.lane.b32.xlu2 %v418_v48, %s788_s5 }
 0x3b8   : > { %v416_v49 = vpop.f32.mrf.mxu3 }
 0x3c0   : > { %v491_v50 = vpop.f32.mrf.mxu3 }
 0x3c1   : > { %v495_v51 = vpack.c.bf16 %v491_v50, %v491_v50 }
 0x3c3   : > { %497 = vrot.lane.b32.xlu2 %v495_v51, %s787_s27 }
 0x3c4   : > { %v568_v52 = vpop.f32.mrf.mxu2 }
 0x3c5   : > { %v572_v53 = vpack.c.bf16 %v568_v52, %v568_v52 }
 0x3c7   : > { %574 = vrot.lane.b32.xlu0 %v572_v53, %s790_s6 }
 0x3c8   : > { %v493_v54 = vpop.f32.mrf.mxu3 }
 0x3cc   : > { %v570_v55 = vpop.f32.mrf.mxu2 }
 0x40d   : > { %v421_v56 = vpop.permute.xlu2 %420 }
 0x40e   : > { %424 = vst.msk [vmem:[%s904_s12] sm:$0xf] %vm423_vm6, %v421_v56 }
 0x41d   : > { %v498_v57 = vpop.permute.xlu2 %497 }
 0x41e   : > { %501 = vst.msk [vmem:[%s904_s12] sm:$0xf] %vm500_vm7, %v498_v57 }
 0x439   : > { %v575_v58 = vpop.permute.xlu0 %574 }
 0x43a   : > { %578 = vst.msk [vmem:[%s904_s12] sm:$0xf] %vm577_vm8, %v575_v58 }
 0x43b PF: > { %s14_s17 = sadd.s32 1, %s785_s17   ;;  %s950_s15 = smov %s781_s16 }
 0x43c   : > { %p11_p5 = scmp.ge.s32.totalorder %s14_s17, 4   ;;  %s951_s16 = smov %s953_s18 }
 0x43e   :  { %13 = sbr.rel (!%p11_p5) target bundleno = 2 (0x2), region = 75 }

// kernel: generator_forward.3
= control target key start
LH: loop header
LB: loop body
LE: loop exit
PB: predicated region body
PF: predicated region fallthrough
CT: control target
= control target key end

     0   :  { %vm19_vm0 = vcmask 523264   ;;  %v222_v2 = vmov 0.0   ;;  %s285_s0 = inlined_call_operand.vmem [shape: bf16[16,128], index: 0, kind: input, shape index: {}]   ;;  %s286_s1 = inlined_call_operand.vmem [shape: bf16[128,64], index: 1, kind: input, shape index: {}]   ;;  %s287_s2 = inlined_call_operand.vmem [shape: f32[1,64], index: 2, kind: input, shape index: {}]   ;;  %s288_s3 = inlined_call_operand.hbm [shape: f32[16,64], index: 3, kind: output, shape index: {}]  }
   0x1   :  { %v190_v0 = vld [vmem:[%s286_s1 + $0x38] sm:$0xff]  ;;  %v189_v1 = vld [vmem:[%s286_s1 + $0x30] sm:$0xff]  ;;  %20 = vst.msk [vmem:[#allocation2] sm:$0xff] %vm19_vm0, %v222_v2 }
   0x2   :  { %96 = vmatpush.bf16.msra.mxu0 %v190_v0  ;;  %21 = vst.msk [vmem:[#allocation2 + $0x8] sm:$0xff] %vm19_vm0, %v222_v2 }
   0x3   :  { %8 = vsyncpa [#allocation4], 0  ;;  %v188_v3 = vld [vmem:[%s286_s1 + $0x28] sm:$0xff]  ;;  %v187_v4 = vld [vmem:[%s286_s1 + $0x20] sm:$0xff]  ;;  %s134_s7 = sshll.u32 %s288_s3, 4  ;;  %s225_s8 = smov 8   ;;  %s135_s7 = int_to_ptr.hbm [resolvable:$true] %s134_s7 }
   0x4   :  { %v186_v5 = vld [vmem:[%s286_s1 + $0x18] sm:$0xff]  ;;  %v185_v6 = vld [vmem:[%s286_s1 + $0x10] sm:$0xff]  ;;  %v184_v7 = vld [vmem:[%s286_s1 + $0x8] sm:$0xff] }
   0x5   :  { %v183_v8 = vld [vmem:[%s286_s1] sm:$0xff] }
   0x6   :  { %97 = vmatpush.bf16.msra.mxu0 %v189_v1  ;;  %v182_v9 = vld [vmem:[%s285_s0] sm:$0xff]  ;;  %s223_s0 = smov [#allocation3]  }
   0x7   :  { %v195_v14 = vld [vmem:[%s287_s2] ss:$0 sm:$0xff]  ;;  %s132_s1 = sshll.u32 %s223_s0, 4  ;;  %s224_s2 = smov 128   ;;  %s133_s1 = int_to_ptr.vmem [resolvable:$true] %s132_s1 }
   0x8   :  { %v22_v10 = vld [vmem:[#allocation2] sm:$0xff] }
   0x9   :  { %v23_v13 = vld [vmem:[#allocation2 + $0x8] sm:$0xff] }
   0xa   :  { %98 = vmatpush.bf16.msra.mxu0 %v188_v3 }
   0xe   :  { %99 = vmatpush.bf16.msra.mxu0 %v187_v4 }
  0x12   :  { %100 = vmatpush.bf16.msra.mxu0 %v186_v5 }
  0x16   :  { %101 = vmatpush.bf16.msra.mxu0 %v185_v6 }
  0x1a   :  { %102 = vmatpush.bf16.msra.mxu0 %v184_v7 }
  0x1e   :  { %103 = vmatpush.bf16.msra.mxu0 %v183_v8 }
  0x21   :  { %104 = vmatmul.bf16.vlgmr.msra.gmra.mxu0 %v182_v9 }
  0x9e   :  { %v105_v11 = vpop.f32.mrf.mxu0 }
  0x9f   :  { %v110_v12 = vadd.f32 %v105_v11, %v22_v10 }
  0xa1   :  { %113 = vst.msk [vmem:[#allocation2] sm:$0xff] %vm19_vm0, %v110_v12 }
  0xa6   :  { %v107_v15 = vpop.f32.mrf.mxu0 }
  0xa7   :  { %v111_v16 = vadd.f32 %v107_v15, %v23_v13 }
  0xa8   :  { %v118_v17 = vld [vmem:[#allocation2] sm:$0xff] }
  0xa9   :  { %114 = vst.msk [vmem:[#allocation2 + $0x8] sm:$0xff] %vm19_vm0, %v111_v16  ;;  %v124_v18 = vadd.f32 %v195_v14, %v118_v17 }
  0xab   :  { %126 = vst.msk [vmem:[#allocation3] sm:$0xff] %vm19_vm0, %v124_v18 }
  0xb0   :  { %v119_v19 = vld [vmem:[#allocation2 + $0x8] sm:$0xff] }
  0xb1   :  { %v125_v20 = vadd.f32 %v195_v14, %v119_v19 }
  0xb3   :  { %127 = vst.msk [vmem:[#allocation3 + $0x8] sm:$0xff] %vm19_vm0, %v125_v20 }
  0xb4   :  { %140 = dma.vmem_to_hbm [thread:$0]  %s133_s1, 256, %s135_s7, [#allocation4], %s224_s2, %s224_s2, %s225_s8  }
  0xb5   :  { %220 = dma.done.wait [#allocation4], 256  }
  0xb6   :  { %221 = vsyncadd [#allocation4], 4294967040 }
  0xb7   :  { %145 = vsyncpa [#allocation4], 1 }

</bundles_post_ra>
